<compile_context>
chip_gen: v7x
topology: tpu7x:2x2x1
jax: 0.10.0
libtpu: 0.0.40
codegen_flags: <defaults>
</compile_context>

<pallas_src>
import math

import jax
import jax.numpy as jnp
from jax.experimental import pallas as pl
from jax.experimental.pallas import tpu as pltpu


_VMEM_LIMIT = 64 * 1024 * 1024


# ----------------------------------------------------------------------------
# helpers
# ----------------------------------------------------------------------------
def _round_up(x, m):
    return -(-x // m) * m


def _pick_row_tile(m):
    """Row tile: prefer big tiles; avoid padding when a divisor exists."""
    if m <= 1024 and m % 8 == 0:
        return m, m
    for c in (512, 256, 1024, 128, 64, 32, 16, 8):
        if m % c == 0:
            return c, m
    return 512, _round_up(m, 512)


def _pick_col_tile(n):
    """Channel (lane) tile: always a lane-dense multiple of 128 (n is pre-padded)."""
    assert n % 128 == 0, n
    if n <= 512:
        return n
    if n % 256 == 0:
        return 256
    return 128


def _pad_axis(x, axis, target):
    pad = target - x.shape[axis]
    if pad == 0:
        return x
    cfg = [(0, 0)] * x.ndim
    cfg[axis] = (0, pad)
    return jnp.pad(x, cfg)


def _fold_bn(gamma, beta, mean, var, eps=1e-5):
    scale = gamma / jnp.sqrt(var + eps)
    bias = beta - mean * scale
    return scale.astype(jnp.float32), bias.astype(jnp.float32)


# ----------------------------------------------------------------------------
# Pallas kernel 1: fused 1x1-conv matmul
#   out = act(a @ w + bias [+ a2 @ w2 (fused downsample)] [+ residual])
#   K (=Cin) lives in a single tile -> no K grid axis, no accumulator scratch.
# ----------------------------------------------------------------------------
def _make_pointwise_kernel(with_dual, with_res, relu):
    def kernel(*args):
        a_ref, w_ref, b_ref = args[0], args[1], args[2]
        i = 3
        acc = jnp.dot(a_ref[...], w_ref[...], preferred_element_type=jnp.float32)
        if with_dual:
            a2_ref, w2_ref = args[i], args[i + 1]
            i += 2
            acc = acc + jnp.dot(a2_ref[...], w2_ref[...],
                                preferred_element_type=jnp.float32)
        out = acc + b_ref[...]
        if with_res:
            out = out + args[i][...].astype(jnp.float32)
            i += 1
        if relu:
            out = jnp.maximum(out, 0.0)
        o_ref = args[i]
        o_ref[...] = out.astype(o_ref.dtype)

    return kernel


def fused_pointwise(a, w, bias, *, a2=None, w2=None, residual=None, relu=True,
                    out_dtype=jnp.bfloat16):
    """a: (M, K); w: (K, Np); bias: (Np,) with Np % 128 == 0.  bf16 MXU, f32 acc."""
    M, K = a.shape
    Kw, Np = w.shape
    assert Kw == K and Np % 128 == 0
    tm, Mp = _pick_row_tile(M)
    tn = _pick_col_tile(Np)

    def rows(z):
        z = z.astype(jnp.bfloat16)
        return jnp.pad(z, ((0, Mp - M), (0, 0))) if Mp != M else z

    inputs = [rows(a), w.astype(jnp.bfloat16),
              bias.reshape(1, Np).astype(jnp.float32)]
    in_specs = [pl.BlockSpec((tm, K), lambda i, j: (i, 0)),
                pl.BlockSpec((K, tn), lambda i, j: (0, j)),
                pl.BlockSpec((1, tn), lambda i, j: (0, j))]

    with_dual = a2 is not None
    if with_dual:
        K2 = a2.shape[1]
        assert w2.shape == (K2, Np)
        inputs += [rows(a2), w2.astype(jnp.bfloat16)]
        in_specs += [pl.BlockSpec((tm, K2), lambda i, j: (i, 0)),
                     pl.BlockSpec((K2, tn), lambda i, j: (0, j))]

    with_res = residual is not None
    if with_res:
        assert residual.shape == (M, Np)
        inputs.append(rows(residual))
        in_specs.append(pl.BlockSpec((tm, tn), lambda i, j: (i, j)))

    out = pl.pallas_call(
        _make_pointwise_kernel(with_dual, with_res, relu),
        out_shape=jax.ShapeDtypeStruct((Mp, Np), out_dtype),
        grid_spec=pltpu.PrefetchScalarGridSpec(
            num_scalar_prefetch=0,
            grid=(Mp // tm, Np // tn),
            in_specs=in_specs,
            out_specs=pl.BlockSpec((tm, tn), lambda i, j: (i, j)),
        ),
        compiler_params=pltpu.CompilerParams(
            dimension_semantics=("parallel", "parallel"),
            vmem_limit_bytes=_VMEM_LIMIT),
    )(*inputs)
    return out[:M] if Mp != M else out


# ----------------------------------------------------------------------------
# Pallas kernel 2: fused 3x3 conv + BN + ReLU
#   Per row-band: copy the 9 taps (contiguous flat-plane windows) into a VMEM
#   im2col scratch, then ONE dot with K = 9*Cin (accumulation stays in the MXU).
# ----------------------------------------------------------------------------
def _build_conv2_planes(x, stride):
    """Prepare the conv2 input as flattened, zero-padded (phase) planes.

    Returns (xflat, taps, Ho, Wo, Wph):
      xflat: (N, NPH, Lp, C) bf16 row-major flattened padded plane(s);
      taps:  9 static (phase_index, flat_row_offset) pairs: for output pixel
             m = i*Wph + j, tap t reads xflat[phase_t, m + offset_t]
             == padded_input[i*stride + di, j*stride + dj];
      Wph:   plane width == output row pitch (columns j >= Wo are discarded).
    """
    N, H, W, C = x.shape
    Ho = (H - 1) // stride + 1
    Wo = (W - 1) // stride + 1
    if stride == 1:
        PR, PC = H + 3, W + 2            # 1 top / 2 bottom pad rows (window overrun)
        planes_ = jnp.pad(x, ((0, 0), (1, 2), (1, 1), (0, 0)))[:, None]
        taps = [(0, di * PC + dj) for di in range(3) for dj in range(3)]
    elif stride == 2:
        # phase plane (p, q)[a, b] = padded_x[2a + p, 2b + q]; built directly from
        # the unpadded input in one fused slice/pad/stack pass.
        PR, PC = Ho + 2, Wo + 1
        phases = []
        for p in range(2):
            for q in range(2):
                a_lo, b_lo = 1 - p, 1 - q           # leading zero rows / cols
                rs, cs = 2 * a_lo + p - 1, 2 * b_lo + q - 1
                nr = min((H - 1 - rs) // 2 + 1, PR - a_lo)
                nc = min((W - 1 - cs) // 2 + 1, PC - b_lo)
                core = x[:, rs:rs + 2 * nr:2, cs:cs + 2 * nc:2, :]
                phases.append(jnp.pad(core, ((0, 0),
                                             (a_lo, PR - a_lo - nr),
                                             (b_lo, PC - b_lo - nc),
                                             (0, 0))))
        planes_ = jnp.stack(phases, axis=1)          # (N, 4, PR, PC, C)
        taps = [((di % 2) * 2 + (dj % 2), (di // 2) * PC + (dj // 2))
                for di in range(3) for dj in range(3)]
    else:
        raise NotImplementedError(f"unsupported stride {stride}")
    xflat = planes_.reshape(N, planes_.shape[1], PR * PC, C)
    return xflat, taps, Ho, Wo, PC


def _make_conv3x3_kernel(taps, Ho, Wo, Wph, Cinp, TB):
    def kernel(x_ref, w_ref, b_ref, o_ref, col_ref):
        # x_ref: (1, NPH, Lp, Cinp) bf16;  w_ref: (9*Cinp, tn) bf16 (scale folded)
        # b_ref: (1, tn) f32;  o_ref: (1, Ho, Wo, tn) bf16
        # col_ref: (TB*Wph, 9*Cinp) bf16 im2col scratch
        for i0 in range(0, Ho, TB):
            tb = min(TB, Ho - i0)
            rows = tb * Wph
            for t, (ph, off) in enumerate(taps):
                s0 = i0 * Wph + off
                col_ref[0:rows, t * Cinp:(t + 1) * Cinp] = \
                    x_ref[0, ph, s0:s0 + rows, :]
            res = jnp.dot(col_ref[0:rows, :], w_ref[...],
                          preferred_element_type=jnp.float32)
            res = jnp.maximum(res + b_ref[...], 0.0).astype(o_ref.dtype)
            for r in range(tb):
                o_ref[0, i0 + r, :, :] = res[r * Wph:r * Wph + Wo, :]

    return kernel


def conv3x3_bn_relu(xflat, w9, bias, taps, Ho, Wo, Wph):
    """3x3 conv (pad=1; stride folded into xflat/taps) + folded BN + ReLU."""
    N, NPH, Lp, Cinp = xflat.shape
    K9, Coutp = w9.shape
    assert K9 == 9 * Cinp and Coutp % 128 == 0
    tn = _pick_col_tile(Coutp)
    TB = max(1, min(Ho, -(-512 // Wph)))          # ~512 output-pitch rows per dot

    return pl.pallas_call(
        _make_conv3x3_kernel(taps, Ho, Wo, Wph, Cinp, TB),
        out_shape=jax.ShapeDtypeStruct((N, Ho, Wo, Coutp), jnp.bfloat16),
        grid_spec=pltpu.PrefetchScalarGridSpec(
            num_scalar_prefetch=0,
            grid=(N, Coutp // tn),
            in_specs=[
                pl.BlockSpec((1, NPH, Lp, Cinp), lambda n, j: (n, 0, 0, 0)),
                pl.BlockSpec((K9, tn), lambda n, j: (0, j)),
                pl.BlockSpec((1, tn), lambda n, j: (0, j)),
            ],
            out_specs=pl.BlockSpec((1, Ho, Wo, tn), lambda n, j: (n, 0, 0, j)),
            scratch_shapes=[pltpu.VMEM((TB * Wph, K9), jnp.bfloat16)],
        ),
        compiler_params=pltpu.CompilerParams(
            dimension_semantics=("parallel", "parallel"),
            vmem_limit_bytes=_VMEM_LIMIT),
    )(xflat, w9.astype(jnp.bfloat16), bias.reshape(1, Coutp).astype(jnp.float32))


# ----------------------------------------------------------------------------
# Bottleneck block (expansion = 4): parameters + forward
# ----------------------------------------------------------------------------
_EXPANSION = 4


def init_bottleneck_params(key, inplanes, planes, stride=1):
    cout = planes * _EXPANSION
    k1, k2, k3, kd = jax.random.split(key, 4)

    def conv_w(k, kh, kw, cin, co):
        n = kh * kw * co
        return jax.random.normal(k, (kh, kw, cin, co), jnp.float32) * math.sqrt(2.0 / n)

    def bn(c):  # (gamma, beta, running_mean, running_var): fresh-module values
        return (jnp.ones((c,), jnp.float32), jnp.zeros((c,), jnp.float32),
                jnp.zeros((c,), jnp.float32), jnp.ones((c,), jnp.float32))

    p = {"w1": conv_w(k1, 1, 1, inplanes, planes), "bn1": bn(planes),
         "w2": conv_w(k2, 3, 3, planes, planes), "bn2": bn(planes),
         "w3": conv_w(k3, 1, 1, planes, cout), "bn3": bn(cout)}
    if stride != 1 or inplanes != cout:   # downsample: 1x1 conv (stride) + BN
        p["wd"] = conv_w(kd, 1, 1, inplanes, cout)
        p["bnd"] = bn(cout)
    return p


def bottleneck_forward(params, x_nchw, stride=1):
    """conv1/bn1/relu -> conv2/bn2/relu -> conv3/bn3 -> (+ downsample(x) | x) -> relu.

    Input / output NCHW f32 (intermediates bf16; small rounding tolerance)."""
    x = jnp.transpose(x_nchw, (0, 2, 3, 1)).astype(jnp.bfloat16)   # NHWC bf16
    N, H, W, Cin = x.shape
    planes = params["w1"].shape[-1]
    cout = params["w3"].shape[-1]
    Pp = _round_up(max(planes, 128), 128)      # lane-dense padded channel widths
    Cop = _round_up(max(cout, 128), 128)
    if "wd" not in params:
        assert stride == 1 and Cin == cout, \
            "identity residual requires stride == 1 and inplanes == planes * 4"

    # conv1 (1x1) + bn1 + relu   (BN scale folded into the weight columns)
    s1, b1 = _fold_bn(*params["bn1"])
    w1 = _pad_axis(params["w1"].reshape(Cin, planes) * s1[None, :], 1, Pp)
    h1 = fused_pointwise(x.reshape(N * H * W, Cin), w1, _pad_axis(b1, 0, Pp))
    h1 = h1.reshape(N, H, W, Pp)

    # conv2 (3x3, stride, pad=1) + bn2 + relu   (single K=9*Cin dot per row band)
    s2, b2 = _fold_bn(*params["bn2"])
    w2 = _pad_axis(_pad_axis(params["w2"] * s2, 2, Pp), 3, Pp).reshape(9 * Pp, Pp)
    xflat, taps, Ho, Wo, Wph = _build_conv2_planes(h1, stride)
    h2 = conv3x3_bn_relu(xflat, w2, _pad_axis(b2, 0, Pp), taps, Ho, Wo, Wph)

    # conv3 (1x1) + bn3 + residual + relu   (downsample fused as a second dot)
    s3, b3 = _fold_bn(*params["bn3"])
    w3 = _pad_axis(_pad_axis(params["w3"].reshape(planes, cout) * s3[None, :],
                             0, Pp), 1, Cop)
    b3p = _pad_axis(b3, 0, Cop)
    M3 = N * Ho * Wo
    a3 = h2.reshape(M3, Pp)
    if "wd" in params:
        sd, bd = _fold_bn(*params["bnd"])
        wd = _pad_axis(params["wd"].reshape(Cin, cout) * sd[None, :], 1, Cop)
        xs = x[:, ::stride, ::stride, :].reshape(M3, Cin)   # 1x1 stride-s conv
        out = fused_pointwise(a3, w3, b3p + _pad_axis(bd, 0, Cop),
                              a2=xs, w2=wd, relu=True, out_dtype=jnp.float32)
    else:
        res = _pad_axis(x.reshape(M3, Cin), 1, Cop)
        out = fused_pointwise(a3, w3, b3p, residual=res, relu=True,
                              out_dtype=jnp.float32)

    out = out.reshape(N, Ho, Wo, Cop)[..., :cout]
    return jnp.transpose(out, (0, 3, 1, 2))                        # NCHW f32


# ----------------------------------------------------------------------------
# pure-JAX f32 reference (inference-mode BN) for tolerance checking
# ----------------------------------------------------------------------------
def _reference_bottleneck(params, x_nchw, stride=1):
    x = jnp.transpose(x_nchw, (0, 2, 3, 1))

    def conv(h, w, s):
        pad = [(1, 1), (1, 1)] if w.shape[0] == 3 else [(0, 0), (0, 0)]
        return jax.lax.conv_general_dilated(
            h, w, window_strides=(s, s), padding=pad,
            dimension_numbers=("NHWC", "HWIO", "NHWC"),
            precision=jax.lax.Precision.HIGHEST)

    def bn(h, p):
        sc, bi = _fold_bn(*p)
        return h * sc + bi

    out = jax.nn.relu(bn(conv(x, params["w1"], 1), params["bn1"]))
    out = jax.nn.relu(bn(conv(out, params["w2"], stride), params["bn2"]))
    out = bn(conv(out, params["w3"], 1), params["bn3"])
    if "wd" in params:
        idn = bn(conv(x[:, ::stride, ::stride, :], params["wd"], 1), params["bnd"])
    else:
        idn = x
    return jnp.transpose(jax.nn.relu(out + idn), (0, 3, 1, 2))


# ----------------------------------------------------------------------------
if __name__ == "__main__":
    key = jax.random.PRNGKey(0)
    kp1, kp2, kx = jax.random.split(key, 3)

    inplanes, planes = 64, 16
    # block A: stride 2 + downsample (strided conv2, fused downsample dot)
    params_a = init_bottleneck_params(kp1, inplanes, planes, stride=2)
    # block B: stride 1, identity residual (inplanes == planes * 4)
    params_b = init_bottleneck_params(kp2, planes * _EXPANSION, planes, stride=1)

    x = jax.random.normal(kx, (2, inplanes, 16, 16), jnp.float32)

    fwd = jax.jit(bottleneck_forward, static_argnames=("stride",))
    y1 = fwd(params_a, x, stride=2)
    y2 = fwd(params_b, y1, stride=1)
    jax.block_until_ready(y2)

    assert y1.shape == (2, planes * _EXPANSION, 8, 8), y1.shape
    assert y2.shape == (2, planes * _EXPANSION, 8, 8), y2.shape
    assert bool(jnp.all(jnp.isfinite(y1))) and bool(jnp.all(jnp.isfinite(y2)))
    assert bool(jnp.all(y2 >= 0))          # final ReLU

    # bf16-internal kernels vs f32 reference (tolerance relative to max |ref|)
    r1 = _reference_bottleneck(params_a, x, stride=2)
    r2 = _reference_bottleneck(params_b, r1, stride=1)
    for y, r in ((y1, r1), (y2, r2)):
        err = float(jnp.max(jnp.abs(y - r)) / (jnp.max(jnp.abs(r)) + 1e-6))
        assert err < 0.1, f"max relative error {err}"

    print("KERNEL_OK")
</pallas_src>

<mosaic_0001>
module attributes {stable_mosaic.version = 11 : i64} {
  func.func @kernel(%arg0: i32, %arg1: i32, %arg2: memref<512x64xbf16, #tpu.memory_space<vmem>>, %arg3: memref<64x128xbf16, #tpu.memory_space<vmem>>, %arg4: memref<1x128xf32, #tpu.memory_space<vmem>>, %arg5: memref<512x128xbf16, #tpu.memory_space<vmem>>) attributes {dimension_semantics = [#tpu.dimension_semantics<parallel>, #tpu.dimension_semantics<parallel>], iteration_bounds = array<i64: 1, 1>, scalar_prefetch = 0 : i64, scratch_operands = 0 : i64, tpu.core_type = #tpu.core_type<tc>, window_params = [{transform_indices = @transform_0, window_bounds = array<i64: 512, 64>}, {transform_indices = @transform_1, window_bounds = array<i64: 64, 128>}, {transform_indices = @transform_2, window_bounds = array<i64: 1, 128>}, {transform_indices = @transform_3, window_bounds = array<i64: 512, 128>}]} {
    %c0 = arith.constant 0 : index
    %c0_0 = arith.constant 0 : index
    %0 = vector.load %arg2[%c0, %c0_0] : memref<512x64xbf16, #tpu.memory_space<vmem>>, vector<512x64xbf16>
    %c0_1 = arith.constant 0 : index
    %c0_2 = arith.constant 0 : index
    %1 = vector.load %arg3[%c0_1, %c0_2] : memref<64x128xbf16, #tpu.memory_space<vmem>>, vector<64x128xbf16>
    %cst = arith.constant dense<0.000000e+00> : vector<512x128xf32>
    %2 = tpu.matmul %0, %1, %cst {dimension_numbers = #tpu.dot_dimension_numbers<[1], [0], [0], [1], [0, 0, 1, 1], [], []>} : vector<512x64xbf16>, vector<64x128xbf16>, vector<512x128xf32> -> vector<512x128xf32>
    %c0_3 = arith.constant 0 : index
    %c0_4 = arith.constant 0 : index
    %3 = vector.load %arg4[%c0_3, %c0_4] : memref<1x128xf32, #tpu.memory_space<vmem>>, vector<1x128xf32>
    %4 = vector.broadcast %3 : vector<1x128xf32> to vector<512x128xf32>
    %5 = arith.addf %2, %4 : vector<512x128xf32>
    %cst_5 = arith.constant 0.000000e+00 : f32
    %6 = vector.broadcast %cst_5 : f32 to vector<512x128xf32>
    %7 = arith.maximumf %5, %6 : vector<512x128xf32>
    %8 = arith.truncf %7 : vector<512x128xf32> to vector<512x128xbf16>
    %c0_6 = arith.constant 0 : index
    %c0_7 = arith.constant 0 : index
    %9 = vector.load %arg5[%c0_6, %c0_7] : memref<512x128xbf16, #tpu.memory_space<vmem>>, vector<512x128xbf16>
    tpu.vector_store %arg5[%c0_6, %c0_7], %8 {strides = array<i32>} : memref<512x128xbf16, #tpu.memory_space<vmem>>, vector<512x128xbf16>,
    return
  }
  func.func @transform_0(%arg0: i32, %arg1: i32) -> (i32, i32) {
    %c0_i32 = arith.constant 0 : i32
    %c0_i32_0 = arith.constant 0 : i32
    return %arg0, %c0_i32 : i32, i32
  }
  func.func @transform_1(%arg0: i32, %arg1: i32) -> (i32, i32) {
    %c0_i32 = arith.constant 0 : i32
    %c0_i32_0 = arith.constant 0 : i32
    return %c0_i32, %arg1 : i32, i32
  }
  func.func @transform_2(%arg0: i32, %arg1: i32) -> (i32, i32) {
    %c0_i32 = arith.constant 0 : i32
    %c0_i32_0 = arith.constant 0 : i32
    return %c0_i32, %arg1 : i32, i32
  }
  func.func @transform_3(%arg0: i32, %arg1: i32) -> (i32, i32) {
    %c0_i32 = arith.constant 0 : i32
    return %arg0, %arg1 : i32, i32
  }
}

module attributes {stable_mosaic.version = 11 : i64} {
  func.func @kernel(%arg0: i32, %arg1: i32, %arg2: memref<1x4x90x128xbf16, #tpu.memory_space<vmem>>, %arg3: memref<1152x128xbf16, #tpu.memory_space<vmem>>, %arg4: memref<1x128xf32, #tpu.memory_space<vmem>>, %arg5: memref<1x8x8x128xbf16, #tpu.memory_space<vmem>>, %arg6: memref<72x1152xbf16, #tpu.memory_space<vmem>>) attributes {dimension_semantics = [#tpu.dimension_semantics<parallel>, #tpu.dimension_semantics<parallel>], iteration_bounds = array<i64: 2, 1>, scalar_prefetch = 0 : i64, scratch_operands = 1 : i64, tpu.core_type = #tpu.core_type<tc>, window_params = [{transform_indices = @transform_0, window_bounds = array<i64: 1, 4, 90, 128>}, {transform_indices = @transform_1, window_bounds = array<i64: 1152, 128>}, {transform_indices = @transform_2, window_bounds = array<i64: 1, 128>}, {transform_indices = @transform_3, window_bounds = array<i64: 1, 8, 8, 128>}]} {
    %c0 = arith.constant 0 : index
    %c0_0 = arith.constant 0 : index
    %c0_1 = arith.constant 0 : index
    %c0_2 = arith.constant 0 : index
    %0 = vector.load %arg2[%c0, %c0_0, %c0_1, %c0_2] : memref<1x4x90x128xbf16, #tpu.memory_space<vmem>>, vector<1x1x72x128xbf16>
    %1 = vector.shape_cast %0 : vector<1x1x72x128xbf16> to vector<72x128xbf16>
    %c0_3 = arith.constant 0 : index
    %c0_4 = arith.constant 0 : index
    %2 = vector.load %arg6[%c0_3, %c0_4] : memref<72x1152xbf16, #tpu.memory_space<vmem>>, vector<72x128xbf16>
    tpu.vector_store %arg6[%c0_3, %c0_4], %1 {strides = array<i32>} : memref<72x1152xbf16, #tpu.memory_space<vmem>>, vector<72x128xbf16>,
    %c0_5 = arith.constant 0 : index
    %c1 = arith.constant 1 : index
    %c0_6 = arith.constant 0 : index
    %c0_7 = arith.constant 0 : index
    %3 = vector.load %arg2[%c0_5, %c1, %c0_6, %c0_7] : memref<1x4x90x128xbf16, #tpu.memory_space<vmem>>, vector<1x1x72x128xbf16>
    %4 = vector.shape_cast %3 : vector<1x1x72x128xbf16> to vector<72x128xbf16>
    %c0_8 = arith.constant 0 : index
    %c128 = arith.constant 128 : index
    %5 = vector.load %arg6[%c0_8, %c128] : memref<72x1152xbf16, #tpu.memory_space<vmem>>, vector<72x128xbf16>
    tpu.vector_store %arg6[%c0_8, %c128], %4 {strides = array<i32>} : memref<72x1152xbf16, #tpu.memory_space<vmem>>, vector<72x128xbf16>,
    %c0_9 = arith.constant 0 : index
    %c0_10 = arith.constant 0 : index
    %c1_11 = arith.constant 1 : index
    %c0_12 = arith.constant 0 : index
    %6 = vector.load %arg2[%c0_9, %c0_10, %c1_11, %c0_12] : memref<1x4x90x128xbf16, #tpu.memory_space<vmem>>, vector<1x1x72x128xbf16>
    %7 = vector.shape_cast %6 : vector<1x1x72x128xbf16> to vector<72x128xbf16>
    %c0_13 = arith.constant 0 : index
    %c256 = arith.constant 256 : index
    %8 = vector.load %arg6[%c0_13, %c256] : memref<72x1152xbf16, #tpu.memory_space<vmem>>, vector<72x128xbf16>
    tpu.vector_store %arg6[%c0_13, %c256], %7 {strides = array<i32>} : memref<72x1152xbf16, #tpu.memory_space<vmem>>, vector<72x128xbf16>,
    %c0_14 = arith.constant 0 : index
    %c2 = arith.constant 2 : index
    %c0_15 = arith.constant 0 : index
    %c0_16 = arith.constant 0 : index
    %9 = vector.load %arg2[%c0_14, %c2, %c0_15, %c0_16] : memref<1x4x90x128xbf16, #tpu.memory_space<vmem>>, vector<1x1x72x128xbf16>
    %10 = vector.shape_cast %9 : vector<1x1x72x128xbf16> to vector<72x128xbf16>
    %c0_17 = arith.constant 0 : index
    %c384 = arith.constant 384 : index
    %11 = vector.load %arg6[%c0_17, %c384] : memref<72x1152xbf16, #tpu.memory_space<vmem>>, vector<72x128xbf16>
    tpu.vector_store %arg6[%c0_17, %c384], %10 {strides = array<i32>} : memref<72x1152xbf16, #tpu.memory_space<vmem>>, vector<72x128xbf16>,
    %c0_18 = arith.constant 0 : index
    %c3 = arith.constant 3 : index
    %c0_19 = arith.constant 0 : index
    %c0_20 = arith.constant 0 : index
    %12 = vector.load %arg2[%c0_18, %c3, %c0_19, %c0_20] : memref<1x4x90x128xbf16, #tpu.memory_space<vmem>>, vector<1x1x72x128xbf16>
    %13 = vector.shape_cast %12 : vector<1x1x72x128xbf16> to vector<72x128xbf16>
    %c0_21 = arith.constant 0 : index
    %c512 = arith.constant 512 : index
    %14 = vector.load %arg6[%c0_21, %c512] : memref<72x1152xbf16, #tpu.memory_space<vmem>>, vector<72x128xbf16>
    tpu.vector_store %arg6[%c0_21, %c512], %13 {strides = array<i32>} : memref<72x1152xbf16, #tpu.memory_space<vmem>>, vector<72x128xbf16>,
    %c0_22 = arith.constant 0 : index
    %c2_23 = arith.constant 2 : index
    %c1_24 = arith.constant 1 : index
    %c0_25 = arith.constant 0 : index
    %15 = vector.load %arg2[%c0_22, %c2_23, %c1_24, %c0_25] : memref<1x4x90x128xbf16, #tpu.memory_space<vmem>>, vector<1x1x72x128xbf16>
    %16 = vector.shape_cast %15 : vector<1x1x72x128xbf16> to vector<72x128xbf16>
    %c0_26 = arith.constant 0 : index
    %c640 = arith.constant 640 : index
    %17 = vector.load %arg6[%c0_26, %c640] : memref<72x1152xbf16, #tpu.memory_space<vmem>>, vector<72x128xbf16>
    tpu.vector_store %arg6[%c0_26, %c640], %16 {strides = array<i32>} : memref<72x1152xbf16, #tpu.memory_space<vmem>>, vector<72x128xbf16>,
    %c0_27 = arith.constant 0 : index
    %c0_28 = arith.constant 0 : index
    %c9 = arith.constant 9 : index
    %c0_29 = arith.constant 0 : index
    %18 = vector.load %arg2[%c0_27, %c0_28, %c9, %c0_29] : memref<1x4x90x128xbf16, #tpu.memory_space<vmem>>, vector<1x1x72x128xbf16>
    %19 = vector.shape_cast %18 : vector<1x1x72x128xbf16> to vector<72x128xbf16>
    %c0_30 = arith.constant 0 : index
    %c768 = arith.constant 768 : index
    %20 = vector.load %arg6[%c0_30, %c768] : memref<72x1152xbf16, #tpu.memory_space<vmem>>, vector<72x128xbf16>
    tpu.vector_store %arg6[%c0_30, %c768], %19 {strides = array<i32>} : memref<72x1152xbf16, #tpu.memory_space<vmem>>, vector<72x128xbf16>,
    %c0_31 = arith.constant 0 : index
    %c1_32 = arith.constant 1 : index
    %c9_33 = arith.constant 9 : index
    %c0_34 = arith.constant 0 : index
    %21 = vector.load %arg2[%c0_31, %c1_32, %c9_33, %c0_34] : memref<1x4x90x128xbf16, #tpu.memory_space<vmem>>, vector<1x1x72x128xbf16>
    %22 = vector.shape_cast %21 : vector<1x1x72x128xbf16> to vector<72x128xbf16>
    %c0_35 = arith.constant 0 : index
    %c896 = arith.constant 896 : index
    %23 = vector.load %arg6[%c0_35, %c896] : memref<72x1152xbf16, #tpu.memory_space<vmem>>, vector<72x128xbf16>
    tpu.vector_store %arg6[%c0_35, %c896], %22 {strides = array<i32>} : memref<72x1152xbf16, #tpu.memory_space<vmem>>, vector<72x128xbf16>,
    %c0_36 = arith.constant 0 : index
    %c0_37 = arith.constant 0 : index
    %c10 = arith.constant 10 : index
    %c0_38 = arith.constant 0 : index
    %24 = vector.load %arg2[%c0_36, %c0_37, %c10, %c0_38] : memref<1x4x90x128xbf16, #tpu.memory_space<vmem>>, vector<1x1x72x128xbf16>
    %25 = vector.shape_cast %24 : vector<1x1x72x128xbf16> to vector<72x128xbf16>
    %c0_39 = arith.constant 0 : index
    %c1024 = arith.constant 1024 : index
    %26 = vector.load %arg6[%c0_39, %c1024] : memref<72x1152xbf16, #tpu.memory_space<vmem>>, vector<72x128xbf16>
    tpu.vector_store %arg6[%c0_39, %c1024], %25 {strides = array<i32>} : memref<72x1152xbf16, #tpu.memory_space<vmem>>, vector<72x128xbf16>,
    %c0_40 = arith.constant 0 : index
    %c0_41 = arith.constant 0 : index
    %27 = vector.load %arg6[%c0_40, %c0_41] : memref<72x1152xbf16, #tpu.memory_space<vmem>>, vector<72x1152xbf16>
    %c0_42 = arith.constant 0 : index
    %c0_43 = arith.constant 0 : index
    %28 = vector.load %arg3[%c0_42, %c0_43] : memref<1152x128xbf16, #tpu.memory_space<vmem>>, vector<1152x128xbf16>
    %cst = arith.constant dense<0.000000e+00> : vector<72x128xf32>
    %29 = tpu.matmul %27, %28, %cst {dimension_numbers = #tpu.dot_dimension_numbers<[1], [0], [0], [1], [0, 0, 1, 1], [], []>} : vector<72x1152xbf16>, vector<1152x128xbf16>, vector<72x128xf32> -> vector<72x128xf32>
    %c0_44 = arith.constant 0 : index
    %c0_45 = arith.constant 0 : index
    %30 = vector.load %arg4[%c0_44, %c0_45] : memref<1x128xf32, #tpu.memory_space<vmem>>, vector<1x128xf32>
    %31 = vector.broadcast %30 : vector<1x128xf32> to vector<72x128xf32>
    %32 = arith.addf %29, %31 : vector<72x128xf32>
    %cst_46 = arith.constant 0.000000e+00 : f32
    %33 = vector.broadcast %cst_46 : f32 to vector<72x128xf32>
    %34 = arith.maximumf %32, %33 : vector<72x128xf32>
    %35 = arith.truncf %34 : vector<72x128xf32> to vector<72x128xbf16>
    %36 = vector.extract_strided_slice %35 {offsets = [0, 0], sizes = [8, 128], strides = [1, 1]} : vector<72x128xbf16> to vector<8x128xbf16>
    %c0_47 = arith.constant 0 : index
    %c0_48 = arith.constant 0 : index
    %c0_49 = arith.constant 0 : index
    %c0_50 = arith.constant 0 : index
    %37 = vector.load %arg5[%c0_47, %c0_48, %c0_49, %c0_50] : memref<1x8x8x128xbf16, #tpu.memory_space<vmem>>, vector<1x1x8x128xbf16>
    %38 = vector.shape_cast %37 : vector<1x1x8x128xbf16> to vector<8x128xbf16>
    %39 = vector.shape_cast %36 : vector<8x128xbf16> to vector<1x1x8x128xbf16>
    tpu.vector_store %arg5[%c0_47, %c0_48, %c0_49, %c0_50], %39 {strides = array<i32>} : memref<1x8x8x128xbf16, #tpu.memory_space<vmem>>, vector<1x1x8x128xbf16>,
    %40 = vector.extract_strided_slice %35 {offsets = [9, 0], sizes = [8, 128], strides = [1, 1]} : vector<72x128xbf16> to vector<8x128xbf16>
    %c0_51 = arith.constant 0 : index
    %c1_52 = arith.constant 1 : index
    %c0_53 = arith.constant 0 : index
    %c0_54 = arith.constant 0 : index
    %41 = vector.load %arg5[%c0_51, %c1_52, %c0_53, %c0_54] : memref<1x8x8x128xbf16, #tpu.memory_space<vmem>>, vector<1x1x8x128xbf16>
    %42 = vector.shape_cast %41 : vector<1x1x8x128xbf16> to vector<8x128xbf16>
    %43 = vector.shape_cast %40 : vector<8x128xbf16> to vector<1x1x8x128xbf16>
    tpu.vector_store %arg5[%c0_51, %c1_52, %c0_53, %c0_54], %43 {strides = array<i32>} : memref<1x8x8x128xbf16, #tpu.memory_space<vmem>>, vector<1x1x8x128xbf16>,
    %44 = vector.extract_strided_slice %35 {offsets = [18, 0], sizes = [8, 128], strides = [1, 1]} : vector<72x128xbf16> to vector<8x128xbf16>
    %c0_55 = arith.constant 0 : index
    %c2_56 = arith.constant 2 : index
    %c0_57 = arith.constant 0 : index
    %c0_58 = arith.constant 0 : index
    %45 = vector.load %arg5[%c0_55, %c2_56, %c0_57, %c0_58] : memref<1x8x8x128xbf16, #tpu.memory_space<vmem>>, vector<1x1x8x128xbf16>
    %46 = vector.shape_cast %45 : vector<1x1x8x128xbf16> to vector<8x128xbf16>
    %47 = vector.shape_cast %44 : vector<8x128xbf16> to vector<1x1x8x128xbf16>
    tpu.vector_store %arg5[%c0_55, %c2_56, %c0_57, %c0_58], %47 {strides = array<i32>} : memref<1x8x8x128xbf16, #tpu.memory_space<vmem>>, vector<1x1x8x128xbf16>,
    %48 = vector.extract_strided_slice %35 {offsets = [27, 0], sizes = [8, 128], strides = [1, 1]} : vector<72x128xbf16> to vector<8x128xbf16>
    %c0_59 = arith.constant 0 : index
    %c3_60 = arith.constant 3 : index
    %c0_61 = arith.constant 0 : index
    %c0_62 = arith.constant 0 : index
    %49 = vector.load %arg5[%c0_59, %c3_60, %c0_61, %c0_62] : memref<1x8x8x128xbf16, #tpu.memory_space<vmem>>, vector<1x1x8x128xbf16>
    %50 = vector.shape_cast %49 : vector<1x1x8x128xbf16> to vector<8x128xbf16>
    %51 = vector.shape_cast %48 : vector<8x128xbf16> to vector<1x1x8x128xbf16>
    tpu.vector_store %arg5[%c0_59, %c3_60, %c0_61, %c0_62], %51 {strides = array<i32>} : memref<1x8x8x128xbf16, #tpu.memory_space<vmem>>, vector<1x1x8x128xbf16>,
    %52 = vector.extract_strided_slice %35 {offsets = [36, 0], sizes = [8, 128], strides = [1, 1]} : vector<72x128xbf16> to vector<8x128xbf16>
    %c0_63 = arith.constant 0 : index
    %c4 = arith.constant 4 : index
    %c0_64 = arith.constant 0 : index
    %c0_65 = arith.constant 0 : index
    %53 = vector.load %arg5[%c0_63, %c4, %c0_64, %c0_65] : memref<1x8x8x128xbf16, #tpu.memory_space<vmem>>, vector<1x1x8x128xbf16>
    %54 = vector.shape_cast %53 : vector<1x1x8x128xbf16> to vector<8x128xbf16>
    %55 = vector.shape_cast %52 : vector<8x128xbf16> to vector<1x1x8x128xbf16>
    tpu.vector_store %arg5[%c0_63, %c4, %c0_64, %c0_65], %55 {strides = array<i32>} : memref<1x8x8x128xbf16, #tpu.memory_space<vmem>>, vector<1x1x8x128xbf16>,
    %56 = vector.extract_strided_slice %35 {offsets = [45, 0], sizes = [8, 128], strides = [1, 1]} : vector<72x128xbf16> to vector<8x128xbf16>
    %c0_66 = arith.constant 0 : index
    %c5 = arith.constant 5 : index
    %c0_67 = arith.constant 0 : index
    %c0_68 = arith.constant 0 : index
    %57 = vector.load %arg5[%c0_66, %c5, %c0_67, %c0_68] : memref<1x8x8x128xbf16, #tpu.memory_space<vmem>>, vector<1x1x8x128xbf16>
    %58 = vector.shape_cast %57 : vector<1x1x8x128xbf16> to vector<8x128xbf16>
    %59 = vector.shape_cast %56 : vector<8x128xbf16> to vector<1x1x8x128xbf16>
    tpu.vector_store %arg5[%c0_66, %c5, %c0_67, %c0_68], %59 {strides = array<i32>} : memref<1x8x8x128xbf16, #tpu.memory_space<vmem>>, vector<1x1x8x128xbf16>,
    %60 = vector.extract_strided_slice %35 {offsets = [54, 0], sizes = [8, 128], strides = [1, 1]} : vector<72x128xbf16> to vector<8x128xbf16>
    %c0_69 = arith.constant 0 : index
    %c6 = arith.constant 6 : index
    %c0_70 = arith.constant 0 : index
    %c0_71 = arith.constant 0 : index
    %61 = vector.load %arg5[%c0_69, %c6, %c0_70, %c0_71] : memref<1x8x8x128xbf16, #tpu.memory_space<vmem>>, vector<1x1x8x128xbf16>
    %62 = vector.shape_cast %61 : vector<1x1x8x128xbf16> to vector<8x128xbf16>
    %63 = vector.shape_cast %60 : vector<8x128xbf16> to vector<1x1x8x128xbf16>
    tpu.vector_store %arg5[%c0_69, %c6, %c0_70, %c0_71], %63 {strides = array<i32>} : memref<1x8x8x128xbf16, #tpu.memory_space<vmem>>, vector<1x1x8x128xbf16>,
    %64 = vector.extract_strided_slice %35 {offsets = [63, 0], sizes = [8, 128], strides = [1, 1]} : vector<72x128xbf16> to vector<8x128xbf16>
    %c0_72 = arith.constant 0 : index
    %c7 = arith.constant 7 : index
    %c0_73 = arith.constant 0 : index
    %c0_74 = arith.constant 0 : index
    %65 = vector.load %arg5[%c0_72, %c7, %c0_73, %c0_74] : memref<1x8x8x128xbf16, #tpu.memory_space<vmem>>, vector<1x1x8x128xbf16>
    %66 = vector.shape_cast %65 : vector<1x1x8x128xbf16> to vector<8x128xbf16>
    %67 = vector.shape_cast %64 : vector<8x128xbf16> to vector<1x1x8x128xbf16>
    tpu.vector_store %arg5[%c0_72, %c7, %c0_73, %c0_74], %67 {strides = array<i32>} : memref<1x8x8x128xbf16, #tpu.memory_space<vmem>>, vector<1x1x8x128xbf16>,
    return
  }
  func.func @transform_0(%arg0: i32, %arg1: i32) -> (i32, i32, i32, i32) {
    %c0_i32 = arith.constant 0 : i32
    %c0_i32_0 = arith.constant 0 : i32
    %c0_i32_1 = arith.constant 0 : i32
    %c0_i32_2 = arith.constant 0 : i32
    return %arg0, %c0_i32, %c0_i32_0, %c0_i32_1 : i32, i32, i32, i32
  }
  func.func @transform_1(%arg0: i32, %arg1: i32) -> (i32, i32) {
    %c0_i32 = arith.constant 0 : i32
    %c0_i32_0 = arith.constant 0 : i32
    return %c0_i32, %arg1 : i32, i32
  }
  func.func @transform_2(%arg0: i32, %arg1: i32) -> (i32, i32) {
    %c0_i32 = arith.constant 0 : i32
    %c0_i32_0 = arith.constant 0 : i32
    return %c0_i32, %arg1 : i32, i32
  }
  func.func @transform_3(%arg0: i32, %arg1: i32) -> (i32, i32, i32, i32) {
    %c0_i32 = arith.constant 0 : i32
    %c0_i32_0 = arith.constant 0 : i32
    %c0_i32_1 = arith.constant 0 : i32
    return %arg0, %c0_i32, %c0_i32_0, %arg1 : i32, i32, i32, i32
  }
}

module attributes {stable_mosaic.version = 11 : i64} {
  func.func @kernel(%arg0: i32, %arg1: i32, %arg2: memref<128x128xbf16, #tpu.memory_space<vmem>>, %arg3: memref<128x128xbf16, #tpu.memory_space<vmem>>, %arg4: memref<1x128xf32, #tpu.memory_space<vmem>>, %arg5: memref<128x64xbf16, #tpu.memory_space<vmem>>, %arg6: memref<64x128xbf16, #tpu.memory_space<vmem>>, %arg7: memref<128x128xf32, #tpu.memory_space<vmem>>) attributes {dimension_semantics = [#tpu.dimension_semantics<parallel>, #tpu.dimension_semantics<parallel>], iteration_bounds = array<i64: 1, 1>, scalar_prefetch = 0 : i64, scratch_operands = 0 : i64, tpu.core_type = #tpu.core_type<tc>, window_params = [{transform_indices = @transform_0, window_bounds = array<i64: 128, 128>}, {transform_indices = @transform_1, window_bounds = array<i64: 128, 128>}, {transform_indices = @transform_2, window_bounds = array<i64: 1, 128>}, {transform_indices = @transform_3, window_bounds = array<i64: 128, 64>}, {transform_indices = @transform_4, window_bounds = array<i64: 64, 128>}, {transform_indices = @transform_5, window_bounds = array<i64: 128, 128>}]} {
    %c0 = arith.constant 0 : index
    %c0_0 = arith.constant 0 : index
    %0 = vector.load %arg2[%c0, %c0_0] : memref<128x128xbf16, #tpu.memory_space<vmem>>, vector<128x128xbf16>
    %c0_1 = arith.constant 0 : index
    %c0_2 = arith.constant 0 : index
    %1 = vector.load %arg3[%c0_1, %c0_2] : memref<128x128xbf16, #tpu.memory_space<vmem>>, vector<128x128xbf16>
    %cst = arith.constant dense<0.000000e+00> : vector<128x128xf32>
    %2 = tpu.matmul %0, %1, %cst {dimension_numbers = #tpu.dot_dimension_numbers<[1], [0], [0], [1], [0, 0, 1, 1], [], []>} : vector<128x128xbf16>, vector<128x128xbf16>, vector<128x128xf32> -> vector<128x128xf32>
    %c0_3 = arith.constant 0 : index
    %c0_4 = arith.constant 0 : index
    %3 = vector.load %arg5[%c0_3, %c0_4] : memref<128x64xbf16, #tpu.memory_space<vmem>>, vector<128x64xbf16>
    %c0_5 = arith.constant 0 : index
    %c0_6 = arith.constant 0 : index
    %4 = vector.load %arg6[%c0_5, %c0_6] : memref<64x128xbf16, #tpu.memory_space<vmem>>, vector<64x128xbf16>
    %cst_7 = arith.constant dense<0.000000e+00> : vector<128x128xf32>
    %5 = tpu.matmul %3, %4, %cst_7 {dimension_numbers = #tpu.dot_dimension_numbers<[1], [0], [0], [1], [0, 0, 1, 1], [], []>} : vector<128x64xbf16>, vector<64x128xbf16>, vector<128x128xf32> -> vector<128x128xf32>
    %6 = arith.addf %2, %5 : vector<128x128xf32>
    %c0_8 = arith.constant 0 : index
    %c0_9 = arith.constant 0 : index
    %7 = vector.load %arg4[%c0_8, %c0_9] : memref<1x128xf32, #tpu.memory_space<vmem>>, vector<1x128xf32>
    %8 = vector.broadcast %7 : vector<1x128xf32> to vector<128x128xf32>
    %9 = arith.addf %6, %8 : vector<128x128xf32>
    %cst_10 = arith.constant 0.000000e+00 : f32
    %10 = vector.broadcast %cst_10 : f32 to vector<128x128xf32>
    %11 = arith.maximumf %9, %10 : vector<128x128xf32>
    %c0_11 = arith.constant 0 : index
    %c0_12 = arith.constant 0 : index
    %12 = vector.load %arg7[%c0_11, %c0_12] : memref<128x128xf32, #tpu.memory_space<vmem>>, vector<128x128xf32>
    tpu.vector_store %arg7[%c0_11, %c0_12], %11 {strides = array<i32>} : memref<128x128xf32, #tpu.memory_space<vmem>>, vector<128x128xf32>,
    return
  }
  func.func @transform_0(%arg0: i32, %arg1: i32) -> (i32, i32) {
    %c0_i32 = arith.constant 0 : i32
    %c0_i32_0 = arith.constant 0 : i32
    return %arg0, %c0_i32 : i32, i32
  }
  func.func @transform_1(%arg0: i32, %arg1: i32) -> (i32, i32) {
    %c0_i32 = arith.constant 0 : i32
    %c0_i32_0 = arith.constant 0 : i32
    return %c0_i32, %arg1 : i32, i32
  }
  func.func @transform_2(%arg0: i32, %arg1: i32) -> (i32, i32) {
    %c0_i32 = arith.constant 0 : i32
    %c0_i32_0 = arith.constant 0 : i32
    return %c0_i32, %arg1 : i32, i32
  }
  func.func @transform_3(%arg0: i32, %arg1: i32) -> (i32, i32) {
    %c0_i32 = arith.constant 0 : i32
    %c0_i32_0 = arith.constant 0 : i32
    return %arg0, %c0_i32 : i32, i32
  }
  func.func @transform_4(%arg0: i32, %arg1: i32) -> (i32, i32) {
    %c0_i32 = arith.constant 0 : i32
    %c0_i32_0 = arith.constant 0 : i32
    return %c0_i32, %arg1 : i32, i32
  }
  func.func @transform_5(%arg0: i32, %arg1: i32) -> (i32, i32) {
    %c0_i32 = arith.constant 0 : i32
    return %arg0, %arg1 : i32, i32
  }
}

</mosaic_0001>

<bundles_post_ra>
// kernel: bottleneck_forward.3
= control target key start
LH: loop header
LB: loop body
LE: loop exit
PB: predicated region body
PF: predicated region fallthrough
CT: control target
= control target key end

     0   :  { %8 = vsyncpa [#allocation3], 0  ;;  %s1934_s0 = inlined_call_operand.hbm [shape: bf16[512,64], index: 0, kind: input, shape index: {}]   ;;  %s1935_s1 = inlined_call_operand.hbm [shape: bf16[64,128], index: 1, kind: input, shape index: {}]   ;;  %s1936_s2 = inlined_call_operand.hbm [shape: f32[1,128], index: 2, kind: input, shape index: {}]   ;;  %s1937_s3 = inlined_call_operand.hbm [shape: bf16[512,128], index: 3, kind: output, shape index: {}]  }
   0x1   :  { %9 = vsyncpa [#allocation6], 0 }
   0x2   :  { %10 = vsyncpa [#allocation4], 0  ;;  %s1746_s12 = smov [#allocation5]   ;;  %s1747_s14 = smov [#allocation2]  }
   0x3   :  { %s28_s13 = sshll.u32 %s1746_s12, 4  ;;  %s16_s15 = sshll.u32 %s1747_s14, 4  ;;  %s29_s13 = int_to_ptr.vmem [resolvable:$true] %s28_s13  ;;  %s1772_s15 = int_to_ptr.vmem [resolvable:$true] %s16_s15 }
   0x4   :  { %s1652_s18 = scalar_lea.hbm %s1935_s1, 512 }
   0x5   :  { %p1653_p0 = scmp.ne.s32.totalorder %s1935_s1, %s1652_s18  ;;  %p1656_p1 = scmp.lt.u32.totalorder %s1652_s18, %s1935_s1 }
   0x7   :  { %p1658_p2 = pnand %p1656_p1, %p1653_p0 }
   0x9   :  { %1661 = shalt.err (!%p1658_p2)
}
   0xa   :  { %s1662_s23 = scalar_lea.vmem %s29_s13, 512  ;;  %p1667_p4 = scmp.lt.s32.totalorder %s29_s13, %s29_s13 }
   0xb   :  { %p1663_p3 = scmp.ne.s32.totalorder %s29_s13, %s1662_s23  ;;  %p1668_p5 = scmp.lt.s32.totalorder %s1662_s23, %s1662_s23 }
   0xd   :  { %p1669_p6 = por %p1668_p5, %p1667_p4 }
   0xf   :  { %p1670_p7 = pnand %p1669_p6, %p1663_p3 }
  0x11   :  { %1673 = shalt.err (!%p1670_p7)
}
  0x12   :  { %s1748_s24 = smov 64   ;;  %s1749_s25 = smov 4  }
  0x13   :  { %34 = dma.hbm_to_vmem [thread:$0]  %s1935_s1, 512, %s29_s13, [#allocation6], %s1748_s24, %s1748_s24, %s1749_s25  }
  0x14   :  { %s1674_s30 = scalar_lea.hbm %s1934_s0, 4096 }
  0x15   :  { %p1675_p8 = scmp.ne.s32.totalorder %s1934_s0, %s1674_s30  ;;  %p1678_p9 = scmp.lt.u32.totalorder %s1674_s30, %s1934_s0 }
  0x17   :  { %p1680_p10 = pnand %p1678_p9, %p1675_p8 }
  0x19   :  { %1683 = shalt.err (!%p1680_p10)
}
  0x1a   :  { %s1684_s8 = scalar_lea.vmem %s1772_s15, 4096  ;;  %p1689_p12 = scmp.lt.s32.totalorder %s1772_s15, %s1772_s15 }
  0x1b   :  { %p1685_p11 = scmp.ne.s32.totalorder %s1772_s15, %s1684_s8  ;;  %p1690_p13 = scmp.lt.s32.totalorder %s1684_s8, %s1684_s8 }
  0x1d   :  { %p1691_p0 = por %p1690_p13, %p1689_p12 }
  0x1f   :  { %p1692_p1 = pnand %p1691_p0, %p1685_p11 }
  0x21   :  { %1695 = shalt.err (!%p1692_p1)
}
  0x22   :  { %22 = dma.hbm_to_vmem [thread:$0]  %s1934_s0, 4096, %s1772_s15, [#allocation3], %s1748_s24, %s1748_s24, %s1749_s25  }
  0x23   :  { %s1750_s10 = smov [#allocation7]   ;;  %s1696_s14 = scalar_lea.hbm %s1936_s2, 16 }
  0x24   :  { %s41_s11 = sshll.u32 %s1750_s10, 4  ;;  %p1697_p2 = scmp.ne.s32.totalorder %s1936_s2, %s1696_s14  ;;  %s42_s11 = int_to_ptr.vmem [resolvable:$true] %s41_s11 }
  0x25   :  { %p1700_p3 = scmp.lt.u32.totalorder %s1696_s14, %s1936_s2 }
  0x27   :  { %p1702_p4 = pnand %p1700_p3, %p1697_p2 }
  0x29   :  { %1705 = shalt.err (!%p1702_p4)
}
  0x2a   :  { %s1706_s20 = scalar_lea.vmem %s42_s11, 16  ;;  %s1710_s0 = scalar_lea.vmem %s42_s11, 32 }
  0x2b   :  { %p1707_p5 = scmp.ne.s32.totalorder %s42_s11, %s1706_s20  ;;  %p1711_p6 = scmp.lt.s32.totalorder %s42_s11, %s42_s11 }
  0x2c   :  { %p1712_p7 = scmp.lt.s32.totalorder %s1710_s0, %s1706_s20 }
  0x2e   :  { %p1713_p8 = por %p1712_p7, %p1711_p6 }
  0x30   :  { %p1714_p9 = pnand %p1713_p8, %p1707_p5 }
  0x32   :  { %1717 = shalt.err (!%p1714_p9)
}
  0x33   :  { %44 = dma.hbm_to_vmem [thread:$0]  %s1936_s2, 16, %s42_s11, [#allocation6]  }
  0x34   :  { %1740 = dma.done.wait [#allocation3], 4096  }
  0x35   :  { %1741 = vsyncadd [#allocation3], 4294963200 }
  0x36   :  { %1742 = dma.done.wait [#allocation6], 528  }
  0x37   :  { %1743 = vsyncadd [#allocation6], 4294966768  ;;  %v1616_v0 = vld [vmem:[#allocation5] sm:$0xff]   ;;  %v1617_v1 = vld [vmem:[#allocation5 + $0x8] sm:$0xff]   ;;  %vm318_vm0 = vcmask 523264   ;;  %s1751_s2 = smov [#allocation8]  }
  0x38   :  { %1530 = vmatprep.subr.bf16.mxu0 %v1616_v0  ;;  %1602 = vmatprep.subr.bf16.mxu1 %v1616_v0  ;;  %v1618_v2 = vld [vmem:[#allocation5 + $0x10] sm:$0xff]   ;;  %v1620_v3 = vld [vmem:[#allocation2] sm:$0xff]   ;;  %v1619_v5 = vld [vmem:[#allocation5 + $0x18] sm:$0xff]   ;;  %s1093_s22 = sshll.u32 %s1751_s2, 4  ;;  %s1094_s22 = int_to_ptr.vmem [resolvable:$true] %s1093_s22 }
  0x39   :  { %1531 = vmatpush3.bf16.msra.mxu0 %v1616_v0  ;;  %1606 = vmatpush3.bf16.msra.mxu1 %v1616_v0  ;;  %v1621_v4 = vld [vmem:[#allocation2 + $0x80] sm:$0xff]   ;;  %v1622_v6 = vld [vmem:[#allocation2 + $0x8] sm:$0xff]   ;;  %v1624_v8 = vld [vmem:[#allocation2 + $0x10] sm:$0xff]   ;;  %s1718_s23 = scalar_lea.vmem %s1094_s22, 4096  ;;  %p1723_p11 = scmp.lt.s32.totalorder %s1094_s22, %s1094_s22 }
  0x3a   :  { %1532 = vmatprep.subr.bf16.mxu0 %v1617_v1  ;;  %1603 = vmatprep.subr.bf16.mxu1 %v1617_v1  ;;  %v1623_v7 = vld [vmem:[#allocation2 + $0x88] sm:$0xff]   ;;  %v1625_v9 = vld [vmem:[#allocation2 + $0x90] sm:$0xff]   ;;  %v1626_v10 = vld [vmem:[#allocation2 + $0x18] sm:$0xff]   ;;  %p1719_p10 = scmp.ne.s32.totalorder %s1094_s22, %s1718_s23  ;;  %p1724_p12 = scmp.lt.s32.totalorder %s1718_s23, %s1718_s23 }
  0x3b   :  { %1538 = vmatprep.mubr.msk.bf16.mxu0 %vm318_vm0, %v1620_v3  ;;  %1570 = vmatprep.mubr.msk.bf16.mxu1 %vm318_vm0, %v1621_v4  ;;  %v1627_v11 = vld [vmem:[#allocation2 + $0x98] sm:$0xff]   ;;  %v1628_v12 = vld [vmem:[#allocation2 + $0x20] sm:$0xff]   ;;  %v1630_v14 = vld [vmem:[#allocation2 + $0x28] sm:$0xff]  }
  0x3c   :  { %v1629_v13 = vld [vmem:[#allocation2 + $0xa0] sm:$0xff]   ;;  %v1631_v15 = vld [vmem:[#allocation2 + $0xa8] sm:$0xff]   ;;  %v1632_v16 = vld [vmem:[#allocation2 + $0x30] sm:$0xff]   ;;  %p1725_p13 = por %p1724_p12, %p1723_p11 }
  0x3d   :  { %1533 = vmatpush3.bf16.msra.mxu0 %v1617_v1  ;;  %1607 = vmatpush3.bf16.msra.mxu1 %v1617_v1  ;;  %v1633_v17 = vld [vmem:[#allocation2 + $0xb0] sm:$0xff]   ;;  %v1634_v18 = vld [vmem:[#allocation2 + $0x38] sm:$0xff]   ;;  %v1636_v20 = vld [vmem:[#allocation2 + $0x40] sm:$0xff]  }
  0x3e   :  { %1534 = vmatprep.subr.bf16.mxu0 %v1618_v2  ;;  %1604 = vmatprep.subr.bf16.mxu1 %v1618_v2  ;;  %v1635_v19 = vld [vmem:[#allocation2 + $0xb8] sm:$0xff]   ;;  %v1637_v21 = vld [vmem:[#allocation2 + $0xc0] sm:$0xff]   ;;  %v1638_v22 = vld [vmem:[#allocation2 + $0x48] sm:$0xff]   ;;  %p1726_p0 = pnand %p1725_p13, %p1719_p10 }
  0x3f   :  { %v1639_v23 = vld [vmem:[#allocation2 + $0xc8] sm:$0xff]   ;;  %v1640_v24 = vld [vmem:[#allocation2 + $0x50] sm:$0xff]   ;;  %v1642_v26 = vld [vmem:[#allocation2 + $0x58] sm:$0xff]  }
  0x40   :  { %v1641_v25 = vld [vmem:[#allocation2 + $0xd0] sm:$0xff]   ;;  %v1643_v27 = vld [vmem:[#allocation2 + $0xd8] sm:$0xff]   ;;  %v1644_v28 = vld [vmem:[#allocation2 + $0x60] sm:$0xff]  }
  0x41   :  { %1535 = vmatpush3.bf16.msra.mxu0 %v1618_v2  ;;  %1608 = vmatpush3.bf16.msra.mxu1 %v1618_v2  ;;  %v1645_v29 = vld [vmem:[#allocation2 + $0xe0] sm:$0xff]   ;;  %v1646_v30 = vld [vmem:[#allocation2 + $0x68] sm:$0xff]   ;;  %v1648_v32 = vld [vmem:[#allocation2 + $0x70] sm:$0xff]  }
  0x42   :  { %1536 = vmatprep.subr.bf16.mxu0 %v1619_v5  ;;  %1605 = vmatprep.subr.bf16.mxu1 %v1619_v5  ;;  %v1647_v31 = vld [vmem:[#allocation2 + $0xe8] sm:$0xff]   ;;  %v1649_v33 = vld [vmem:[#allocation2 + $0xf0] sm:$0xff]   ;;  %v1650_v34 = vld [vmem:[#allocation2 + $0x78] sm:$0xff]  }
  0x43   :  { %v1651_v35 = vld [vmem:[#allocation2 + $0xf8] sm:$0xff]   ;;  %v1853_v36 = vld [vmem:[#allocation7] ss:$0 sm:$0xff] }
  0x45   :  { %1537 = vmatpush3.bf16.msra.mxu0 %v1619_v5  ;;  %1609 = vmatpush3.bf16.msra.mxu1 %v1619_v5 }
  0x48   :  { %1539 = vmatmul.mubr.msk.bf16.vlgmr.msra.gmra.mrb[0].mxu0 %vm318_vm0, %v1622_v6  ;;  %1571 = vmatmul.mubr.msk.bf16.vlgmr.msra.gmra.mrb[0].mxu1 %vm318_vm0, %v1623_v7 }
  0x49   :  { %1542 = vmatprep.mubr.msk.bf16.mxu0 %vm318_vm0, %v1624_v8  ;;  %1574 = vmatprep.mubr.msk.bf16.mxu1 %vm318_vm0, %v1625_v9 }
  0x50   :  { %1543 = vmatmul.mubr.msk.bf16.gmra.mrb[4].mxu0 %vm318_vm0, %v1626_v10  ;;  %1575 = vmatmul.mubr.msk.bf16.gmra.mrb[4].mxu1 %vm318_vm0, %v1627_v11 }
  0x51   :  { %1546 = vmatprep.mubr.msk.bf16.mxu0 %vm318_vm0, %v1628_v12  ;;  %1578 = vmatprep.mubr.msk.bf16.mxu1 %vm318_vm0, %v1629_v13 }
  0x58   :  { %1547 = vmatmul.mubr.msk.bf16.gmra.mrb[8].mxu0 %vm318_vm0, %v1630_v14  ;;  %1579 = vmatmul.mubr.msk.bf16.gmra.mrb[8].mxu1 %vm318_vm0, %v1631_v15 }
  0x59   :  { %1550 = vmatprep.mubr.msk.bf16.mxu0 %vm318_vm0, %v1632_v16  ;;  %1582 = vmatprep.mubr.msk.bf16.mxu1 %vm318_vm0, %v1633_v17 }
  0x60   :  { %1551 = vmatmul.mubr.msk.bf16.gmra.mrb[12].mxu0 %vm318_vm0, %v1634_v18  ;;  %1583 = vmatmul.mubr.msk.bf16.gmra.mrb[12].mxu1 %vm318_vm0, %v1635_v19 }
  0x61   :  { %1554 = vmatprep.mubr.msk.bf16.mxu0 %vm318_vm0, %v1636_v20  ;;  %1586 = vmatprep.mubr.msk.bf16.mxu1 %vm318_vm0, %v1637_v21 }
  0x68   :  { %1555 = vmatmul.mubr.msk.bf16.gmra.mrb[16].mxu0 %vm318_vm0, %v1638_v22  ;;  %1587 = vmatmul.mubr.msk.bf16.gmra.mrb[16].mxu1 %vm318_vm0, %v1639_v23 }
  0x69   :  { %1558 = vmatprep.mubr.msk.bf16.mxu0 %vm318_vm0, %v1640_v24  ;;  %1590 = vmatprep.mubr.msk.bf16.mxu1 %vm318_vm0, %v1641_v25 }
  0x70   :  { %1559 = vmatmul.mubr.msk.bf16.gmra.mrb[20].mxu0 %vm318_vm0, %v1642_v26  ;;  %1591 = vmatmul.mubr.msk.bf16.gmra.mrb[20].mxu1 %vm318_vm0, %v1643_v27 }
  0x71   :  { %1562 = vmatprep.mubr.msk.bf16.mxu0 %vm318_vm0, %v1644_v28  ;;  %1594 = vmatprep.mubr.msk.bf16.mxu1 %vm318_vm0, %v1645_v29 }
  0x78   :  { %1563 = vmatmul.mubr.msk.bf16.gmra.mrb[24].mxu0 %vm318_vm0, %v1646_v30  ;;  %1595 = vmatmul.mubr.msk.bf16.gmra.mrb[24].mxu1 %vm318_vm0, %v1647_v31 }
  0x79   :  { %1566 = vmatprep.mubr.msk.bf16.mxu0 %vm318_vm0, %v1648_v32  ;;  %1598 = vmatprep.mubr.msk.bf16.mxu1 %vm318_vm0, %v1649_v33 }
  0x80   :  { %1567 = vmatmul.mubr.msk.bf16.gmra.mrb[28].mxu0 %vm318_vm0, %v1650_v34  ;;  %1599 = vmatmul.mubr.msk.bf16.gmra.mrb[28].mxu1 %vm318_vm0, %v1651_v35 }
 0x11b   :  { %v1540_v37 = vpop.f32.mrb[0].mxu0  ;;  %v1572_v38 = vpop.f32.mrb[0].mxu1 }
 0x11c   :  { %v458_v39 = vadd.f32 %v1540_v37, %v1853_v36  ;;  %v586_v40 = vadd.f32 %v1572_v38, %v1853_v36  ;;  %v449_v41 = vpop.f32.mrb[1].mxu0  ;;  %v577_v42 = vpop.f32.mrb[1].mxu1 }
 0x11d   :  { %v450_v43 = vadd.f32 %v1853_v36, %v449_v41  ;;  %v578_v44 = vadd.f32 %v1853_v36, %v577_v42  ;;  %v1541_v45 = vpop.f32.mrb[2].mxu0  ;;  %v1573_v46 = vpop.f32.mrb[2].mxu1 }
 0x11e   :  { %v461_v47 = vadd.f32 %v1541_v45, %v1853_v36  ;;  %v589_v48 = vadd.f32 %v1573_v46, %v1853_v36  ;;  %v452_v49 = vpop.f32.mrb[3].mxu0  ;;  %v580_v50 = vpop.f32.mrb[3].mxu1  ;;  %v706_v53 = vmax.f32 %v458_v39, 0.0  ;;  %v738_v54 = vmax.f32 %v586_v40, 0.0 }
 0x11f   :  { %v453_v51 = vadd.f32 %v1853_v36, %v452_v49  ;;  %v581_v52 = vadd.f32 %v1853_v36, %v580_v50  ;;  %v704_v57 = vmax.f32 %v450_v43, 0.0  ;;  %v736_v58 = vmax.f32 %v578_v44, 0.0 }
 0x120   :  { %v707_v55 = vmax.f32 %v461_v47, 0.0  ;;  %v739_v56 = vmax.f32 %v589_v48, 0.0 }
 0x121   :  { %v705_v59 = vmax.f32 %v453_v51, 0.0  ;;  %v737_v60 = vmax.f32 %v581_v52, 0.0 }
 0x122   :  { %v1311_v61 = vpack.c.bf16 %v707_v55, %v706_v53  ;;  %v1391_v62 = vpack.c.bf16 %v739_v56, %v738_v54 }
 0x123   :  { %v1306_v63 = vpack.c.bf16 %v705_v59, %v704_v57  ;;  %v1386_v0 = vpack.c.bf16 %v737_v60, %v736_v58  ;;  %v1544_v1 = vpop.f32.mrb[4].mxu0  ;;  %v1576_v2 = vpop.f32.mrb[4].mxu1 }
 0x124   :  { %1463 = vst [vmem:[#allocation8 + $0x8] sm:$0xff] %v1311_v61   ;;  %1479 = vst [vmem:[#allocation8 + $0x88] sm:$0xff] %v1391_v62   ;;  %v474_v3 = vadd.f32 %v1544_v1, %v1853_v36  ;;  %v602_v4 = vadd.f32 %v1576_v2, %v1853_v36  ;;  %v465_v5 = vpop.f32.mrb[5].mxu0  ;;  %v593_v6 = vpop.f32.mrb[5].mxu1 }
 0x125   :  { %1307 = vst [vmem:[#allocation8] sm:$0xff] %v1306_v63   ;;  %1478 = vst [vmem:[#allocation8 + $0x80] sm:$0xff] %v1386_v0   ;;  %v466_v7 = vadd.f32 %v1853_v36, %v465_v5  ;;  %v594_v8 = vadd.f32 %v1853_v36, %v593_v6  ;;  %v1545_v9 = vpop.f32.mrb[6].mxu0  ;;  %v1577_v10 = vpop.f32.mrb[6].mxu1 }
 0x126   :  { %v477_v11 = vadd.f32 %v1545_v9, %v1853_v36  ;;  %v605_v12 = vadd.f32 %v1577_v10, %v1853_v36  ;;  %v468_v13 = vpop.f32.mrb[7].mxu0  ;;  %v596_v14 = vpop.f32.mrb[7].mxu1  ;;  %v710_v17 = vmax.f32 %v474_v3, 0.0  ;;  %v742_v18 = vmax.f32 %v602_v4, 0.0 }
 0x127   :  { %v469_v15 = vadd.f32 %v1853_v36, %v468_v13  ;;  %v597_v16 = vadd.f32 %v1853_v36, %v596_v14  ;;  %v708_v21 = vmax.f32 %v466_v7, 0.0  ;;  %v740_v22 = vmax.f32 %v594_v8, 0.0 }
 0x128   :  { %v711_v19 = vmax.f32 %v477_v11, 0.0  ;;  %v743_v20 = vmax.f32 %v605_v12, 0.0 }
 0x129   :  { %v709_v23 = vmax.f32 %v469_v15, 0.0  ;;  %v741_v24 = vmax.f32 %v597_v16, 0.0 }
 0x12a   :  { %v1321_v25 = vpack.c.bf16 %v711_v19, %v710_v17  ;;  %v1401_v26 = vpack.c.bf16 %v743_v20, %v742_v18 }
 0x12b   :  { %v1316_v27 = vpack.c.bf16 %v709_v23, %v708_v21  ;;  %v1396_v28 = vpack.c.bf16 %v741_v24, %v740_v22  ;;  %v1548_v29 = vpop.f32.mrb[8].mxu0  ;;  %v1580_v30 = vpop.f32.mrb[8].mxu1 }
 0x12c   :  { %1465 = vst [vmem:[#allocation8 + $0x18] sm:$0xff] %v1321_v25   ;;  %1481 = vst [vmem:[#allocation8 + $0x98] sm:$0xff] %v1401_v26   ;;  %v490_v31 = vadd.f32 %v1548_v29, %v1853_v36  ;;  %v618_v32 = vadd.f32 %v1580_v30, %v1853_v36  ;;  %v481_v33 = vpop.f32.mrb[9].mxu0  ;;  %v609_v34 = vpop.f32.mrb[9].mxu1 }
 0x12d   :  { %1464 = vst [vmem:[#allocation8 + $0x10] sm:$0xff] %v1316_v27   ;;  %1480 = vst [vmem:[#allocation8 + $0x90] sm:$0xff] %v1396_v28   ;;  %v482_v35 = vadd.f32 %v1853_v36, %v481_v33  ;;  %v610_v37 = vadd.f32 %v1853_v36, %v609_v34  ;;  %v1549_v38 = vpop.f32.mrb[10].mxu0  ;;  %v1581_v39 = vpop.f32.mrb[10].mxu1 }
 0x12e   :  { %v493_v40 = vadd.f32 %v1549_v38, %v1853_v36  ;;  %v621_v41 = vadd.f32 %v1581_v39, %v1853_v36  ;;  %v484_v42 = vpop.f32.mrb[11].mxu0  ;;  %v612_v43 = vpop.f32.mrb[11].mxu1  ;;  %v714_v46 = vmax.f32 %v490_v31, 0.0  ;;  %v746_v47 = vmax.f32 %v618_v32, 0.0 }
 0x12f   :  { %v485_v44 = vadd.f32 %v1853_v36, %v484_v42  ;;  %v613_v45 = vadd.f32 %v1853_v36, %v612_v43  ;;  %v712_v50 = vmax.f32 %v482_v35, 0.0  ;;  %v744_v51 = vmax.f32 %v610_v37, 0.0 }
 0x130   :  { %v715_v48 = vmax.f32 %v493_v40, 0.0  ;;  %v747_v49 = vmax.f32 %v621_v41, 0.0 }
 0x131   :  { %v713_v52 = vmax.f32 %v485_v44, 0.0  ;;  %v745_v53 = vmax.f32 %v613_v45, 0.0 }
 0x132   :  { %v1331_v54 = vpack.c.bf16 %v715_v48, %v714_v46  ;;  %v1411_v55 = vpack.c.bf16 %v747_v49, %v746_v47 }
 0x133   :  { %v1326_v56 = vpack.c.bf16 %v713_v52, %v712_v50  ;;  %v1406_v57 = vpack.c.bf16 %v745_v53, %v744_v51  ;;  %v1552_v58 = vpop.f32.mrb[12].mxu0  ;;  %v1584_v59 = vpop.f32.mrb[12].mxu1 }
 0x134   :  { %1467 = vst [vmem:[#allocation8 + $0x28] sm:$0xff] %v1331_v54   ;;  %1483 = vst [vmem:[#allocation8 + $0xa8] sm:$0xff] %v1411_v55   ;;  %v506_v60 = vadd.f32 %v1552_v58, %v1853_v36  ;;  %v634_v61 = vadd.f32 %v1584_v59, %v1853_v36  ;;  %v497_v62 = vpop.f32.mrb[13].mxu0  ;;  %v625_v63 = vpop.f32.mrb[13].mxu1 }
 0x135   :  { %1466 = vst [vmem:[#allocation8 + $0x20] sm:$0xff] %v1326_v56   ;;  %1482 = vst [vmem:[#allocation8 + $0xa0] sm:$0xff] %v1406_v57   ;;  %v498_v0 = vadd.f32 %v1853_v36, %v497_v62  ;;  %v626_v1 = vadd.f32 %v1853_v36, %v625_v63  ;;  %v1553_v2 = vpop.f32.mrb[14].mxu0  ;;  %v1585_v3 = vpop.f32.mrb[14].mxu1 }
 0x136   :  { %v509_v4 = vadd.f32 %v1553_v2, %v1853_v36  ;;  %v637_v5 = vadd.f32 %v1585_v3, %v1853_v36  ;;  %v500_v6 = vpop.f32.mrb[15].mxu0  ;;  %v628_v7 = vpop.f32.mrb[15].mxu1  ;;  %v718_v10 = vmax.f32 %v506_v60, 0.0  ;;  %v750_v11 = vmax.f32 %v634_v61, 0.0 }
 0x137   :  { %v501_v8 = vadd.f32 %v1853_v36, %v500_v6  ;;  %v629_v9 = vadd.f32 %v1853_v36, %v628_v7  ;;  %v716_v14 = vmax.f32 %v498_v0, 0.0  ;;  %v748_v15 = vmax.f32 %v626_v1, 0.0 }
 0x138   :  { %v719_v12 = vmax.f32 %v509_v4, 0.0  ;;  %v751_v13 = vmax.f32 %v637_v5, 0.0 }
 0x139   :  { %v717_v16 = vmax.f32 %v501_v8, 0.0  ;;  %v749_v17 = vmax.f32 %v629_v9, 0.0 }
 0x13a   :  { %v1341_v18 = vpack.c.bf16 %v719_v12, %v718_v10  ;;  %v1421_v19 = vpack.c.bf16 %v751_v13, %v750_v11 }
 0x13b   :  { %v1336_v20 = vpack.c.bf16 %v717_v16, %v716_v14  ;;  %v1416_v21 = vpack.c.bf16 %v749_v17, %v748_v15  ;;  %v1556_v22 = vpop.f32.mrb[16].mxu0  ;;  %v1588_v23 = vpop.f32.mrb[16].mxu1 }
 0x13c   :  { %1469 = vst [vmem:[#allocation8 + $0x38] sm:$0xff] %v1341_v18   ;;  %1485 = vst [vmem:[#allocation8 + $0xb8] sm:$0xff] %v1421_v19   ;;  %v522_v24 = vadd.f32 %v1556_v22, %v1853_v36  ;;  %v650_v25 = vadd.f32 %v1588_v23, %v1853_v36  ;;  %v513_v26 = vpop.f32.mrb[17].mxu0  ;;  %v641_v27 = vpop.f32.mrb[17].mxu1 }
 0x13d   :  { %1468 = vst [vmem:[#allocation8 + $0x30] sm:$0xff] %v1336_v20   ;;  %1484 = vst [vmem:[#allocation8 + $0xb0] sm:$0xff] %v1416_v21   ;;  %v514_v28 = vadd.f32 %v1853_v36, %v513_v26  ;;  %v642_v29 = vadd.f32 %v1853_v36, %v641_v27  ;;  %v1557_v30 = vpop.f32.mrb[18].mxu0  ;;  %v1589_v31 = vpop.f32.mrb[18].mxu1 }
 0x13e   :  { %v525_v32 = vadd.f32 %v1557_v30, %v1853_v36  ;;  %v653_v33 = vadd.f32 %v1589_v31, %v1853_v36  ;;  %v516_v34 = vpop.f32.mrb[19].mxu0  ;;  %v644_v35 = vpop.f32.mrb[19].mxu1  ;;  %v722_v39 = vmax.f32 %v522_v24, 0.0  ;;  %v754_v40 = vmax.f32 %v650_v25, 0.0 }
 0x13f   :  { %v517_v37 = vadd.f32 %v1853_v36, %v516_v34  ;;  %v645_v38 = vadd.f32 %v1853_v36, %v644_v35  ;;  %v720_v43 = vmax.f32 %v514_v28, 0.0  ;;  %v752_v44 = vmax.f32 %v642_v29, 0.0 }
 0x140   :  { %v723_v41 = vmax.f32 %v525_v32, 0.0  ;;  %v755_v42 = vmax.f32 %v653_v33, 0.0 }
 0x141   :  { %v721_v45 = vmax.f32 %v517_v37, 0.0  ;;  %v753_v46 = vmax.f32 %v645_v38, 0.0 }
 0x142   :  { %v1351_v47 = vpack.c.bf16 %v723_v41, %v722_v39  ;;  %v1431_v48 = vpack.c.bf16 %v755_v42, %v754_v40 }
 0x143   :  { %v1346_v49 = vpack.c.bf16 %v721_v45, %v720_v43  ;;  %v1426_v50 = vpack.c.bf16 %v753_v46, %v752_v44  ;;  %v1560_v51 = vpop.f32.mrb[20].mxu0  ;;  %v1592_v52 = vpop.f32.mrb[20].mxu1 }
 0x144   :  { %1471 = vst [vmem:[#allocation8 + $0x48] sm:$0xff] %v1351_v47   ;;  %1487 = vst [vmem:[#allocation8 + $0xc8] sm:$0xff] %v1431_v48   ;;  %v538_v53 = vadd.f32 %v1560_v51, %v1853_v36  ;;  %v666_v54 = vadd.f32 %v1592_v52, %v1853_v36  ;;  %v529_v55 = vpop.f32.mrb[21].mxu0  ;;  %v657_v56 = vpop.f32.mrb[21].mxu1 }
 0x145   :  { %1470 = vst [vmem:[#allocation8 + $0x40] sm:$0xff] %v1346_v49   ;;  %1486 = vst [vmem:[#allocation8 + $0xc0] sm:$0xff] %v1426_v50   ;;  %v530_v57 = vadd.f32 %v1853_v36, %v529_v55  ;;  %v658_v58 = vadd.f32 %v1853_v36, %v657_v56  ;;  %v1561_v59 = vpop.f32.mrb[22].mxu0  ;;  %v1593_v60 = vpop.f32.mrb[22].mxu1 }
 0x146   :  { %v541_v61 = vadd.f32 %v1561_v59, %v1853_v36  ;;  %v669_v62 = vadd.f32 %v1593_v60, %v1853_v36  ;;  %v532_v63 = vpop.f32.mrb[23].mxu0  ;;  %v660_v0 = vpop.f32.mrb[23].mxu1  ;;  %v726_v3 = vmax.f32 %v538_v53, 0.0  ;;  %v758_v4 = vmax.f32 %v666_v54, 0.0 }
 0x147   :  { %v533_v1 = vadd.f32 %v1853_v36, %v532_v63  ;;  %v661_v2 = vadd.f32 %v1853_v36, %v660_v0  ;;  %v724_v7 = vmax.f32 %v530_v57, 0.0  ;;  %v756_v8 = vmax.f32 %v658_v58, 0.0 }
 0x148   :  { %v727_v5 = vmax.f32 %v541_v61, 0.0  ;;  %v759_v6 = vmax.f32 %v669_v62, 0.0 }
 0x149   :  { %v725_v9 = vmax.f32 %v533_v1, 0.0  ;;  %v757_v10 = vmax.f32 %v661_v2, 0.0 }
 0x14a   :  { %v1361_v11 = vpack.c.bf16 %v727_v5, %v726_v3  ;;  %v1441_v12 = vpack.c.bf16 %v759_v6, %v758_v4 }
 0x14b   :  { %v1356_v13 = vpack.c.bf16 %v725_v9, %v724_v7  ;;  %v1436_v14 = vpack.c.bf16 %v757_v10, %v756_v8  ;;  %v1564_v15 = vpop.f32.mrb[24].mxu0  ;;  %v1596_v16 = vpop.f32.mrb[24].mxu1 }
 0x14c   :  { %1473 = vst [vmem:[#allocation8 + $0x58] sm:$0xff] %v1361_v11   ;;  %1489 = vst [vmem:[#allocation8 + $0xd8] sm:$0xff] %v1441_v12   ;;  %v554_v17 = vadd.f32 %v1564_v15, %v1853_v36  ;;  %v682_v18 = vadd.f32 %v1596_v16, %v1853_v36  ;;  %v545_v19 = vpop.f32.mrb[25].mxu0  ;;  %v673_v20 = vpop.f32.mrb[25].mxu1 }
 0x14d   :  { %1472 = vst [vmem:[#allocation8 + $0x50] sm:$0xff] %v1356_v13   ;;  %1488 = vst [vmem:[#allocation8 + $0xd0] sm:$0xff] %v1436_v14   ;;  %v546_v21 = vadd.f32 %v1853_v36, %v545_v19  ;;  %v674_v22 = vadd.f32 %v1853_v36, %v673_v20  ;;  %v1565_v23 = vpop.f32.mrb[26].mxu0  ;;  %v1597_v24 = vpop.f32.mrb[26].mxu1 }
 0x14e   :  { %v557_v25 = vadd.f32 %v1565_v23, %v1853_v36  ;;  %v685_v26 = vadd.f32 %v1597_v24, %v1853_v36  ;;  %v548_v27 = vpop.f32.mrb[27].mxu0  ;;  %v676_v28 = vpop.f32.mrb[27].mxu1  ;;  %v730_v31 = vmax.f32 %v554_v17, 0.0  ;;  %v762_v32 = vmax.f32 %v682_v18, 0.0 }
 0x14f   :  { %v549_v29 = vadd.f32 %v1853_v36, %v548_v27  ;;  %v677_v30 = vadd.f32 %v1853_v36, %v676_v28  ;;  %v728_v35 = vmax.f32 %v546_v21, 0.0  ;;  %v760_v37 = vmax.f32 %v674_v22, 0.0 }
 0x150   :  { %v731_v33 = vmax.f32 %v557_v25, 0.0  ;;  %v763_v34 = vmax.f32 %v685_v26, 0.0 }
 0x151   :  { %v729_v38 = vmax.f32 %v549_v29, 0.0  ;;  %v761_v39 = vmax.f32 %v677_v30, 0.0 }
 0x152   :  { %v1371_v40 = vpack.c.bf16 %v731_v33, %v730_v31  ;;  %v1451_v41 = vpack.c.bf16 %v763_v34, %v762_v32 }
 0x153   :  { %v1366_v42 = vpack.c.bf16 %v729_v38, %v728_v35  ;;  %v1446_v43 = vpack.c.bf16 %v761_v39, %v760_v37  ;;  %v1568_v44 = vpop.f32.mrb[28].mxu0  ;;  %v1600_v45 = vpop.f32.mrb[28].mxu1 }
 0x154   :  { %1475 = vst [vmem:[#allocation8 + $0x68] sm:$0xff] %v1371_v40   ;;  %1491 = vst [vmem:[#allocation8 + $0xe8] sm:$0xff] %v1451_v41   ;;  %v570_v46 = vadd.f32 %v1568_v44, %v1853_v36  ;;  %v698_v47 = vadd.f32 %v1600_v45, %v1853_v36  ;;  %v561_v48 = vpop.f32.mrb[29].mxu0  ;;  %v689_v49 = vpop.f32.mrb[29].mxu1 }
 0x155   :  { %1474 = vst [vmem:[#allocation8 + $0x60] sm:$0xff] %v1366_v42   ;;  %1490 = vst [vmem:[#allocation8 + $0xe0] sm:$0xff] %v1446_v43   ;;  %v562_v50 = vadd.f32 %v1853_v36, %v561_v48  ;;  %v690_v51 = vadd.f32 %v1853_v36, %v689_v49  ;;  %v1569_v52 = vpop.f32.mrb[30].mxu0  ;;  %v1601_v53 = vpop.f32.mrb[30].mxu1 }
 0x156   :  { %v573_v54 = vadd.f32 %v1569_v52, %v1853_v36  ;;  %v701_v55 = vadd.f32 %v1601_v53, %v1853_v36  ;;  %v564_v56 = vpop.f32.mrb[31].mxu0  ;;  %v692_v57 = vpop.f32.mrb[31].mxu1  ;;  %v734_v60 = vmax.f32 %v570_v46, 0.0  ;;  %v766_v61 = vmax.f32 %v698_v47, 0.0 }
 0x157   :  { %v565_v58 = vadd.f32 %v1853_v36, %v564_v56  ;;  %v693_v59 = vadd.f32 %v1853_v36, %v692_v57  ;;  %v732_v0 = vmax.f32 %v562_v50, 0.0  ;;  %v764_v1 = vmax.f32 %v690_v51, 0.0 }
 0x158   :  { %v735_v62 = vmax.f32 %v573_v54, 0.0  ;;  %v767_v63 = vmax.f32 %v701_v55, 0.0 }
 0x159   :  { %v733_v2 = vmax.f32 %v565_v58, 0.0  ;;  %v765_v3 = vmax.f32 %v693_v59, 0.0 }
 0x15a   :  { %v1381_v4 = vpack.c.bf16 %v735_v62, %v734_v60  ;;  %v1461_v5 = vpack.c.bf16 %v767_v63, %v766_v61 }
 0x15b   :  { %v1376_v6 = vpack.c.bf16 %v733_v2, %v732_v0  ;;  %v1456_v7 = vpack.c.bf16 %v765_v3, %v764_v1 }
 0x15c   :  { %1477 = vst [vmem:[#allocation8 + $0x78] sm:$0xff] %v1381_v4   ;;  %1493 = vst [vmem:[#allocation8 + $0xf8] sm:$0xff] %v1461_v5  }
 0x15d   :  { %1476 = vst [vmem:[#allocation8 + $0x70] sm:$0xff] %v1376_v6   ;;  %1492 = vst [vmem:[#allocation8 + $0xf0] sm:$0xff] %v1456_v7  }
 0x15e   :  { %1729 = shalt.err (!%p1726_p0)
}
 0x15f   :  { %s1730_s28 = scalar_lea.hbm %s1937_s3, 4096 }
 0x160   :  { %p1731_p1 = scmp.ne.s32.totalorder %s1937_s3, %s1730_s28  ;;  %p1734_p2 = scmp.lt.u32.totalorder %s1730_s28, %s1937_s3 }
 0x162   :  { %p1736_p3 = pnand %p1734_p2, %p1731_p1 }
 0x164   :  { %1739 = shalt.err (!%p1736_p3)
}
 0x165   :  { %1099 = dma.vmem_to_hbm [thread:$0]  %s1094_s22, 4096, %s1937_s3, [#allocation4], %s1748_s24, %s1748_s24, %s1749_s25  }
 0x166   :  { %1744 = dma.done.wait [#allocation4], 4096  }
 0x167   :  { %1745 = vsyncadd [#allocation4], 4294963200 }
 0x168   :  { %1103 = vsyncpa [#allocation3], 1 }
 0x169   :  { %1104 = vsyncpa [#allocation6], 1 }
 0x16a   :  { %1105 = vsyncpa [#allocation4], 1 }

// kernel: bottleneck_forward.5
= control target key start
LH: loop header
LB: loop body
LE: loop exit
PB: predicated region body
PF: predicated region fallthrough
CT: control target
= control target key end

     0   :  { %10 = vsyncpa [#allocation3], 0  ;;  %s1085_s0 = inlined_call_operand.hbm [shape: bf16[128,128], index: 0, kind: input, shape index: {}]   ;;  %s1086_s1 = inlined_call_operand.hbm [shape: bf16[128,128], index: 1, kind: input, shape index: {}]   ;;  %s1087_s2 = inlined_call_operand.hbm [shape: f32[1,128], index: 2, kind: input, shape index: {}]   ;;  %s1088_s3 = inlined_call_operand.hbm [shape: bf16[128,64], index: 3, kind: input, shape index: {}]   ;;  %s1089_s4 = inlined_call_operand.hbm [shape: bf16[64,128], index: 4, kind: input, shape index: {}]   ;;  %s1090_s5 = inlined_call_operand.hbm [shape: f32[128,128], index: 5, kind: output, shape index: {}]  }
   0x1   :  { %11 = vsyncpa [#allocation6], 0 }
   0x2   :  { %12 = vsyncpa [#allocation9], 0 }
   0x3   :  { %13 = vsyncpa [#allocation4], 0  ;;  %s928_s18 = smov [#allocation5]   ;;  %s929_s20 = smov [#allocation8]  }
   0x4   :  { %s31_s19 = sshll.u32 %s928_s18, 4  ;;  %s53_s21 = sshll.u32 %s929_s20, 4  ;;  %s32_s19 = int_to_ptr.vmem [resolvable:$true] %s31_s19  ;;  %s968_s21 = int_to_ptr.vmem [resolvable:$true] %s53_s21 }
   0x5   :  { %s788_s24 = scalar_lea.hbm %s1086_s1, 1024 }
   0x6   :  { %p789_p0 = scmp.ne.s32.totalorder %s1086_s1, %s788_s24  ;;  %p792_p1 = scmp.lt.u32.totalorder %s788_s24, %s1086_s1 }
   0x8   :  { %p794_p2 = pnand %p792_p1, %p789_p0 }
   0xa   :  { %797 = shalt.err (!%p794_p2)
}
   0xb   :  { %s798_s29 = scalar_lea.vmem %s32_s19, 1024  ;;  %p803_p4 = scmp.lt.s32.totalorder %s32_s19, %s32_s19 }
   0xc   :  { %p799_p3 = scmp.ne.s32.totalorder %s32_s19, %s798_s29  ;;  %p804_p5 = scmp.lt.s32.totalorder %s798_s29, %s798_s29 }
   0xe   :  { %p805_p6 = por %p804_p5, %p803_p4 }
  0x10   :  { %p806_p7 = pnand %p805_p6, %p799_p3 }
  0x12   :  { %809 = shalt.err (!%p806_p7)
}
  0x13   :  { %s930_s30 = smov 64   ;;  %s931_s6 = smov 4  }
  0x14   :  { %37 = dma.hbm_to_vmem [thread:$0]  %s1086_s1, 1024, %s32_s19, [#allocation6], %s930_s30, %s930_s30, %s931_s6  }
  0x15   :  { %s810_s11 = scalar_lea.hbm %s1088_s3, 1024 }
  0x16   :  { %p811_p8 = scmp.ne.s32.totalorder %s1088_s3, %s810_s11  ;;  %p814_p9 = scmp.lt.u32.totalorder %s810_s11, %s1088_s3 }
  0x18   :  { %p816_p10 = pnand %p814_p9, %p811_p8 }
  0x1a   :  { %819 = shalt.err (!%p816_p10)
}
  0x1b   :  { %s820_s16 = scalar_lea.vmem %s968_s21, 1024  ;;  %p825_p12 = scmp.lt.s32.totalorder %s968_s21, %s968_s21 }
  0x1c   :  { %p821_p11 = scmp.ne.s32.totalorder %s968_s21, %s820_s16  ;;  %p826_p13 = scmp.lt.s32.totalorder %s820_s16, %s820_s16 }
  0x1e   :  { %p827_p0 = por %p826_p13, %p825_p12 }
  0x20   :  { %p828_p1 = pnand %p827_p0, %p821_p11 }
  0x22   :  { %831 = shalt.err (!%p828_p1)
}
  0x23   :  { %59 = dma.hbm_to_vmem [thread:$0]  %s1088_s3, 1024, %s968_s21, [#allocation9], %s930_s30, %s930_s30, %s931_s6  }
  0x24   :  { %s932_s18 = smov [#allocation2]   ;;  %s933_s20 = smov [#allocation7]  }
  0x25   :  { %s19_s19 = sshll.u32 %s932_s18, 4  ;;  %s44_s22 = sshll.u32 %s933_s20, 4  ;;  %s20_s19 = int_to_ptr.vmem [resolvable:$true] %s19_s19  ;;  %s45_s22 = int_to_ptr.vmem [resolvable:$true] %s44_s22 }
  0x26   :  { %s832_s25 = scalar_lea.hbm %s1085_s0, 1024 }
  0x27   :  { %p833_p2 = scmp.ne.s32.totalorder %s1085_s0, %s832_s25  ;;  %p836_p3 = scmp.lt.u32.totalorder %s832_s25, %s1085_s0 }
  0x29   :  { %p838_p4 = pnand %p836_p3, %p833_p2 }
  0x2b   :  { %841 = shalt.err (!%p838_p4)
}
  0x2c   :  { %s842_s3 = scalar_lea.vmem %s20_s19, 1024  ;;  %p847_p6 = scmp.lt.s32.totalorder %s20_s19, %s20_s19 }
  0x2d   :  { %p843_p5 = scmp.ne.s32.totalorder %s20_s19, %s842_s3  ;;  %p848_p7 = scmp.lt.s32.totalorder %s842_s3, %s842_s3 }
  0x2f   :  { %p849_p8 = por %p848_p7, %p847_p6 }
  0x31   :  { %p850_p9 = pnand %p849_p8, %p843_p5 }
  0x33   :  { %853 = shalt.err (!%p850_p9)
}
  0x34   :  { %25 = dma.hbm_to_vmem [thread:$0]  %s1085_s0, 1024, %s20_s19, [#allocation3], %s930_s30, %s930_s30, %s931_s6  }
  0x35   :  { %s854_s10 = scalar_lea.hbm %s1087_s2, 16 }
  0x36   :  { %p855_p10 = scmp.ne.s32.totalorder %s1087_s2, %s854_s10  ;;  %p858_p11 = scmp.lt.u32.totalorder %s854_s10, %s1087_s2 }
  0x38   :  { %p860_p12 = pnand %p858_p11, %p855_p10 }
  0x3a   :  { %863 = shalt.err (!%p860_p12)
}
  0x3b   :  { %s864_s15 = scalar_lea.vmem %s45_s22, 16  ;;  %s868_s16 = scalar_lea.vmem %s45_s22, 32 }
  0x3c   :  { %p865_p13 = scmp.ne.s32.totalorder %s45_s22, %s864_s15  ;;  %p869_p0 = scmp.lt.s32.totalorder %s45_s22, %s45_s22 }
  0x3d   :  { %p870_p1 = scmp.lt.s32.totalorder %s868_s16, %s864_s15 }
  0x3f   :  { %p871_p2 = por %p870_p1, %p869_p0 }
  0x41   :  { %p872_p3 = pnand %p871_p2, %p865_p13 }
  0x43   :  { %875 = shalt.err (!%p872_p3)
}
  0x44   :  { %47 = dma.hbm_to_vmem [thread:$0]  %s1087_s2, 16, %s45_s22, [#allocation6]  }
  0x45   :  { %s934_s17 = smov [#allocation10]   ;;  %s876_s23 = scalar_lea.hbm %s1089_s4, 512 }
  0x46   :  { %s65_s18 = sshll.u32 %s934_s17, 4  ;;  %p877_p4 = scmp.ne.s32.totalorder %s1089_s4, %s876_s23  ;;  %s66_s18 = int_to_ptr.vmem [resolvable:$true] %s65_s18 }
  0x47   :  { %p880_p5 = scmp.lt.u32.totalorder %s876_s23, %s1089_s4 }
  0x49   :  { %p882_p6 = pnand %p880_p5, %p877_p4 }
  0x4b   :  { %885 = shalt.err (!%p882_p6)
}
  0x4c   :  { %s886_s28 = scalar_lea.vmem %s66_s18, 512  ;;  %p891_p8 = scmp.lt.s32.totalorder %s66_s18, %s66_s18 }
  0x4d   :  { %p887_p7 = scmp.ne.s32.totalorder %s66_s18, %s886_s28  ;;  %p892_p9 = scmp.lt.s32.totalorder %s886_s28, %s886_s28 }
  0x4f   :  { %p893_p10 = por %p892_p9, %p891_p8 }
  0x51   :  { %p894_p11 = pnand %p893_p10, %p887_p7 }
  0x53   :  { %897 = shalt.err (!%p894_p11)
}
  0x54   :  { %71 = dma.hbm_to_vmem [thread:$0]  %s1089_s4, 512, %s66_s18, [#allocation9], %s930_s30, %s930_s30, %s931_s6  }
  0x55   :  { %920 = dma.done.wait [#allocation3], 1024  }
  0x56   :  { %921 = vsyncadd [#allocation3], 4294966272 }
  0x57   :  { %922 = dma.done.wait [#allocation6], 1040  }
  0x58   :  { %923 = vsyncadd [#allocation6], 4294966256 }
  0x59   :  { %924 = dma.done.wait [#allocation9], 1536  }
  0x5a   :  { %925 = vsyncadd [#allocation9], 4294965760  ;;  %v760_v0 = vld [vmem:[#allocation10] sm:$0xff]   ;;  %v762_v2 = vld [vmem:[#allocation10 + $0x8] sm:$0xff]   ;;  %vm208_vm0 = vcmask 523264   ;;  %s935_s4 = smov [#allocation11]  }
  0x5b   :  { %v761_v1 = vld [vmem:[#allocation5] sm:$0xff]   ;;  %662 = vmatprep.subr.bf16.mxu0 %v760_v0  ;;  %v763_v3 = vld [vmem:[#allocation5 + $0x8] sm:$0xff]   ;;  %v764_v4 = vld [vmem:[#allocation10 + $0x10] sm:$0xff]   ;;  %s583_s30 = sshll.u32 %s935_s4, 4  ;;  %s584_s30 = int_to_ptr.vmem [resolvable:$true] %s583_s30 }
  0x5c   :  { %718 = vmatprep.subr.bf16.mxu1 %v761_v1  ;;  %663 = vmatpush3.bf16.msra.mxu0 %v760_v0  ;;  %v765_v5 = vld [vmem:[#allocation5 + $0x10] sm:$0xff]   ;;  %v766_v6 = vld [vmem:[#allocation10 + $0x18] sm:$0xff]   ;;  %v768_v7 = vld [vmem:[#allocation8] sm:$0xff]   ;;  %s898_s6 = scalar_lea.vmem %s584_s30, 2048  ;;  %p903_p13 = scmp.lt.s32.totalorder %s584_s30, %s584_s30 }
  0x5d   :  { %726 = vmatpush3.bf16.msra.mxu1 %v761_v1  ;;  %664 = vmatprep.subr.bf16.mxu0 %v762_v2  ;;  %v767_v8 = vld [vmem:[#allocation5 + $0x18] sm:$0xff]   ;;  %v770_v9 = vld [vmem:[#allocation5 + $0x20] sm:$0xff]   ;;  %v769_v10 = vld [vmem:[#allocation8 + $0x8] sm:$0xff]   ;;  %p899_p12 = scmp.ne.s32.totalorder %s584_s30, %s898_s6  ;;  %p904_p0 = scmp.lt.s32.totalorder %s898_s6, %s898_s6 }
  0x5e   :  { %719 = vmatprep.subr.bf16.mxu1 %v763_v3  ;;  %670 = vmatprep.mubr.msk.bf16.mxu0 %vm208_vm0, %v768_v7  ;;  %v772_v11 = vld [vmem:[#allocation8 + $0x10] sm:$0xff]   ;;  %v771_v12 = vld [vmem:[#allocation5 + $0x28] sm:$0xff]   ;;  %v773_v15 = vld [vmem:[#allocation8 + $0x18] sm:$0xff]  }
  0x5f   :  { %v777_v13 = vld [vmem:[#allocation2 + $0x10] sm:$0xff]   ;;  %v776_v16 = vld [vmem:[#allocation8 + $0x20] sm:$0xff]   ;;  %v775_v17 = vld [vmem:[#allocation5 + $0x38] sm:$0xff]   ;;  %p905_p1 = por %p904_p0, %p903_p13 }
  0x60   :  { %665 = vmatpush3.bf16.msra.mxu0 %v762_v2  ;;  %v774_v14 = vld [vmem:[#allocation5 + $0x30] sm:$0xff]   ;;  %706 = vmatprep.mubr.bf16.mxu1 %v777_v13  ;;  %v779_v19 = vld [vmem:[#allocation2 + $0x18] sm:$0xff]   ;;  %v781_v21 = vld [vmem:[#allocation2 + $0x20] sm:$0xff]  }
  0x61   :  { %727 = vmatpush3.bf16.msra.mxu1 %v763_v3  ;;  %666 = vmatprep.subr.bf16.mxu0 %v764_v4  ;;  %v778_v18 = vld [vmem:[#allocation8 + $0x28] sm:$0xff]   ;;  %v780_v20 = vld [vmem:[#allocation8 + $0x30] sm:$0xff]   ;;  %v782_v22 = vld [vmem:[#allocation8 + $0x38] sm:$0xff]   ;;  %p906_p2 = pnand %p905_p1, %p899_p12 }
  0x62   :  { %720 = vmatprep.subr.bf16.mxu1 %v765_v5  ;;  %v783_v23 = vld [vmem:[#allocation2 + $0x28] sm:$0xff]   ;;  %v784_v24 = vld [vmem:[#allocation2] sm:$0xff]   ;;  %v785_v25 = vld [vmem:[#allocation2 + $0x30] sm:$0xff]  }
  0x63   :  { %v786_v26 = vld [vmem:[#allocation2 + $0x8] sm:$0xff]   ;;  %v787_v27 = vld [vmem:[#allocation2 + $0x38] sm:$0xff]   ;;  %v1055_v34 = vld [vmem:[#allocation7] ss:$0 sm:$0xff] }
  0x64   :  { %667 = vmatpush3.bf16.msra.mxu0 %v764_v4 }
  0x65   :  { %728 = vmatpush3.bf16.msra.mxu1 %v765_v5  ;;  %668 = vmatprep.subr.bf16.mxu0 %v766_v6 }
  0x66   :  { %721 = vmatprep.subr.bf16.mxu1 %v767_v8 }
  0x68   :  { %669 = vmatpush3.bf16.msra.mxu0 %v766_v6 }
  0x69   :  { %729 = vmatpush3.bf16.msra.mxu1 %v767_v8  ;;  %686 = vmatprep.subr.bf16.mxu0 %v761_v1 }
  0x6a   :  { %722 = vmatprep.subr.bf16.mxu1 %v770_v9 }
  0x6b   :  { %671 = vmatmul.mubr.msk.bf16.vlgmr.msra.gmra.mrb[0].mxu0 %vm208_vm0, %v769_v10 }
  0x6c   :  { %687 = vmatpush3.bf16.msra.mxu0 %v761_v1  ;;  %674 = vmatprep.mubr.msk.bf16.mxu0 %vm208_vm0, %v772_v11 }
  0x6d   :  { %730 = vmatpush3.bf16.msra.mxu1 %v770_v9  ;;  %688 = vmatprep.subr.bf16.mxu0 %v763_v3 }
  0x6e   :  { %723 = vmatprep.subr.bf16.mxu1 %v771_v12 }
  0x70   :  { %689 = vmatpush3.bf16.msra.mxu0 %v763_v3 }
  0x71   :  { %731 = vmatpush3.bf16.msra.mxu1 %v771_v12  ;;  %690 = vmatprep.subr.bf16.mxu0 %v765_v5 }
  0x72   :  { %724 = vmatprep.subr.bf16.mxu1 %v774_v14 }
  0x73   :  { %675 = vmatmul.mubr.msk.bf16.gmra.mrb[4].mxu0 %vm208_vm0, %v773_v15 }
  0x74   :  { %691 = vmatpush3.bf16.msra.mxu0 %v765_v5  ;;  %678 = vmatprep.mubr.msk.bf16.mxu0 %vm208_vm0, %v776_v16 }
  0x75   :  { %732 = vmatpush3.bf16.msra.mxu1 %v774_v14  ;;  %692 = vmatprep.subr.bf16.mxu0 %v767_v8 }
  0x76   :  { %725 = vmatprep.subr.bf16.mxu1 %v775_v17 }
  0x78   :  { %693 = vmatpush3.bf16.msra.mxu0 %v767_v8 }
  0x79   :  { %733 = vmatpush3.bf16.msra.mxu1 %v775_v17  ;;  %694 = vmatprep.subr.bf16.mxu0 %v770_v9 }
  0x7b   :  { %679 = vmatmul.mubr.msk.bf16.gmra.mrb[8].mxu0 %vm208_vm0, %v778_v18 }
  0x7c   :  { %707 = vmatmul.mubr.bf16.vlgmr.msra.gmra.mrb[0].mxu1 %v779_v19  ;;  %695 = vmatpush3.bf16.msra.mxu0 %v770_v9 }
  0x7d   :  { %696 = vmatprep.subr.bf16.mxu0 %v771_v12  ;;  %682 = vmatprep.mubr.msk.bf16.mxu0 %vm208_vm0, %v780_v20 }
  0x7e   :  { %710 = vmatprep.mubr.bf16.mxu1 %v781_v21 }
  0x80   :  { %697 = vmatpush3.bf16.msra.mxu0 %v771_v12 }
  0x81   :  { %698 = vmatprep.subr.bf16.mxu0 %v774_v14 }
  0x83   :  { %683 = vmatmul.mubr.msk.bf16.gmra.mrb[12].mxu0 %vm208_vm0, %v782_v22 }
  0x84   :  { %711 = vmatmul.mubr.bf16.gmra.mrb[4].mxu1 %v783_v23  ;;  %699 = vmatpush3.bf16.msra.mxu0 %v774_v14 }
  0x85   :  { %700 = vmatprep.subr.bf16.mxu0 %v775_v17  ;;  %702 = vmatprep.mubr.bf16.mxu0 %v784_v24 }
  0x86   :  { %714 = vmatprep.mubr.bf16.mxu1 %v785_v25 }
  0x88   :  { %701 = vmatpush3.bf16.msra.mxu0 %v775_v17 }
  0x8b   :  { %703 = vmatmul.mubr.bf16.vlgmr.msra.gmra.mrb[0].mxu0 %v786_v26 }
  0x8c   :  { %715 = vmatmul.mubr.bf16.gmra.mrb[8].mxu1 %v787_v27 }
 0x146   :  { %v676_v28 = vpop.f32.mrb[4].mxu0 }
 0x147   :  { %v283_v29 = vpop.f32.mrb[5].mxu0 }
 0x148   :  { %v677_v30 = vpop.f32.mrb[6].mxu0 }
 0x149   :  { %v286_v31 = vpop.f32.mrb[7].mxu0 }
 0x14e   :  { %v680_v32 = vpop.f32.mrb[8].mxu0 }
 0x14f   :  { %v708_v33 = vpop.f32.mrb[0].mxu1  ;;  %v299_v35 = vpop.f32.mrb[9].mxu0 }
 0x150   :  { %v485_v36 = vadd.f32 %v708_v33, %v676_v28  ;;  %v476_v37 = vpop.f32.mrb[1].mxu1  ;;  %v681_v38 = vpop.f32.mrb[10].mxu0 }
 0x151   :  { %v477_v39 = vadd.f32 %v476_v37, %v283_v29  ;;  %v709_v40 = vpop.f32.mrb[2].mxu1  ;;  %v302_v41 = vpop.f32.mrb[11].mxu0 }
 0x152   :  { %v536_v42 = vadd.f32 %v1055_v34, %v485_v36  ;;  %v488_v43 = vadd.f32 %v709_v40, %v677_v30  ;;  %v479_v44 = vpop.f32.mrb[3].mxu1 }
 0x153   :  { %v534_v45 = vadd.f32 %v1055_v34, %v477_v39  ;;  %v480_v46 = vadd.f32 %v479_v44, %v286_v31 }
 0x154   :  { %v552_v47 = vmax.f32 %v536_v42, 0.0  ;;  %v537_v48 = vadd.f32 %v1055_v34, %v488_v43 }
 0x155   :  { %v550_v49 = vmax.f32 %v534_v45, 0.0  ;;  %v535_v50 = vadd.f32 %v1055_v34, %v480_v46 }
 0x156   :  { %568 = vst [vmem:[#allocation11 + $0x30] sm:$0xff] %v552_v47  ;;  %v553_v51 = vmax.f32 %v537_v48, 0.0  ;;  %v684_v52 = vpop.f32.mrb[12].mxu0 }
 0x157   :  { %566 = vst [vmem:[#allocation11 + $0x20] sm:$0xff] %v550_v49  ;;  %v551_v53 = vmax.f32 %v535_v50, 0.0  ;;  %v712_v54 = vpop.f32.mrb[4].mxu1  ;;  %v315_v55 = vpop.f32.mrb[13].mxu0 }
 0x158   :  { %569 = vst [vmem:[#allocation11 + $0x38] sm:$0xff] %v553_v51  ;;  %v501_v56 = vadd.f32 %v712_v54, %v680_v32  ;;  %v492_v57 = vpop.f32.mrb[5].mxu1  ;;  %v685_v58 = vpop.f32.mrb[14].mxu0 }
 0x159   :  { %567 = vst [vmem:[#allocation11 + $0x28] sm:$0xff] %v551_v53  ;;  %v493_v59 = vadd.f32 %v492_v57, %v299_v35  ;;  %v713_v60 = vpop.f32.mrb[6].mxu1  ;;  %v318_v61 = vpop.f32.mrb[15].mxu0 }
 0x15a   :  { %v540_v62 = vadd.f32 %v1055_v34, %v501_v56  ;;  %v504_v63 = vadd.f32 %v713_v60, %v681_v38  ;;  %v495_v0 = vpop.f32.mrb[7].mxu1 }
 0x15b   :  { %v538_v1 = vadd.f32 %v1055_v34, %v493_v59  ;;  %v496_v2 = vadd.f32 %v495_v0, %v302_v41 }
 0x15c   :  { %v556_v3 = vmax.f32 %v540_v62, 0.0  ;;  %v541_v4 = vadd.f32 %v1055_v34, %v504_v63 }
 0x15d   :  { %v554_v5 = vmax.f32 %v538_v1, 0.0  ;;  %v539_v6 = vadd.f32 %v1055_v34, %v496_v2 }
 0x15e   :  { %572 = vst [vmem:[#allocation11 + $0x50] sm:$0xff] %v556_v3  ;;  %v557_v7 = vmax.f32 %v541_v4, 0.0  ;;  %v704_v8 = vpop.f32.mrb[0].mxu0 }
 0x15f   :  { %570 = vst [vmem:[#allocation11 + $0x40] sm:$0xff] %v554_v5  ;;  %v555_v9 = vmax.f32 %v539_v6, 0.0  ;;  %v532_v10 = vadd.f32 %v704_v8, %v1055_v34  ;;  %v716_v11 = vpop.f32.mrb[8].mxu1  ;;  %v460_v12 = vpop.f32.mrb[1].mxu0 }
 0x160   :  { %573 = vst [vmem:[#allocation11 + $0x58] sm:$0xff] %v557_v7  ;;  %v517_v13 = vadd.f32 %v716_v11, %v684_v52  ;;  %v530_v14 = vadd.f32 %v1055_v34, %v460_v12  ;;  %v508_v15 = vpop.f32.mrb[9].mxu1  ;;  %v705_v16 = vpop.f32.mrb[2].mxu0 }
 0x161   :  { %571 = vst [vmem:[#allocation11 + $0x48] sm:$0xff] %v555_v9  ;;  %v548_v17 = vmax.f32 %v532_v10, 0.0  ;;  %v509_v18 = vadd.f32 %v508_v15, %v315_v55  ;;  %v533_v19 = vadd.f32 %v705_v16, %v1055_v34  ;;  %v717_v20 = vpop.f32.mrb[10].mxu1  ;;  %v463_v21 = vpop.f32.mrb[3].mxu0 }
 0x162   :  { %v544_v22 = vadd.f32 %v1055_v34, %v517_v13  ;;  %v546_v23 = vmax.f32 %v530_v14, 0.0  ;;  %v520_v24 = vadd.f32 %v717_v20, %v685_v58  ;;  %v531_v25 = vadd.f32 %v1055_v34, %v463_v21  ;;  %v511_v26 = vpop.f32.mrb[11].mxu1 }
 0x163   :  { %564 = vst [vmem:[#allocation11 + $0x10] sm:$0xff] %v548_v17  ;;  %v542_v27 = vadd.f32 %v1055_v34, %v509_v18  ;;  %v549_v28 = vmax.f32 %v533_v19, 0.0  ;;  %v512_v29 = vadd.f32 %v511_v26, %v318_v61 }
 0x164   :  { %v560_v30 = vmax.f32 %v544_v22, 0.0  ;;  %562 = vst [vmem:[#allocation11] sm:$0xff] %v546_v23  ;;  %v545_v31 = vadd.f32 %v1055_v34, %v520_v24  ;;  %v547_v32 = vmax.f32 %v531_v25, 0.0 }
 0x165   :  { %v558_v33 = vmax.f32 %v542_v27, 0.0  ;;  %565 = vst [vmem:[#allocation11 + $0x18] sm:$0xff] %v549_v28  ;;  %v543_v35 = vadd.f32 %v1055_v34, %v512_v29 }
 0x166   :  { %576 = vst [vmem:[#allocation11 + $0x70] sm:$0xff] %v560_v30  ;;  %v561_v36 = vmax.f32 %v545_v31, 0.0  ;;  %563 = vst [vmem:[#allocation11 + $0x8] sm:$0xff] %v547_v32 }
 0x167   :  { %574 = vst [vmem:[#allocation11 + $0x60] sm:$0xff] %v558_v33  ;;  %v559_v37 = vmax.f32 %v543_v35, 0.0 }
 0x168   :  { %577 = vst [vmem:[#allocation11 + $0x78] sm:$0xff] %v561_v36 }
 0x169   :  { %575 = vst [vmem:[#allocation11 + $0x68] sm:$0xff] %v559_v37 }
 0x16a   :  { %909 = shalt.err (!%p906_p2)
}
 0x16b   :  { %s910_s21 = scalar_lea.hbm %s1090_s5, 2048 }
 0x16c   :  { %p911_p3 = scmp.ne.s32.totalorder %s1090_s5, %s910_s21  ;;  %p914_p4 = scmp.lt.u32.totalorder %s910_s21, %s1090_s5 }
 0x16e   :  { %p916_p5 = pnand %p914_p4, %p911_p3 }
 0x170   :  { %919 = shalt.err (!%p916_p5)
}
 0x171   :  { %s936_s11 = smov 128   ;;  %s937_s12 = smov 8  }
 0x172   :  { %589 = dma.vmem_to_hbm [thread:$0]  %s584_s30, 2048, %s1090_s5, [#allocation4], %s936_s11, %s936_s11, %s937_s12  }
 0x173   :  { %926 = dma.done.wait [#allocation4], 2048  }
 0x174   :  { %927 = vsyncadd [#allocation4], 4294965248 }
 0x175   :  { %593 = vsyncpa [#allocation3], 1 }
 0x176   :  { %594 = vsyncpa [#allocation6], 1 }
 0x177   :  { %595 = vsyncpa [#allocation9], 1 }
 0x178   :  { %596 = vsyncpa [#allocation4], 1 }

// kernel: bottleneck_forward.4
= control target key start
LH: loop header
LB: loop body
LE: loop exit
PB: predicated region body
PF: predicated region fallthrough
CT: control target
= control target key end

     0   :  { %8 = vsyncpa [#allocation4], 0  ;;  %s3921_s0 = inlined_call_operand.hbm [shape: bf16[2,4,90,128], index: 0, kind: input, shape index: {}]   ;;  %s3922_s1 = inlined_call_operand.hbm [shape: bf16[1152,128], index: 1, kind: input, shape index: {}]   ;;  %s3923_s2 = inlined_call_operand.hbm [shape: f32[1,128], index: 2, kind: input, shape index: {}]   ;;  %s3924_s3 = inlined_call_operand.hbm [shape: bf16[2,8,8,128], index: 3, kind: output, shape index: {}]  }
   0x1   :  { %10 = vsyncpa [#allocation4 + $0x1], 0 }
   0x2   :  { %11 = vsyncpa [#allocation7], 0 }
   0x3   :  { %12 = vsyncpa [#allocation5], 0 }
   0x4   :  { %14 = vsyncpa [#allocation5 + $0x1], 0  ;;  %s3234_s12 = smov 0   ;;  %s3236_s13 = smov 0  }
   0x5   :  { %s3238_s14 = smov 0   ;;  %s3240_s15 = smov 0  }
   0x6   :  { %s3242_s16 = smov 0   ;;  %s3244_s17 = smov 0  }
   0x7 LB: > { %s2352_s18 = sadd.s32 4294967295, %s3202_s17   ;;  %s2353_s19 = sadd.s32 4294967294, %s3202_s17   ;;  %s3202_s17 = sphi %s3244_s17, %s20_s17   ;;  %s3198_s16 = sphi %s3242_s16, %s3954_s16   ;;  %s3194_s15 = sphi %s3240_s15, %s3953_s15   ;;  %s3190_s14 = sphi %s3238_s14, %s3952_s14   ;;  %s3186_s13 = sphi %s3236_s13, %s3951_s13   ;;  %s3182_s12 = sphi %s3234_s12, %s3950_s12  }
   0x8   : > { %p52_p0 = scmp.ne.s32.totalorder %s3186_s13, %s3182_s12  ;;  %p3268_p1 = scmp.eq.s32.totalorder %s2352_s18, 0 }
   0x9   : > { %p3272_p2 = scmp.eq.s32.totalorder %s2352_s18, 1  ;;  %p136_p3 = scmp.eq.s32.totalorder %s2353_s19, 1 }
   0xa   : > { %s3929_s20 = scalar_select %p3268_p1, 1, 0 }
   0xb   : > { %p3278_p4 = por %p3268_p1, %p52_p0  ;;  %p2354_p5 = scmp.ge.s32.totalorder %s3202_s17, 1 }
   0xc   : > { %p3283_p6 = por %p136_p3, %p52_p0  ;;  %p143_p7 = scmp.lt.s32.totalorder %s3202_s17, 3 }
   0xd   : > { %s3931_s22 = scalar_select %p3278_p4, 1, 0 }
   0xe   : > { %s3932_s23 = scalar_select %p3283_p6, 1, 0 }
   0xf   : > { %p3288_p8 = pnand %p2354_p5, %p143_p7  ;;  %s3204_s25 = smov [#allocation6]  }
  0x10   : > { %s157_s26 = sshll.u32 %s3204_s25, 4  ;;  %s3205_s28 = smov [#allocation8]   ;;  %s3292_s26 = int_to_ptr.vmem [resolvable:$true] %s157_s26 }
  0x11   : > { %p2826_p9 = pneg %p3288_p8  ;;  %s173_s29 = sshll.u32 %s3205_s28, 4  ;;  %s3303_s29 = int_to_ptr.vmem [resolvable:$true] %s173_s29 }
  0x12   : > { %s3030_s5 = scalar_lea.hbm %s3922_s1, 9216 }
  0x13   : > { %p3299_p11 = pnand %p2826_p9, %p3268_p1  ;;  %p3031_p12 = scmp.ne.s32.totalorder %s3922_s1, %s3030_s5 }
  0x14   : > { %p3037_p5 = scmp.lt.u32.totalorder %s3030_s5, %s3922_s1 }
  0x15   : > { %p3032_p13 = pneg %p3299_p11 }
  0x17   : > { %p3033_p0 = pnand %p3032_p13, %p3031_p12 }
  0x19   : > { %p3034_p3 = pneg %p3033_p0 }
  0x1b   : > { %p3039_p7 = pnand %p3037_p5, %p3034_p3 }
  0x1d   : > { %3042 = shalt.err (!%p3039_p7)
}
  0x1e   : > { %s3043_s10 = scalar_lea.vmem %s3292_s26, 9216  ;;  %p3051_p1 = scmp.lt.s32.totalorder %s3292_s26, %s3292_s26 }
  0x1f   : > { %p3044_p9 = scmp.ne.s32.totalorder %s3292_s26, %s3043_s10  ;;  %p3052_p12 = scmp.lt.s32.totalorder %s3043_s10, %s3043_s10 }
  0x21   : > { %p3046_p10 = pnand %p3044_p9, %p3032_p13  ;;  %p3053_p0 = por %p3052_p12, %p3051_p1 }
  0x23   : > { %p3047_p6 = pneg %p3046_p10 }
  0x25   : > { %p3054_p4 = pnand %p3053_p0, %p3047_p6 }
  0x27   : > { %3057 = shalt.err (!%p3054_p4)
}
  0x28   : > { %s3206_s11 = smov 64   ;;  %s3207_s18 = smov 4  }
  0x29   : > { %2829 = dma.hbm_to_vmem [thread:$0]  (!%p3299_p11), %s3922_s1, 9216, %s3292_s26, [#allocation7], %s3206_s11, %s3206_s11, %s3207_s18  }
  0x2a   : > { %s3058_s4 = scalar_lea.hbm %s3923_s2, 16 }
  0x2b   : > { %p3059_p1 = scmp.ne.s32.totalorder %s3923_s2, %s3058_s4  ;;  %p3065_p10 = scmp.lt.u32.totalorder %s3058_s4, %s3923_s2 }
  0x2d   : > { %p3061_p4 = pnand %p3059_p1, %p3032_p13 }
  0x2f   : > { %p3062_p6 = pneg %p3061_p4 }
  0x31   : > { %p3067_p3 = pnand %p3065_p10, %p3062_p6 }
  0x33   : > { %3070 = shalt.err (!%p3067_p3)
}
  0x34   : > { %s3071_s26 = scalar_lea.vmem %s3303_s29, 16  ;;  %s3078_s9 = scalar_lea.vmem %s3303_s29, 32 }
  0x35   : > { %p3072_p5 = scmp.ne.s32.totalorder %s3303_s29, %s3071_s26  ;;  %p3079_p12 = scmp.lt.s32.totalorder %s3303_s29, %s3303_s29 }
  0x36   : > { %p3080_p0 = scmp.lt.s32.totalorder %s3078_s9, %s3071_s26 }
  0x37   : > { %p3074_p7 = pnand %p3072_p5, %p3032_p13 }
  0x38   : > { %p3081_p1 = por %p3080_p0, %p3079_p12 }
  0x39   : > { %p3075_p9 = pneg %p3074_p7 }
  0x3b   : > { %p3082_p4 = pnand %p3081_p1, %p3075_p9 }
  0x3d   : > { %3085 = shalt.err (!%p3082_p4)
}
  0x3e   : > { %2832 = dma.hbm_to_vmem [thread:$0]  (!%p3299_p11), %s3923_s2, 16, %s3303_s29, [#allocation7]  }
  0x3f   : > { %s32_s25 = sadd.s32 1, %s3198_s16  ;;  %s39_s28 = sadd.s32 1, %s3190_s14 }
  0x40   : > { %p34_p13 = scmp.ge.s32.totalorder %s32_s25, 2  ;;  %p46_p6 = scmp.ne.s32.totalorder %s3190_s14, %s3186_s13 }
  0x41   : > { %p47_p10 = scmp.eq.s32.totalorder %s3202_s17, 0  ;;  %p2843_p3 = scmp.lt.s32.totalorder %s3202_s17, 2 }
  0x42   : > { %s3956_s25 = smov (%p34_p13, %s32_s25), 0  ;;  %p3371_p7 = por %p3272_p2, %p46_p6 }
  0x43   : > { %p48_p5 = por %p47_p10, %p46_p6  ;;  %s36_s30 = ssub.s32 %s3198_s16, %s3956_s25 }
  0x44   : > { %s3935_s27 = scalar_select %p3371_p7, 1, 0 }
  0x45   : > { %s184_s4 = sand.u32 1, %s3190_s14   ;;  %p37_p9 = scmp.eq.s32.totalorder %s36_s30, 0 }
  0x46   : > { %s2811_s29 = smul.u32 192, %s184_s4  ;;  %p3378_p11 = pnand %p2843_p3, %p48_p5 }
  0x47   : > { %s3383_s6 = scalar_select %p37_p9, %s3190_s14, %s39_s28  }
  0x48   : > { %s2812_s7 = smul.u32 3072, %s3198_s16  ;;  %s188_s8 = scalar_lea.vmem [#allocation3], %s2811_s29 }
  0x49   : > { %s195_s26 = sshll.u32 %s188_s8, 4  ;;  %s3393_s19 = scalar_lea.sflag [#allocation4], %s184_s4  ;;  %s3391_s26 = int_to_ptr.vmem [resolvable:$true] %s195_s26 }
  0x4a   : > { %s3389_s10 = scalar_lea.hbm %s3921_s0, %s2812_s7  ;;  %p3088_p12 = pneg %p3378_p11 }
  0x4b   : > { %s3086_s30 = scalar_lea.hbm %s3389_s10, 3072  ;;  %s3091_s7 = scalar_lea.hbm %s3921_s0, 6144 }
  0x4c   : > { %p3087_p2 = scmp.ne.s32.totalorder %s3389_s10, %s3086_s30  ;;  %p3092_p4 = scmp.lt.u32.totalorder %s3389_s10, %s3921_s0 }
  0x4d   : > { %p3093_p13 = scmp.lt.u32.totalorder %s3091_s7, %s3086_s30  ;;  %p3095_p10 = scmp.lt.u32.totalorder %s3086_s30, %s3389_s10 }
  0x4e   : > { %p3089_p0 = pnand %p3088_p12, %p3087_p2 }
  0x4f   : > { %p3094_p6 = por %p3093_p13, %p3092_p4 }
  0x50   : > { %p3090_p1 = pneg %p3089_p0 }
  0x51   : > { %p3096_p3 = por %p3095_p10, %p3094_p6 }
  0x53   : > { %p3097_p5 = pnand %p3096_p3, %p3090_p1 }
  0x55   : > { %3100 = shalt.err (!%p3097_p5)
}
  0x56   : > { %s3101_s4 = scalar_lea.vmem %s3391_s26, 3072  ;;  %s3208_s9 = smov [#allocation3]  }
  0x57   : > { %p3102_p9 = scmp.ne.s32.totalorder %s3391_s26, %s3101_s4  ;;  %s3106_s28 = sshll.u32 %s3208_s9, 4  ;;  %s3107_s28 = int_to_ptr.vmem [resolvable:$false] %s3106_s28 }
  0x58   : > { %s3108_s29 = scalar_lea.vmem %s3107_s28, 6144  ;;  %p3109_p7 = scmp.lt.s32.totalorder %s3391_s26, %s3107_s28 }
  0x59   : > { %p3104_p2 = pnand %p3102_p9, %p3088_p12  ;;  %p3110_p4 = scmp.lt.s32.totalorder %s3108_s29, %s3101_s4 }
  0x5b   : > { %p3105_p0 = pneg %p3104_p2  ;;  %p3111_p13 = por %p3110_p4, %p3109_p7 }
  0x5d   : > { %p3112_p6 = pnand %p3111_p13, %p3105_p0 }
  0x5f   : > { %3115 = shalt.err (!%p3112_p6)
}
  0x60   : > { %2836 = dma.hbm_to_vmem [thread:$0]  (!%p3378_p11), %s3389_s10, 3072, %s3391_s26, %s3393_s19, %s3206_s11, %s3206_s11, %s3207_s18  }
  0x61   : > { %207 = sbr.rel (%p3288_p8) target bundleno = 502 (0x1f6), region = 32  ;;  %s3427_s30 = sand.u32 (!%p3288_p8), 1, %s3186_s13  }
  0x62   : > { %s2813_s7 = smul.u32 (!%p3288_p8), 192, %s3427_s30  ;;  %s210_s8 = scalar_lea.sflag (!%p3288_p8), [#allocation4], %s3427_s30 }
  0x63   : > { %p3937_p7 = scmp.ne.s32.totalorder (!%p3288_p8), %s3931_s22, 0 }
  0x64   : > { %s3431_s21 = scalar_lea.vmem (!%p3288_p8), [#allocation3], %s2813_s7 }
  0x68   : > { %3169 = dma.done.wait (%p3937_p7), %s210_s8, 3072  }
  0x69   : > { %3171 = vsyncadd (%p3937_p7), %s210_s8, 4294964224  ;;  %p3938_p11 = scmp.ne.s32.totalorder %s3929_s20, 0 }
  0x6b   : > { %3173 = dma.done.wait (%p3938_p11), [#allocation7], 9232  }
  0x6c   : > { %3175 = vsyncadd (%p3938_p11), [#allocation7], 4294958064  ;;  %v2903_v0 = vld [vmem:[#allocation6 + $0x40] sm:$0xff]   ;;  %v2907_v4 = vld [vmem:[#allocation6 + $0x48] sm:$0xff]   ;;  %vm292_vm0 = vsmask.f32 3328 }
  0x6d   : > { %v2904_v1 = vld [vmem:[#allocation6 + $0xc0] sm:$0xff]   ;;  %2562 = vmatprep.subr.bf16.mxu0 %v2903_v0  ;;  %v2908_v5 = vld [vmem:[#allocation6 + $0xc8] sm:$0xff]   ;;  %v2911_v8 = vld [vmem:[#allocation6 + $0x50] sm:$0xff]   ;;  %vm293_vm1 = vsmask.f32 7440  ;;  %vm831_vm3 = vcmask 1042432  }
  0x6e   : > { %v2905_v2 = vld [vmem:[#allocation6] sm:$0xff]   ;;  %2608 = vmatprep.subr.bf16.mxu1 %v2904_v1  ;;  %v2909_v6 = vld [vmem:[#allocation6 + $0x8] sm:$0xff]   ;;  %v2912_v9 = vld [vmem:[#allocation6 + $0xd0] sm:$0xff]   ;;  %vm832_vm4 = vcmask 1046532   ;;  %vm3210_vm6 = vmmov 0   ;;  %s2362_s20 = sshll.u32 %s3427_s30, 5 }
  0x6f   : > { %v2906_v3 = vld [vmem:[#allocation6 + $0x80] sm:$0xff]   ;;  %2563 = vmatpush3.bf16.msra.mxu0 %v2905_v2  ;;  %v2910_v7 = vld [vmem:[#allocation6 + $0x88] sm:$0xff]   ;;  %v2913_v10 = vld [vmem:[#allocation6 + $0x10] sm:$0xff]   ;;  %s3825_s22 = scalar_lea.vmem [#allocation9], %s2362_s20  ;;  %vm2199_vm7 = vcmask 1040384   ;;  %vm2200_vm8 = vcmask 1044484  }
  0x70   : > { %2609 = vmatpush3.bf16.msra.mxu1 %v2906_v3  ;;  %2564 = vmatprep.subr.bf16.mxu0 %v2907_v4  ;;  %v2914_v11 = vld [vmem:[#allocation6 + $0x90] sm:$0xff]   ;;  %v2915_v12 = vld [vmem:[#allocation6 + $0x58] sm:$0xff]   ;;  %v2919_v16 = vld [vmem:[#allocation6 + $0x60] sm:$0xff]   ;;  %vm2212_vm10 = vsmask.f32 256  ;;  %vm2160_vm14 = vcmask 1041408  }
  0x71   : > { %2610 = vmatprep.subr.bf16.mxu1 %v2908_v5  ;;  %v2916_v13 = vld [vmem:[#allocation6 + $0xd8] sm:$0xff]   ;;  %v2920_v17 = vld [vmem:[#allocation6 + $0xe0] sm:$0xff]   ;;  %v2923_v20 = vld [vmem:[#allocation6 + $0x68] sm:$0xff]   ;;  %vm2213_vm11 = vsmask.f32 4368  ;;  %vm2161_vm15 = vcmask 1045508  }
  0x72   : > { %v2917_v14 = vld [vmem:[#allocation6 + $0x18] sm:$0xff]   ;;  %v2921_v18 = vld [vmem:[#allocation6 + $0x20] sm:$0xff]   ;;  %v2924_v21 = vld [vmem:[#allocation6 + $0xe8] sm:$0xff]   ;;  %vm2134_vm12 = vsmask.f32 2304  ;;  %s2246_s24 = sshll.u32 %s3825_s22, 4  ;;  %s3865_s24 = int_to_ptr.vmem [resolvable:$true] %s2246_s24 }
  0x73   : > { %2565 = vmatpush3.bf16.msra.mxu0 %v2909_v6  ;;  %v2918_v15 = vld [vmem:[#allocation6 + $0x98] sm:$0xff]   ;;  %v2922_v19 = vld [vmem:[#allocation6 + $0xa0] sm:$0xff]   ;;  %v2925_v22 = vld [vmem:[#allocation6 + $0x28] sm:$0xff]   ;;  %vm2135_vm13 = vsmask.f32 6416  ;;  %s2561_s11 = sshll.u32 %s3194_s15, 9 }
  0x74   : > { %2611 = vmatpush3.bf16.msra.mxu1 %v2910_v7  ;;  %2566 = vmatprep.subr.bf16.mxu0 %v2911_v8  ;;  %v2926_v23 = vld [vmem:[#allocation6 + $0xa8] sm:$0xff]   ;;  %v2927_v24 = vld [vmem:[#allocation6 + $0x70] sm:$0xff]   ;;  %v2931_v28 = vld [vmem:[#allocation6 + $0x78] sm:$0xff]   ;;  %s3871_s26 = scalar_lea.hbm %s3924_s3, %s2561_s11  ;;  %s2232_s10 = scalar_lea.sflag [#allocation5], %s3427_s30 }
  0x75   : > { %2612 = vmatprep.subr.bf16.mxu1 %v2912_v9  ;;  %v2928_v25 = vld [vmem:[#allocation6 + $0xf0] sm:$0xff]   ;;  %v2932_v29 = vld [vmem:[#allocation6 + $0xf8] sm:$0xff]   ;;  %v245_v32 = vld [vmem:[%s3431_s21] sm:$0xf]  ;;  %s3116_s15 = scalar_lea.vmem %s3865_s24, 512  ;;  %p3947_p12 = scmp.ne.s32.totalorder %s3935_s27, 0 }
  0x76   : > { %v2929_v26 = vld [vmem:[#allocation6 + $0x30] sm:$0xff]   ;;  %v2933_v30 = vld [vmem:[#allocation6 + $0x38] sm:$0xff]   ;;  %v246_v33 = vld [vmem:[%s3431_s21 + $0x4] sm:$0xf]  ;;  %254 = vst [vmem:[#allocation2] sm:$0xf] %v245_v32  ;;  %p3117_p8 = scmp.ne.s32.totalorder %s3865_s24, %s3116_s15 }
  0x77   : > { %2567 = vmatpush3.bf16.msra.mxu0 %v2913_v10  ;;  %v2930_v27 = vld [vmem:[#allocation6 + $0xb0] sm:$0xff]   ;;  %v2934_v31 = vld [vmem:[#allocation6 + $0xb8] sm:$0xff]   ;;  %255 = vst [vmem:[#allocation2 + $0x24] sm:$0xf] %v246_v33  ;;  %v282_v36 = vld [vmem:[%s3431_s21] sm:$0xf] }
  0x78   : > { %2613 = vmatpush3.bf16.msra.mxu1 %v2914_v11  ;;  %2568 = vmatprep.subr.bf16.mxu0 %v2915_v12  ;;  %v2363_v34 = vld [vmem:[%s3431_s21 + $0x30] sm:$0xf]  ;;  %v2364_v35 = vld [vmem:[%s3431_s21 + $0x34] sm:$0xf]  ;;  %v283_v37 = vld [vmem:[%s3431_s21 + $0x4] sm:$0xf]  ;;  %p3118_p1 = pnand %p3117_p8, %p3947_p12 }
  0x79   : > { %2614 = vmatprep.subr.bf16.mxu1 %v2916_v13  ;;  %273 = vst [vmem:[#allocation2 + $0x4] sm:$0xf] %v2363_v34  ;;  %274 = vst [vmem:[#allocation2 + $0x28] sm:$0xf] %v2364_v35  ;;  %v284_v38 = vld [vmem:[%s3431_s21 + $0x8] sm:$0xf] }
  0x7a   : > { %v296_v39 = vshrl.u32 %v282_v36, 16  ;;  %v299_v40 = vshll.u32 %v282_v36, 16  ;;  %v305_v41 = vshll.u32 %v283_v37, 16  ;;  %v309_v42 = vshrl.u32 %v283_v37, 16  ;;  %v2372_v45 = vld [vmem:[%s3431_s21 + $0x60] sm:$0xf]  ;;  %vm3452_vm2 = vmor %vm292_vm0, %vm293_vm1  ;;  %p3119_p10 = pneg %p3118_p1 }
  0x7b   : > { %2569 = vmatpush3.bf16.msra.mxu0 %v2917_v14  ;;  %v315_v43 = vshll.u32 %v284_v38, 16  ;;  %v319_v44 = vshrl.u32 %v284_v38, 16  ;;  %v2373_v46 = vld [vmem:[%s3431_s21 + $0x64] sm:$0xf]  ;;  %417 = vst [vmem:[#allocation2 + $0xc] sm:$0xf] %v2372_v45  ;;  %vm3729_vm5 = vmor %vm831_vm3, %vm832_vm4 }
  0x7c   : > { %2615 = vmatpush3.bf16.msra.mxu1 %v2918_v15  ;;  %2570 = vmatprep.subr.bf16.mxu0 %v2919_v16  ;;  %v298_v47 = vrot.slane %v296_v39, 4  ;;  %v301_v48 = vrot.slane %v299_v40, 5  ;;  %v307_v49 = vrot.slane %v305_v41, 5  ;;  %v311_v50 = vrot.slane %v309_v42, 4  ;;  %418 = vst [vmem:[#allocation2 + $0x30] sm:$0xf] %v2373_v46  ;;  %vm3832_vm9 = vmor %vm2199_vm7, %vm2200_vm8 }
  0x7d   : > { %2616 = vmatprep.subr.bf16.mxu1 %v2920_v17  ;;  %v317_v52 = vrot.slane %v315_v43, 5  ;;  %v321_v53 = vrot.slane %v319_v44, 4  ;;  %v2941_v54 = vld [vmem:[#allocation6 + $0x140] sm:$0xff]   ;;  %v2943_v61 = vld [vmem:[#allocation6 + $0x148] sm:$0xff]   ;;  %v2365_v5 = vld [vmem:[%s3431_s21 + $0x38] sm:$0xf] }
  0x7e   : > { %v302_v55 = vor.u32 %v301_v48, %v298_v47  ;;  %v312_v56 = vor.u32 %v311_v50, %v307_v49  ;;  %v2942_v58 = vld [vmem:[#allocation6 + $0x100] sm:$0xff]   ;;  %v247_v3 = vld [vmem:[%s3431_s21 + $0x8] sm:$0xf]  ;;  %v248_v4 = vld [vmem:[%s3431_s21 + $0xc] sm:$0xf]  ;;  %s3211_s19 = smov [#allocation9]  }
  0x7f   : > { %2571 = vmatpush3.bf16.msra.mxu0 %v2921_v18  ;;  %v322_v57 = vor.u32 %v321_v53, %v317_v52  ;;  %v2935_v62 = vld [vmem:[#allocation2] ss:$36 sps:$4 sm:$0xff]   ;;  %v2944_v6 = vld [vmem:[#allocation6 + $0x108] sm:$0xff]   ;;  %256 = vst [vmem:[#allocation2 + $0x48] sm:$0xf] %v247_v3  ;;  %vm3851_vm0 = vmor %vm2212_vm10, %vm2213_vm11  ;;  %s3120_s4 = sshll.u32 %s3211_s19, 4  ;;  %s3121_s4 = int_to_ptr.vmem [resolvable:$false] %s3120_s4 }
  0x80   : > { %2617 = vmatpush3.bf16.msra.mxu1 %v2922_v19  ;;  %2572 = vmatprep.subr.bf16.mxu0 %v2923_v20  ;;  %v303_v59 = vrot.slane %v302_v55, 4  ;;  %v313_v60 = vrot.slane %v312_v56, 4  ;;  %v2937_v63 = vld [vmem:[#allocation2 + $0x4] ss:$36 sps:$4 sm:$0xff]   ;;  %257 = vst [vmem:[#allocation2 + $0x6c] sm:$0xf] %v248_v4  ;;  %vm2162_vm1 = vmor %vm2160_vm14, %vm2161_vm15  ;;  %p3123_p3 = scmp.lt.s32.totalorder %s3865_s24, %s3121_s4 }
  0x81   : > { %2618 = vmatprep.subr.bf16.mxu1 %v2924_v21  ;;  %v323_v0 = vrot.slane %v322_v57, 4  ;;  %1756 = vmatprep.mubr.bf16.mxu0 %v2937_v63  ;;  %v2366_v7 = vld [vmem:[%s3431_s21 + $0x3c] sm:$0xf]  ;;  %275 = vst [vmem:[#allocation2 + $0x4c] sm:$0xf] %v2365_v5  ;;  %v2950_v18 = vld [vmem:[#allocation6 + $0x1c0] sm:$0xff]   ;;  %vm2136_vm3 = vmor %vm2134_vm12, %vm2135_vm13 }
  0x82   : > { %v308_v1 = vsel %vm3452_vm2, %v303_v59, %v307_v49  ;;  %v318_v2 = vsel %vm3452_vm2, %v313_v60, %v317_v52  ;;  %v285_v8 = vld [vmem:[%s3431_s21 + $0xc] sm:$0xf]  ;;  %v286_v9 = vld [vmem:[%s3431_s21 + $0x10] sm:$0xf]  ;;  %276 = vst [vmem:[#allocation2 + $0x70] sm:$0xf] %v2366_v7 }
  0x83   : > { %2573 = vmatpush3.bf16.msra.mxu0 %v2925_v22  ;;  %398 = vst [vmem:[#allocation2 + $0x8] sm:$0xf] %v308_v1  ;;  %399 = vst [vmem:[#allocation2 + $0x2c] sm:$0xf] %v318_v2  ;;  %v325_v10 = vshll.u32 %v285_v8, 16  ;;  %v329_v11 = vshrl.u32 %v285_v8, 16 }
  0x84   : > { %2619 = vmatpush3.bf16.msra.mxu1 %v2926_v23  ;;  %2574 = vmatprep.subr.bf16.mxu0 %v2927_v24  ;;  %v335_v12 = vshll.u32 %v286_v9, 16  ;;  %v339_v13 = vshrl.u32 %v286_v9, 16  ;;  %v2374_v14 = vld [vmem:[%s3431_s21 + $0x68] sm:$0xf]  ;;  %v2375_v15 = vld [vmem:[%s3431_s21 + $0x6c] sm:$0xf] }
  0x85   : > { %2620 = vmatprep.subr.bf16.mxu1 %v2928_v25  ;;  %419 = vst [vmem:[#allocation2 + $0x54] sm:$0xf] %v2374_v14  ;;  %v327_v16 = vrot.slane %v325_v10, 5  ;;  %v331_v17 = vrot.slane %v329_v11, 4  ;;  %420 = vst [vmem:[#allocation2 + $0x78] sm:$0xf] %v2375_v15 }
  0x86   : > { %v337_v19 = vrot.slane %v335_v12, 5  ;;  %v341_v20 = vrot.slane %v339_v13, 4  ;;  %v2952_v23 = vld [vmem:[#allocation6 + $0x150] sm:$0xff]   ;;  %v2951_v24 = vld [vmem:[#allocation6 + $0x180] sm:$0xff]   ;;  %v2954_v35 = vld [vmem:[#allocation6 + $0x1c8] sm:$0xff]   ;;  %s3122_s9 = scalar_lea.vmem %s3121_s4, 1024 }
  0x87   : > { %2575 = vmatpush3.bf16.msra.mxu0 %v2929_v26  ;;  %v328_v21 = vsel %vm3452_vm2, %v323_v0, %v327_v16  ;;  %v332_v22 = vor.u32 %v331_v17, %v327_v16  ;;  %v2953_v25 = vld [vmem:[#allocation6 + $0x110] sm:$0xff]   ;;  %v2955_v36 = vld [vmem:[#allocation6 + $0x188] sm:$0xff]   ;;  %v2367_v40 = vld [vmem:[%s3431_s21 + $0x40] sm:$0xf]  ;;  %vm2174_vm4 = vsmask.f32 5392  ;;  %p3124_p5 = scmp.lt.s32.totalorder %s3122_s9, %s3116_s15 }
  0x88   : > { %2621 = vmatpush3.bf16.msra.mxu1 %v2930_v27  ;;  %2576 = vmatprep.subr.bf16.mxu0 %v2931_v28  ;;  %400 = vst [vmem:[#allocation2 + $0x50] sm:$0xf] %v328_v21  ;;  %v342_v26 = vor.u32 %v341_v20, %v337_v19  ;;  %v249_v38 = vld [vmem:[%s3431_s21 + $0x10] sm:$0xf]  ;;  %v250_v39 = vld [vmem:[%s3431_s21 + $0x14] sm:$0xf] }
  0x89   : > { %2622 = vmatprep.subr.bf16.mxu1 %v2932_v29  ;;  %v333_v28 = vrot.slane %v332_v22, 4  ;;  %v2940_v29 = vld [vmem:[#allocation2 + $0xc] ss:$36 sps:$4 sm:$0xff]   ;;  %258 = vst [vmem:[#allocation2 + $0x90] sm:$0xf] %v249_v38  ;;  %v2960_v48 = vld [vmem:[#allocation6 + $0x158] sm:$0xff]   ;;  %p3125_p9 = por %p3124_p5, %p3123_p3 }
  0x8a   : > { %v2938_v27 = vld [vmem:[#allocation2 + $0x8] ss:$36 sps:$4 sm:$0xff]   ;;  %1828 = vmatprep.mubr.bf16.mxu1 %v2940_v29  ;;  %v343_v37 = vrot.slane %v342_v26, 4  ;;  %259 = vst [vmem:[#allocation2 + $0xb4] sm:$0xf] %v250_v39  ;;  %v2962_v55 = vld [vmem:[#allocation6 + $0x118] sm:$0xff]  }
  0x8b   : > { %2577 = vmatpush3.bf16.msra.mxu0 %v2933_v30  ;;  %v890_v30 = vld [vmem:[#allocation2 + $0x48] sm:$0xff]  ;;  %v338_v33 = vsel %vm3452_vm2, %v333_v28, %v337_v19  ;;  %277 = vst [vmem:[#allocation2 + $0x94] sm:$0xf] %v2367_v40  ;;  %v287_v42 = vld [vmem:[%s3431_s21 + $0x14] sm:$0xf]  ;;  %v2966_v7 = vld [vmem:[#allocation6 + $0x1d8] sm:$0xff]   ;;  %p3126_p2 = pnand %p3125_p9, %p3119_p10 }
  0x8c   : > { %2623 = vmatpush3.bf16.msra.mxu1 %v2934_v31  ;;  %2654 = vmatprep.subr.bf16.mxu0 %v2941_v54  ;;  %v895_v31 = vld [vmem:[#allocation2 + $0x6c] sm:$0xff]  ;;  %401 = vst [vmem:[#allocation2 + $0x74] sm:$0xf] %v338_v33  ;;  %v2368_v41 = vld [vmem:[%s3431_s21 + $0x44] sm:$0xf]  ;;  %v345_v44 = vshll.u32 %v287_v42, 16 }
  0x8d   : > { %2700 = vmatprep.subr.bf16.mxu1 %v2950_v18  ;;  %v2945_v32 = vld [vmem:[#allocation2 + $0x4c] ss:$36 sps:$4 sm:$0xff]   ;;  %v2421_v34 = vcombine.low %v890_v30, %v895_v31  ;;  %v288_v43 = vld [vmem:[%s3431_s21 + $0x18] sm:$0xf]  ;;  %278 = vst [vmem:[#allocation2 + $0xb8] sm:$0xf] %v2368_v41 }
  0x8e   : > { %1757 = vmatmul.mubr.bf16.vlgmr.msra.gmra.mrb[0].mxu0 %v2935_v62  ;;  %v349_v45 = vshrl.u32 %v287_v42, 16  ;;  %v355_v46 = vshll.u32 %v288_v43, 16  ;;  %v359_v47 = vshrl.u32 %v288_v43, 16  ;;  %v2376_v49 = vld [vmem:[%s3431_s21 + $0x70] sm:$0xf]  ;;  %v347_v52 = vrot.slane %v345_v44, 5 }
  0x8f   : > { %2655 = vmatpush3.bf16.msra.mxu0 %v2942_v58  ;;  %1829 = vmatmul.mubr.bf16.vlgmr.msra.gmra.mrb[0].mxu1 %v2938_v27  ;;  %v2377_v50 = vld [vmem:[%s3431_s21 + $0x74] sm:$0xf]  ;;  %421 = vst [vmem:[#allocation2 + $0x9c] sm:$0xf] %v2376_v49  ;;  %v2965_v5 = vld [vmem:[#allocation6 + $0x160] sm:$0xff]   ;;  %v2968_v9 = vld [vmem:[#allocation6 + $0x198] sm:$0xff]  }
  0x90   : > { %2656 = vmatprep.subr.bf16.mxu0 %v2943_v61  ;;  %1764 = vmatprep.mubr.bf16.mxu0 %v2945_v32  ;;  %v351_v53 = vrot.slane %v349_v45, 4  ;;  %v357_v54 = vrot.slane %v355_v46, 5  ;;  %422 = vst [vmem:[#allocation2 + $0xc0] sm:$0xf] %v2377_v50  ;;  %v2947_v56 = vld [vmem:[#allocation2 + $0x54] ss:$36 sps:$4 sm:$0xff]   ;;  %v348_v58 = vsel %vm3452_vm2, %v343_v37, %v347_v52 }
  0x91   : > { %2701 = vmatpush3.bf16.msra.mxu1 %v2951_v24  ;;  %v361_v60 = vrot.slane %v359_v47, 4  ;;  %402 = vst [vmem:[#allocation2 + $0x98] sm:$0xf] %v348_v58  ;;  %v2963_v61 = vld [vmem:[#allocation6 + $0x1d0] sm:$0xff]   ;;  %1836 = vmatprep.mubr.bf16.mxu1 %v2947_v56  ;;  %v2967_v8 = vld [vmem:[#allocation6 + $0x120] sm:$0xff]   ;;  %v2975_v29 = vld [vmem:[#allocation6 + $0x168] sm:$0xff]  }
  0x92   : > { %2702 = vmatprep.subr.bf16.mxu1 %v2954_v35  ;;  %v352_v59 = vor.u32 %v351_v53, %v347_v52  ;;  %v900_v62 = vld [vmem:[#allocation2 + $0x90] sm:$0xff]  ;;  %v251_v10 = vld [vmem:[%s3431_s21 + $0x18] sm:$0xf]  ;;  %v252_v11 = vld [vmem:[%s3431_s21 + $0x1c] sm:$0xf] }
  0x93   : > { %2657 = vmatpush3.bf16.msra.mxu0 %v2944_v6  ;;  %v2949_v57 = vld [vmem:[#allocation2 + $0x50] ss:$36 sps:$4 sm:$0xff]   ;;  %v362_v6 = vor.u32 %v361_v60, %v357_v54  ;;  %260 = vst [vmem:[#allocation2 + $0xd8] sm:$0xf] %v251_v10  ;;  %v2369_v12 = vld [vmem:[%s3431_s21 + $0x48] sm:$0xf] }
  0x94   : > { %2658 = vmatprep.subr.bf16.mxu0 %v2952_v23  ;;  %v353_v63 = vrot.slane %v352_v59, 4  ;;  %v2964_v0 = vld [vmem:[#allocation6 + $0x190] sm:$0xff]   ;;  %261 = vst [vmem:[#allocation2 + $0xfc] sm:$0xf] %v252_v11  ;;  %v2370_v14 = vld [vmem:[%s3431_s21 + $0x4c] sm:$0xf] }
  0x95   : > { %2703 = vmatpush3.bf16.msra.mxu1 %v2955_v36  ;;  %v905_v1 = vld [vmem:[#allocation2 + $0xb4] sm:$0xff]  ;;  %v363_v13 = vrot.slane %v362_v6, 4  ;;  %279 = vst [vmem:[#allocation2 + $0xdc] sm:$0xf] %v2369_v12  ;;  %v289_v15 = vld [vmem:[%s3431_s21 + $0x1c] sm:$0xf] }
  0x96   : > { %1765 = vmatmul.mubr.bf16.gmra.mrb[4].mxu0 %v2421_v34  ;;  %v2956_v2 = vld [vmem:[#allocation2 + $0x94] ss:$36 sps:$4 sm:$0xff]   ;;  %2704 = vmatprep.subr.bf16.mxu1 %v2963_v61  ;;  %v358_v3 = vsel %vm3452_vm2, %v353_v63, %v357_v54  ;;  %v2430_v4 = vcombine.low %v900_v62, %v905_v1  ;;  %v290_v16 = vld [vmem:[%s3431_s21 + $0x20] sm:$0xf]  ;;  %280 = vst [vmem:[#allocation2 + $0x100] sm:$0xf] %v2370_v14 }
  0x97   : > { %2659 = vmatpush3.bf16.msra.mxu0 %v2953_v25  ;;  %1837 = vmatmul.mubr.bf16.gmra.mrb[4].mxu1 %v2949_v57  ;;  %403 = vst [vmem:[#allocation2 + $0xbc] sm:$0xf] %v358_v3  ;;  %v365_v17 = vshll.u32 %v289_v15, 16  ;;  %v369_v18 = vshrl.u32 %v289_v15, 16  ;;  %v375_v19 = vshll.u32 %v290_v16, 16  ;;  %v379_v20 = vshrl.u32 %v290_v16, 16 }
  0x98   : > { %2660 = vmatprep.subr.bf16.mxu0 %v2960_v48  ;;  %1772 = vmatprep.mubr.bf16.mxu0 %v2956_v2  ;;  %v2378_v21 = vld [vmem:[%s3431_s21 + $0x78] sm:$0xf]  ;;  %v2379_v22 = vld [vmem:[%s3431_s21 + $0x7c] sm:$0xf]  ;;  %v2974_v28 = vld [vmem:[#allocation6 + $0x1e0] sm:$0xff]   ;;  %v3209_v1 = vmov 0.0  }
  0x99   : > { %2705 = vmatpush3.bf16.msra.mxu1 %v2964_v0  ;;  %423 = vst [vmem:[#allocation2 + $0xe4] sm:$0xf] %v2378_v21  ;;  %v2958_v23 = vld [vmem:[#allocation2 + $0x9c] ss:$36 sps:$4 sm:$0xff]   ;;  %v367_v25 = vrot.slane %v365_v17, 5  ;;  %v371_v26 = vrot.slane %v369_v18, 4 }
  0x9a   : > { %2706 = vmatprep.subr.bf16.mxu1 %v2966_v7  ;;  %424 = vst [vmem:[#allocation2 + $0x108] sm:$0xf] %v2379_v22  ;;  %v377_v27 = vrot.slane %v375_v19, 5  ;;  %1844 = vmatprep.mubr.bf16.mxu1 %v2958_v23  ;;  %v2976_v32 = vld [vmem:[#allocation6 + $0x1a0] sm:$0xff]   ;;  %v381_v33 = vrot.slane %v379_v20, 4  ;;  %v2977_v35 = vld [vmem:[#allocation6 + $0x128] sm:$0xff]  }
  0x9b   : > { %2661 = vmatpush3.bf16.msra.mxu0 %v2962_v55  ;;  %v368_v30 = vsel %vm3452_vm2, %v363_v13, %v367_v25  ;;  %v372_v31 = vor.u32 %v371_v26, %v367_v25  ;;  %v2978_v40 = vld [vmem:[#allocation6 + $0x1e8] sm:$0xff]   ;;  %v2980_v44 = vld [vmem:[#allocation6 + $0x170] sm:$0xff]   ;;  %v253_v45 = vld [vmem:[%s3431_s21 + $0x20] sm:$0xf] }
  0x9c   : > { %2662 = vmatprep.subr.bf16.mxu0 %v2965_v5  ;;  %404 = vst [vmem:[#allocation2 + $0xe0] sm:$0xf] %v368_v30  ;;  %v910_v34 = vld [vmem:[#allocation2 + $0xd8] sm:$0xff]  ;;  %v382_v41 = vor.u32 %v381_v33, %v377_v27  ;;  %v2979_v43 = vld [vmem:[#allocation6 + $0x1a8] sm:$0xff]   ;;  %v2371_v46 = vld [vmem:[%s3431_s21 + $0x50] sm:$0xf] }
  0x9d   : > { %2707 = vmatpush3.bf16.msra.mxu1 %v2968_v9  ;;  %v915_v36 = vld [vmem:[#allocation2 + $0xfc] sm:$0xff]  ;;  %v373_v38 = vrot.slane %v372_v31, 4  ;;  %262 = vst [vmem:[#allocation2 + $0x120] sm:$0xf] %v253_v45  ;;  %281 = vst [vmem:[#allocation2 + $0x124] sm:$0xf] %v2371_v46 }
  0x9e   : > { %1773 = vmatmul.mubr.bf16.gmra.mrb[8].mxu0 %v2430_v4  ;;  %v2961_v24 = vld [vmem:[#allocation2 + $0x98] ss:$36 sps:$4 sm:$0xff]   ;;  %2708 = vmatprep.subr.bf16.mxu1 %v2974_v28  ;;  %v2439_v39 = vcombine.low %v910_v34, %v915_v36  ;;  %v291_v47 = vld [vmem:[%s3431_s21 + $0x24] sm:$0x1]  ;;  %v2380_v48 = vld [vmem:[%s3431_s21 + $0x80] sm:$0xf] }
  0x9f   : > { %2663 = vmatpush3.bf16.msra.mxu0 %v2967_v8  ;;  %1845 = vmatmul.mubr.bf16.gmra.mrb[8].mxu1 %v2961_v24  ;;  %v2969_v37 = vld [vmem:[#allocation2 + $0xdc] ss:$36 sps:$4 sm:$0xff]   ;;  %v378_v42 = vsel %vm3452_vm2, %v373_v38, %v377_v27  ;;  %v383_v49 = vrot.slane %v382_v41, 4  ;;  %v385_v50 = vshll.u32 %v291_v47, 16  ;;  %425 = vst [vmem:[#allocation2 + $0x12c] sm:$0xf] %v2380_v48 }
  0xa0   : > { %2664 = vmatprep.subr.bf16.mxu0 %v2975_v29  ;;  %1780 = vmatprep.mubr.bf16.mxu0 %v2969_v37  ;;  %405 = vst [vmem:[#allocation2 + $0x104] sm:$0xf] %v378_v42  ;;  %v2983_v52 = vld [vmem:[#allocation6 + $0x130] sm:$0xff]   ;;  %v2988_v56 = vld [vmem:[#allocation6 + $0x178] sm:$0xff]   ;;  %v2390_v5 = vld [vmem:[%s3431_s21 + $0x60] sm:$0xf] }
  0xa1   : > { %2709 = vmatpush3.bf16.msra.mxu1 %v2976_v32  ;;  %v2986_v53 = vld [vmem:[#allocation6 + $0x1f0] sm:$0xff]   ;;  %v387_v54 = vrot.slane %v385_v50, 5  ;;  %v2989_v58 = vld [vmem:[#allocation6 + $0x138] sm:$0xff]   ;;  %v2971_v59 = vld [vmem:[#allocation2 + $0xe4] ss:$36 sps:$4 sm:$0xff]   ;;  %v456_v8 = vshrl.u32 %v2390_v5, 16 }
  0xa2   : > { %2710 = vmatprep.subr.bf16.mxu1 %v2978_v40  ;;  %v2987_v55 = vld [vmem:[#allocation6 + $0x1b0] sm:$0xff]   ;;  %1852 = vmatprep.mubr.bf16.mxu1 %v2971_v59  ;;  %v2990_v0 = vld [vmem:[#allocation6 + $0x1f8] sm:$0xff]   ;;  %v2391_v6 = vld [vmem:[%s3431_s21 + $0x64] sm:$0xf]  ;;  %v459_v9 = vshll.u32 %v2390_v5, 16 }
  0xa3   : > { %2665 = vmatpush3.bf16.msra.mxu0 %v2977_v35  ;;  %v388_v57 = vsel %vm3452_vm2, %v383_v49, %v387_v54  ;;  %v2991_v2 = vld [vmem:[#allocation6 + $0x1b8] sm:$0xff]   ;;  %v2381_v3 = vld [vmem:[%s3431_s21 + $0x90] sm:$0xf]  ;;  %v2382_v4 = vld [vmem:[%s3431_s21 + $0x94] sm:$0xf]  ;;  %v465_v10 = vshll.u32 %v2391_v6, 16 }
  0xa4   : > { %2666 = vmatprep.subr.bf16.mxu0 %v2980_v44  ;;  %406 = vst [vmem:[#allocation2 + $0x128] sm:$0xf] %v388_v57  ;;  %v920_v61 = vld [vmem:[#allocation2 + $0x120] sm:$0xff]  ;;  %436 = vst [vmem:[#allocation2 + $0x10] sm:$0xf] %v2381_v3  ;;  %v469_v11 = vshrl.u32 %v2391_v6, 16 }
  0xa5   : > { %2711 = vmatpush3.bf16.msra.mxu1 %v2979_v43  ;;  %v2449_v62 = vcombine.high %v920_v61, %v920_v61  ;;  %v2448_v63 = vcombine.low %v920_v61, %v920_v61  ;;  %437 = vst [vmem:[#allocation2 + $0x34] sm:$0xf] %v2382_v4  ;;  %v3508_v7 = vld [vmem:[%s3431_s21 + $0x68] sm:$0xf]  ;;  %v567_v12 = vld [vmem:[%s3431_s21 + $0x4] sm:$0xf] }
  0xa6   : > { %1781 = vmatmul.mubr.bf16.gmra.mrb[12].mxu0 %v2439_v39  ;;  %2712 = vmatprep.subr.bf16.mxu1 %v2986_v53  ;;  %v475_v13 = vshll.u32 %v3508_v7, 16  ;;  %v479_v14 = vshrl.u32 %v3508_v7, 16  ;;  %v568_v15 = vld [vmem:[%s3431_s21 + $0x8] sm:$0xf]  ;;  %v3515_v16 = vld [vmem:[%s3431_s21 + $0xc] sm:$0xf] }
  0xa7   : > { %2667 = vmatpush3.bf16.msra.mxu0 %v2983_v52  ;;  %v2973_v60 = vld [vmem:[#allocation2 + $0xe0] ss:$36 sps:$4 sm:$0xff]   ;;  %1788 = vmatprep.mubr.bf16.mxu0 %v2449_v62  ;;  %v458_v18 = vrot.slane %v456_v8, 4  ;;  %v461_v19 = vrot.slane %v459_v9, 5  ;;  %v467_v20 = vrot.slane %v465_v10, 5  ;;  %v471_v21 = vrot.slane %v469_v11, 4 }
  0xa8   : > { %2668 = vmatprep.subr.bf16.mxu0 %v2988_v56  ;;  %1853 = vmatmul.mubr.bf16.gmra.mrb[12].mxu1 %v2973_v60  ;;  %v3518_v24 = vrot.slane %v475_v13, 5  ;;  %v578_v25 = vshrl.u32 %v567_v12, 16  ;;  %v2400_v26 = vld [vmem:[%s3431_s21 + $0x34] sm:$0xf]  ;;  %v581_v29 = vshll.u32 %v567_v12, 16  ;;  %v587_v30 = vshll.u32 %v568_v15, 16 }
  0xa9   : > { %2713 = vmatpush3.bf16.msra.mxu1 %v2987_v55  ;;  %v462_v27 = vor.u32 %v461_v19, %v458_v18  ;;  %v472_v28 = vor.u32 %v471_v21, %v467_v20  ;;  %v2401_v31 = vld [vmem:[%s3431_s21 + $0x38] sm:$0xf]  ;;  %v591_v33 = vshrl.u32 %v568_v15, 16  ;;  %v597_v34 = vshll.u32 %v3515_v16, 16  ;;  %v3525_v36 = vld [vmem:[%s3431_s21 + $0x3c] sm:$0xf] }
  0xaa   : > { %2714 = vmatprep.subr.bf16.mxu1 %v2990_v0  ;;  %v580_v32 = vrot.slane %v578_v25, 4  ;;  %v601_v35 = vshrl.u32 %v3515_v16, 16  ;;  %v583_v39 = vrot.slane %v581_v29, 5  ;;  %v589_v40 = vrot.slane %v587_v30, 5  ;;  %v2383_v49 = vld [vmem:[%s3431_s21 + $0x98] sm:$0xf] }
  0xab   : > { %2669 = vmatpush3.bf16.msra.mxu0 %v2989_v58  ;;  %v921_v17 = vld [vmem:[#allocation2 + $0x128] sm:$0xff]  ;;  %v463_v37 = vrot.slane %v462_v27, 4  ;;  %v473_v38 = vrot.slane %v472_v28, 4  ;;  %v593_v41 = vrot.slane %v591_v33, 4  ;;  %v3527_v42 = vrot.slane %v597_v34, 5 }
  0xac   : > { %2759 = vmatprep.subr.bf16.mxu0 %v3209_v1  ;;  %v2451_v22 = vcombine.high %v921_v17, %v921_v17  ;;  %v2450_v23 = vcombine.low %v921_v17, %v921_v17  ;;  %v700_v43 = vshrl.u32 %v2400_v26, 16  ;;  %v703_v44 = vshll.u32 %v2400_v26, 16  ;;  %v2384_v50 = vld [vmem:[%s3431_s21 + $0x9c] sm:$0xf]  ;;  %438 = vst [vmem:[#allocation2 + $0x58] sm:$0xf] %v2383_v49 }
  0xad   : > { %2715 = vmatpush3.bf16.msra.mxu1 %v2991_v2  ;;  %v468_v45 = vsel %vm3452_vm2, %v463_v37, %v467_v20  ;;  %v478_v46 = vsel %vm3452_vm2, %v473_v38, %v3518_v24  ;;  %v584_v47 = vor.u32 %v583_v39, %v580_v32  ;;  %v709_v48 = vshll.u32 %v2401_v31, 16  ;;  %439 = vst [vmem:[#allocation2 + $0x7c] sm:$0xf] %v2384_v50  ;;  %v2393_v56 = vld [vmem:[%s3431_s21 + $0x6c] sm:$0xf]  ;;  %v3567_v29 = vld [vmem:[#allocation6 + $0x200] sm:$0xff]  }
  0xae   : > { %1789 = vmatmul.mubr.bf16.gmra.mrb[16].mxu0 %v2448_v63  ;;  %2795 = vmatprep.subr.bf16.mxu1 %v3209_v1  ;;  %558 = vst [vmem:[#allocation2 + $0x14] sm:$0xf] %v468_v45  ;;  %559 = vst [vmem:[#allocation2 + $0x38] sm:$0xf] %v478_v46  ;;  %v594_v52 = vor.u32 %v593_v41, %v589_v40  ;;  %v702_v53 = vrot.slane %v700_v43, 4  ;;  %v705_v54 = vrot.slane %v703_v44, 5 }
  0xaf   : > { %1860 = vmatprep.mubr.bf16.mxu1 %v2451_v22  ;;  %v713_v55 = vshrl.u32 %v2401_v31, 16  ;;  %v585_v57 = vrot.slane %v584_v47, 4  ;;  %v711_v58 = vrot.slane %v709_v48, 5  ;;  %v719_v59 = vshll.u32 %v3525_v36, 16  ;;  %v3540_v0 = vld [vmem:[%s3431_s21 + $0x70] sm:$0xf] }
  0xb0   : > { %1861 = vmatmul.mubr.bf16.gmra.mrb[16].mxu1 %v2450_v23  ;;  %v723_v60 = vshrl.u32 %v3525_v36, 16  ;;  %v595_v61 = vrot.slane %v594_v52, 4  ;;  %v706_v62 = vor.u32 %v705_v54, %v702_v53  ;;  %v481_v2 = vrot.slane %v479_v14, 4  ;;  %v570_v11 = vld [vmem:[%s3431_s21 + $0x10] sm:$0xf]  ;;  %v3584_v48 = vld [vmem:[#allocation6 + $0x208] sm:$0xff]  }
  0xb1   : > { %v715_v63 = vrot.slane %v713_v55, 4  ;;  %v590_v3 = vsel %vm3452_vm2, %v585_v57, %v589_v40  ;;  %v3544_v4 = vrot.slane %v719_v59, 5  ;;  %v485_v5 = vshll.u32 %v2393_v56, 16  ;;  %v3552_v12 = vld [vmem:[%s3431_s21 + $0x14] sm:$0xf] }
  0xb2   : > { %v489_v6 = vshrl.u32 %v2393_v56, 16  ;;  %v600_v7 = vsel %vm3452_vm2, %v595_v61, %v3527_v42  ;;  %680 = vst [vmem:[#allocation2 + $0x18] sm:$0xf] %v590_v3  ;;  %v707_v8 = vrot.slane %v706_v62, 4  ;;  %v482_v10 = vor.u32 %v481_v2, %v3518_v24  ;;  %v2403_v17 = vld [vmem:[%s3431_s21 + $0x40] sm:$0xf] }
  0xb3   : > { %v716_v9 = vor.u32 %v715_v63, %v711_v58  ;;  %681 = vst [vmem:[#allocation2 + $0x3c] sm:$0xf] %v600_v7  ;;  %v487_v13 = vrot.slane %v485_v5, 5  ;;  %v495_v15 = vshll.u32 %v3540_v0, 16  ;;  %v499_v16 = vshrl.u32 %v3540_v0, 16  ;;  %v3597_v62 = vld [vmem:[#allocation6 + $0x210] sm:$0xff]  }
  0xb4   : > { %v491_v14 = vrot.slane %v489_v6, 4  ;;  %v712_v18 = vsel %vm3452_vm2, %v707_v8, %v711_v58  ;;  %v483_v20 = vrot.slane %v482_v10, 4  ;;  %v603_v21 = vrot.slane %v601_v35, 4  ;;  %v3560_v22 = vld [vmem:[%s3431_s21 + $0x44] sm:$0xf] }
  0xb5   : > { %v717_v19 = vrot.slane %v716_v9, 4  ;;  %v2992_v23 = vld [vmem:[#allocation2 + $0x10] ss:$36 sps:$4 sm:$0xff]   ;;  %802 = vst [vmem:[#allocation2 + $0x1c] sm:$0xf] %v712_v18  ;;  %v3562_v25 = vrot.slane %v495_v15, 5 }
  0xb6   : > { %v492_v24 = vor.u32 %v491_v14, %v487_v13  ;;  %v607_v26 = vshll.u32 %v570_v11, 16  ;;  %v2994_v27 = vld [vmem:[#allocation2 + $0x14] ss:$36 sps:$4 sm:$0xff]   ;;  %v488_v30 = vsel %vm3452_vm2, %v483_v20, %v487_v13  ;;  %v604_v31 = vor.u32 %v603_v21, %v3527_v42  ;;  %v2385_v33 = vld [vmem:[%s3431_s21 + $0xa0] sm:$0xf] }
  0xb7   : > { %v722_v28 = vsel %vm3452_vm2, %v717_v19, %v3544_v4  ;;  %v611_v32 = vshrl.u32 %v570_v11, 16  ;;  %560 = vst [vmem:[#allocation2 + $0x5c] sm:$0xf] %v488_v30  ;;  %v617_v36 = vshll.u32 %v3552_v12, 16  ;;  %v621_v37 = vshrl.u32 %v3552_v12, 16  ;;  %1900 = vmatprep.mubr.bf16.mxu0 %v2994_v27 }
  0xb8   : > { %803 = vst [vmem:[#allocation2 + $0x40] sm:$0xf] %v722_v28  ;;  %v493_v34 = vrot.slane %v492_v24, 4  ;;  %v609_v35 = vrot.slane %v607_v26, 5  ;;  %v2386_v38 = vld [vmem:[%s3431_s21 + $0xa4] sm:$0xf]  ;;  %1901 = vmatmul.mubr.bf16.vlgmr.msra.gmra.mrb[20].mxu0 %v2992_v23 }
  0xb9   : > { %440 = vst [vmem:[#allocation2 + $0xa0] sm:$0xf] %v2385_v33  ;;  %v605_v39 = vrot.slane %v604_v31, 4  ;;  %v613_v40 = vrot.slane %v611_v32, 4  ;;  %v725_v41 = vrot.slane %v723_v60, 4  ;;  %v729_v43 = vshll.u32 %v2403_v17, 16  ;;  %2760 = vmatpush3.bf16.msra.mxu0 %v3567_v29 }
  0xba   : > { %441 = vst [vmem:[#allocation2 + $0xc4] sm:$0xf] %v2386_v38  ;;  %v498_v42 = vsel %vm3452_vm2, %v493_v34, %v3562_v25  ;;  %v3579_v44 = vrot.slane %v617_v36, 5  ;;  %v733_v45 = vshrl.u32 %v2403_v17, 16  ;;  %v739_v46 = vshll.u32 %v3560_v22, 16  ;;  %2761 = vmatprep.subr.bf16.mxu0 %v3209_v1  ;;  %v3619_v23 = vld [vmem:[#allocation6 + $0x218] sm:$0xff]  }
  0xbb   : > { %v2395_v47 = vld [vmem:[%s3431_s21 + $0x74] sm:$0xf]  ;;  %561 = vst [vmem:[#allocation2 + $0x80] sm:$0xf] %v498_v42  ;;  %v610_v49 = vsel %vm3452_vm2, %v605_v39, %v609_v35  ;;  %v614_v50 = vor.u32 %v613_v40, %v609_v35  ;;  %v726_v52 = vor.u32 %v725_v41, %v3544_v4  ;;  %v731_v53 = vrot.slane %v729_v43, 5 }
  0xbc   : > { %v3590_v54 = vld [vmem:[%s3431_s21 + $0x78] sm:$0xf]  ;;  %682 = vst [vmem:[#allocation2 + $0x60] sm:$0xf] %v610_v49  ;;  %v735_v55 = vrot.slane %v733_v45, 4  ;;  %v3593_v56 = vrot.slane %v739_v46, 5 }
  0xbd   : > { %v743_v57 = vshrl.u32 %v3560_v22, 16  ;;  %v501_v58 = vrot.slane %v499_v16, 4  ;;  %v572_v59 = vld [vmem:[%s3431_s21 + $0x18] sm:$0xf]  ;;  %v615_v60 = vrot.slane %v614_v50, 4  ;;  %v727_v61 = vrot.slane %v726_v52, 4  ;;  %2762 = vmatpush3.bf16.msra.mxu0 %v3584_v48 }
  0xbe   : > { %v505_v63 = vshll.u32 %v2395_v47, 16  ;;  %v509_v0 = vshrl.u32 %v2395_v47, 16  ;;  %v736_v2 = vor.u32 %v735_v55, %v731_v53  ;;  %v515_v4 = vshll.u32 %v3590_v54, 16  ;;  %v3603_v6 = vld [vmem:[%s3431_s21 + $0x1c] sm:$0xf]  ;;  %v892_v13 = vld [vmem:[#allocation2 + $0x58] sm:$0xff]  ;;  %2763 = vmatprep.subr.bf16.mxu0 %v3209_v1 }
  0xbf   : > { %v502_v3 = vor.u32 %v501_v58, %v3562_v25  ;;  %v519_v5 = vshrl.u32 %v3590_v54, 16  ;;  %v2995_v7 = vld [vmem:[#allocation2 + $0x18] ss:$36 sps:$4 sm:$0xff]   ;;  %v620_v9 = vsel %vm3452_vm2, %v615_v60, %v3579_v44  ;;  %v732_v10 = vsel %vm3452_vm2, %v727_v61, %v731_v53  ;;  %v2405_v12 = vld [vmem:[%s3431_s21 + $0x48] sm:$0xf] }
  0xc0   : > { %v2997_v8 = vld [vmem:[#allocation2 + $0x1c] ss:$36 sps:$4 sm:$0xff]   ;;  %v507_v11 = vrot.slane %v505_v63, 5  ;;  %683 = vst [vmem:[#allocation2 + $0x84] sm:$0xf] %v620_v9  ;;  %v737_v14 = vrot.slane %v736_v2, 4 }
  0xc1   : > { %804 = vst [vmem:[#allocation2 + $0x64] sm:$0xf] %v732_v10  ;;  %v503_v15 = vrot.slane %v502_v3, 4  ;;  %v511_v16 = vrot.slane %v509_v0, 4  ;;  %v3613_v17 = vrot.slane %v515_v4, 5  ;;  %1972 = vmatprep.mubr.bf16.mxu1 %v2997_v8  ;;  %v623_v19 = vrot.slane %v621_v37, 4  ;;  %2764 = vmatpush3.bf16.msra.mxu0 %v3597_v62 }
  0xc2   : > { %v3616_v18 = vld [vmem:[%s3431_s21 + $0x4c] sm:$0xf]  ;;  %v627_v20 = vshll.u32 %v572_v59, 16  ;;  %v631_v21 = vshrl.u32 %v572_v59, 16  ;;  %v637_v22 = vshll.u32 %v3603_v6, 16  ;;  %1973 = vmatmul.mubr.bf16.vlgmr.msra.gmra.mrb[20].mxu1 %v2995_v7  ;;  %v897_v24 = vld [vmem:[#allocation2 + $0x7c] sm:$0xff]  ;;  %v742_v26 = vsel %vm3452_vm2, %v737_v14, %v3593_v56  ;;  %2765 = vmatprep.subr.bf16.mxu0 %v3209_v1 }
  0xc3   : > { %v3000_v25 = vld [vmem:[#allocation2 + $0x5c] ss:$36 sps:$4 sm:$0xff]   ;;  %v508_v27 = vsel %vm3452_vm2, %v503_v15, %v507_v11  ;;  %v512_v28 = vor.u32 %v511_v16, %v507_v11  ;;  %v641_v30 = vshrl.u32 %v3603_v6, 16  ;;  %805 = vst [vmem:[#allocation2 + $0x88] sm:$0xf] %v742_v26  ;;  %v2425_v31 = vcombine.low %v892_v13, %v897_v24  ;;  %2803 = vmatpush3.bf16.msra.mxu1 %v3567_v29  ;;  %v3677_v16 = vld [vmem:[#allocation6 + $0x228] sm:$0xff]  }
  0xc4   : > { %562 = vst [vmem:[#allocation2 + $0xa4] sm:$0xf] %v508_v27  ;;  %v624_v32 = vor.u32 %v623_v19, %v3579_v44  ;;  %v629_v33 = vrot.slane %v627_v20, 5  ;;  %v633_v34 = vrot.slane %v631_v21, 4  ;;  %v2387_v35 = vld [vmem:[%s3431_s21 + $0xa8] sm:$0xf]  ;;  %1908 = vmatprep.mubr.bf16.mxu0 %v3000_v25  ;;  %2796 = vmatprep.subr.bf16.mxu1 %v3209_v1 }
  0xc5   : > { %v513_v36 = vrot.slane %v512_v28, 4  ;;  %v3632_v37 = vrot.slane %v637_v22, 5  ;;  %v745_v38 = vrot.slane %v743_v57, 4  ;;  %v749_v39 = vshll.u32 %v2405_v12, 16  ;;  %v2388_v40 = vld [vmem:[%s3431_s21 + $0xac] sm:$0xf]  ;;  %1909 = vmatmul.mubr.bf16.gmra.mrb[24].mxu0 %v2425_v31 }
  0xc6   : > { %442 = vst [vmem:[#allocation2 + $0xe8] sm:$0xf] %v2387_v35  ;;  %v625_v29 = vrot.slane %v624_v32, 4  ;;  %v634_v41 = vor.u32 %v633_v34, %v629_v33  ;;  %v753_v43 = vshrl.u32 %v2405_v12, 16  ;;  %v759_v42 = vshll.u32 %v3616_v18, 16  ;;  %2766 = vmatpush3.bf16.msra.mxu0 %v3619_v23 }
  0xc7   : > { %443 = vst [vmem:[#allocation2 + $0x10c] sm:$0xf] %v2388_v40  ;;  %v2397_v44 = vld [vmem:[%s3431_s21 + $0x7c] sm:$0xf]  ;;  %v518_v45 = vsel %vm3452_vm2, %v513_v36, %v3613_v17  ;;  %v746_v46 = vor.u32 %v745_v38, %v3593_v56  ;;  %v751_v47 = vrot.slane %v749_v39, 5  ;;  %v763_v49 = vshrl.u32 %v3616_v18, 16  ;;  %2804 = vmatpush3.bf16.msra.mxu1 %v3584_v48  ;;  %2767 = vmatprep.subr.bf16.mxu0 %v3209_v1 }
  0xc8   : > { %v3644_v50 = vld [vmem:[%s3431_s21 + $0x80] sm:$0xf]  ;;  %563 = vst [vmem:[#allocation2 + $0xc8] sm:$0xf] %v518_v45  ;;  %v630_v52 = vsel %vm3452_vm2, %v625_v29, %v629_v33  ;;  %v635_v53 = vrot.slane %v634_v41, 4  ;;  %v755_v55 = vrot.slane %v753_v43, 4  ;;  %2797 = vmatprep.subr.bf16.mxu1 %v3209_v1 }
  0xc9   : > { %v3649_v57 = vrot.slane %v759_v42, 5  ;;  %v3652_v56 = vld [vmem:[#allocation6 + $0x220] sm:$0xff]   ;;  %684 = vst [vmem:[#allocation2 + $0xa8] sm:$0xf] %v630_v52  ;;  %v747_v58 = vrot.slane %v746_v46, 4  ;;  %v521_v48 = vrot.slane %v519_v5, 4 }
  0xca   : > { %v525_v59 = vshll.u32 %v2397_v44, 16  ;;  %v529_v60 = vshrl.u32 %v2397_v44, 16  ;;  %v574_v61 = vld [vmem:[%s3431_s21 + $0x20] sm:$0xf]  ;;  %v640_v63 = vsel %vm3452_vm2, %v635_v53, %v3632_v37  ;;  %v756_v0 = vor.u32 %v755_v55, %v751_v47  ;;  %v3665_v4 = vld [vmem:[%s3431_s21 + $0x24] sm:$0xf]  ;;  %2768 = vmatpush3.bf16.msra.mxu0 %v3652_v56 }
  0xcb   : > { %v535_v2 = vshll.u32 %v3644_v50, 16  ;;  %v539_v3 = vshrl.u32 %v3644_v50, 16  ;;  %v3002_v7 = vld [vmem:[#allocation2 + $0x64] ss:$36 sps:$4 sm:$0xff]   ;;  %685 = vst [vmem:[#allocation2 + $0xcc] sm:$0xf] %v640_v63  ;;  %v752_v54 = vsel %vm3452_vm2, %v747_v58, %v751_v47  ;;  %v522_v5 = vor.u32 %v521_v48, %v3613_v17  ;;  %2805 = vmatpush3.bf16.msra.mxu1 %v3597_v62  ;;  %2769 = vmatprep.subr.bf16.mxu0 %v3209_v1 }
  0xcc   : > { %v3004_v8 = vld [vmem:[#allocation2 + $0x60] ss:$36 sps:$4 sm:$0xff]   ;;  %v527_v9 = vrot.slane %v525_v59, 5  ;;  %v757_v11 = vrot.slane %v756_v0, 4  ;;  %806 = vst [vmem:[#allocation2 + $0xac] sm:$0xf] %v752_v54  ;;  %1980 = vmatprep.mubr.bf16.mxu1 %v3002_v7  ;;  %2798 = vmatprep.subr.bf16.mxu1 %v3209_v1 }
  0xcd   : > { %v902_v10 = vld [vmem:[#allocation2 + $0xa0] sm:$0xff]  ;;  %v531_v12 = vrot.slane %v529_v60, 4  ;;  %v3672_v13 = vrot.slane %v535_v2, 5  ;;  %v643_v14 = vrot.slane %v641_v30, 4  ;;  %v2407_v15 = vld [vmem:[%s3431_s21 + $0x50] sm:$0xf]  ;;  %1981 = vmatmul.mubr.bf16.gmra.mrb[24].mxu1 %v3004_v8 }
  0xce   : > { %v523_v17 = vrot.slane %v522_v5, 4  ;;  %v647_v62 = vshll.u32 %v574_v61, 16  ;;  %v651_v19 = vshrl.u32 %v574_v61, 16  ;;  %v657_v20 = vshll.u32 %v3665_v4, 16  ;;  %v2408_v25 = vld [vmem:[%s3431_s21 + $0x54] sm:$0xf]  ;;  %2770 = vmatpush3.bf16.msra.mxu0 %v3677_v16 }
  0xcf   : > { %v762_v6 = vsel %vm3452_vm2, %v757_v11, %v3649_v57  ;;  %v532_v21 = vor.u32 %v531_v12, %v527_v9  ;;  %v644_v22 = vor.u32 %v643_v14, %v3632_v37  ;;  %v661_v24 = vshrl.u32 %v3665_v4, 16  ;;  %v2389_v26 = vld [vmem:[%s3431_s21 + $0xb0] sm:$0xf]  ;;  %v907_v27 = vld [vmem:[#allocation2 + $0xc4] sm:$0xff]  ;;  %2806 = vmatpush3.bf16.msra.mxu1 %v3619_v23  ;;  %v576_v23 = vld [vmem:[%s3431_s21 + $0x28] sm:$0x1]  ;;  %2771 = vmatprep.subr.bf16.mxu0 %v3209_v1 }
  0xd0   : > { %v3006_v28 = vld [vmem:[#allocation2 + $0xa4] ss:$36 sps:$4 sm:$0xff]   ;;  %807 = vst [vmem:[#allocation2 + $0xd0] sm:$0xf] %v762_v6  ;;  %v528_v30 = vsel %vm3452_vm2, %v523_v17, %v527_v9  ;;  %v649_v31 = vrot.slane %v647_v62, 5  ;;  %v653_v32 = vrot.slane %v651_v19, 4  ;;  %v2434_v34 = vcombine.low %v902_v10, %v907_v27  ;;  %2799 = vmatprep.subr.bf16.mxu1 %v3209_v1 }
  0xd1   : > { %v3691_v33 = vrot.slane %v657_v20, 5  ;;  %444 = vst [vmem:[#allocation2 + $0x130] sm:$0xf] %v2389_v26  ;;  %v533_v35 = vrot.slane %v532_v21, 4  ;;  %564 = vst [vmem:[#allocation2 + $0xec] sm:$0xf] %v528_v30  ;;  %1916 = vmatprep.mubr.bf16.mxu0 %v3006_v28 }
  0xd2   : > { %v645_v36 = vrot.slane %v644_v22, 4  ;;  %v765_v37 = vrot.slane %v763_v49, 4  ;;  %v2399_v38 = vld [vmem:[%s3431_s21 + $0x84] sm:$0x1]  ;;  %v3698_v39 = vld [vmem:[#allocation6 + $0x230] sm:$0xff]   ;;  %v654_v40 = vor.u32 %v653_v32, %v649_v31  ;;  %v769_v29 = vshll.u32 %v2407_v15, 16  ;;  %1917 = vmatmul.mubr.bf16.gmra.mrb[28].mxu0 %v2434_v34 }
  0xd3   : > { %v773_v41 = vshrl.u32 %v2407_v15, 16  ;;  %v779_v43 = vshll.u32 %v2408_v25, 16  ;;  %v538_v18 = vsel %vm3452_vm2, %v533_v35, %v3672_v13  ;;  %v783_v45 = vshrl.u32 %v2408_v25, 16  ;;  %v2409_v46 = vld [vmem:[%s3431_s21 + $0x58] sm:$0x1]  ;;  %2807 = vmatpush3.bf16.msra.mxu1 %v3652_v56  ;;  %2772 = vmatpush3.bf16.msra.mxu0 %v3698_v39 }
  0xd4   : > { %v650_v42 = vsel %vm3452_vm2, %v645_v36, %v649_v31  ;;  %v766_v44 = vor.u32 %v765_v37, %v3649_v57  ;;  %565 = vst [vmem:[#allocation2 + $0x110] sm:$0xf] %v538_v18  ;;  %v655_v47 = vrot.slane %v654_v40, 4  ;;  %v771_v49 = vrot.slane %v769_v29, 5  ;;  %v3714_v57 = vld [vmem:[#allocation6 + $0x238] sm:$0xff]   ;;  %2800 = vmatprep.subr.bf16.mxu1 %v3209_v1  ;;  %2773 = vmatprep.subr.bf16.mxu0 %v3209_v1 }
  0xd5   : > { %686 = vst [vmem:[#allocation2 + $0xf0] sm:$0xf] %v650_v42  ;;  %v775_v52 = vrot.slane %v773_v41, 4  ;;  %v781_v53 = vrot.slane %v779_v43, 5  ;;  %v541_v58 = vrot.slane %v539_v3, 4  ;;  %v545_v48 = vshll.u32 %v2399_v38, 16 }
  0xd6   : > { %v767_v55 = vrot.slane %v766_v44, 4  ;;  %v663_v59 = vrot.slane %v661_v24, 4  ;;  %v660_v60 = vsel %vm3452_vm2, %v655_v47, %v3691_v33  ;;  %v667_v63 = vshll.u32 %v576_v23, 16  ;;  %v811_v50 = vld [vmem:[%s3431_s21 + $0x4] sm:$0xe] }
  0xd7   : > { %v776_v61 = vor.u32 %v775_v52, %v771_v49  ;;  %v785_v0 = vrot.slane %v783_v45, 4  ;;  %v3008_v56 = vld [vmem:[#allocation2 + $0xac] ss:$36 sps:$4 sm:$0xff]   ;;  %687 = vst [vmem:[#allocation2 + $0x114] sm:$0xf] %v660_v60  ;;  %v542_v4 = vor.u32 %v541_v58, %v3672_v13  ;;  %v547_v7 = vrot.slane %v545_v48, 5  ;;  %2808 = vmatpush3.bf16.msra.mxu1 %v3677_v16  ;;  %2774 = vmatpush3.bf16.msra.mxu0 %v3714_v57 }
  0xd8   : > { %v3010_v2 = vld [vmem:[#allocation2 + $0xa8] ss:$36 sps:$4 sm:$0xff]   ;;  %v772_v3 = vsel %vm3452_vm2, %v767_v55, %v771_v49  ;;  %v664_v8 = vor.u32 %v663_v59, %v3691_v33  ;;  %v669_v9 = vrot.slane %v667_v63, 5  ;;  %v789_v11 = vshll.u32 %v2409_v46, 16  ;;  %1988 = vmatprep.mubr.bf16.mxu1 %v3008_v56  ;;  %v813_v17 = vld [vmem:[%s3431_s21 + $0xc] sm:$0xf]  ;;  %2801 = vmatprep.subr.bf16.mxu1 %v3209_v1 }
  0xd9   : > { %v912_v54 = vld [vmem:[#allocation2 + $0xe8] sm:$0xff]  ;;  %v777_v5 = vrot.slane %v776_v61, 4  ;;  %808 = vst [vmem:[#allocation2 + $0xf4] sm:$0xf] %v772_v3  ;;  %v786_v10 = vor.u32 %v785_v0, %v781_v53  ;;  %v543_v13 = vrot.slane %v542_v4, 4  ;;  %v2410_v62 = vrot.slane %v811_v50, 9  ;;  %1989 = vmatmul.mubr.bf16.gmra.mrb[28].mxu1 %v3010_v2 }
  0xda   : > { %v812_v12 = vld [vmem:[%s3431_s21 + $0x8] sm:$0xf]  ;;  %v665_v15 = vrot.slane %v664_v8, 4  ;;  %v791_v21 = vrot.slane %v789_v11, 5  ;;  %v839_v22 = vrot.slane %v813_v17, 5 }
  0xdb   : > { %v836_v19 = vrot.slane %v812_v12, 5  ;;  %v782_v20 = vsel %vm3452_vm2, %v777_v5, %v781_v53  ;;  %v787_v6 = vrot.slane %v786_v10, 4  ;;  %v3739_v24 = vld [vmem:[%s3431_s21 + $0x1c] sm:$0xf]  ;;  %v917_v25 = vld [vmem:[#allocation2 + $0x10c] sm:$0xff]  ;;  %v548_v26 = vsel %vm3452_vm2, %v543_v13, %v547_v7  ;;  %2809 = vmatpush3.bf16.msra.mxu1 %v3698_v39 }
  0xdc   : > { %v3013_v16 = vld [vmem:[#allocation2 + $0xec] ss:$36 sps:$4 sm:$0xff]   ;;  %809 = vst [vmem:[#allocation2 + $0x118] sm:$0xf] %v782_v20  ;;  %v670_v27 = vsel %vm3452_vm2, %v665_v15, %v669_v9  ;;  %v818_v31 = vld [vmem:[%s3431_s21 + $0x20] sm:$0xf]  ;;  %v2443_v32 = vcombine.low %v912_v54, %v917_v25  ;;  %2802 = vmatprep.subr.bf16.mxu1 %v3209_v1 }
  0xdd   : > { %v837_v28 = vsel %vm3729_vm5, %v2410_v62, %v836_v19  ;;  %v838_v30 = vrot.slane %v836_v19, 4  ;;  %566 = vst [vmem:[#allocation2 + $0x134] sm:$0xf] %v548_v26  ;;  %688 = vst [vmem:[#allocation2 + $0x138] sm:$0xf] %v670_v27  ;;  %v792_v33 = vsel %vm3452_vm2, %v787_v6, %v791_v21  ;;  %v851_v35 = vrot.slane %v3739_v24, 5  ;;  %1924 = vmatprep.mubr.bf16.mxu0 %v3013_v16 }
  0xde   : > { %871 = vst [vmem:[#allocation2 + $0x20] sm:$0xf] %v837_v28  ;;  %v819_v34 = vld [vmem:[%s3431_s21 + $0x24] sm:$0xf]  ;;  %v854_v36 = vrot.slane %v818_v31, 5  ;;  %v841_v41 = vrot.slane %v839_v22, 4  ;;  %1925 = vmatmul.mubr.bf16.gmra.mrb[32].mxu0 %v2443_v32 }
  0xdf   : > { %v814_v37 = vld [vmem:[%s3431_s21 + $0x10] sm:$0xf]  ;;  %810 = vst [vmem:[#allocation2 + $0x13c] sm:$0xf] %v792_v33  ;;  %v840_v38 = vsel %vm3729_vm5, %v838_v30, %v839_v22  ;;  %v857_v40 = vrot.slane %v819_v34, 5  ;;  %v853_v23 = vrot.slane %v851_v35, 4  ;;  %2810 = vmatpush3.bf16.msra.mxu1 %v3714_v57 }
  0xe0   : > { %v815_v29 = vld [vmem:[%s3431_s21 + $0x14] sm:$0xf]  ;;  %v842_v43 = vrot.slane %v814_v37, 5  ;;  %872 = vst [vmem:[#allocation2 + $0x44] sm:$0xf] %v840_v38  ;;  %v856_v18 = vrot.slane %v854_v36, 4 }
  0xe1   : > { %v845_v42 = vrot.slane %v815_v29, 5  ;;  %v820_v44 = vld [vmem:[%s3431_s21 + $0x28] sm:$0x1]  ;;  %v859_v46 = vrot.slane %v857_v40, 4  ;;  %v816_v49 = vld [vmem:[%s3431_s21 + $0x18] sm:$0xf]  ;;  %v855_v52 = vsel %vm3729_vm5, %v853_v23, %v854_v36 }
  0xe2   : > { %v843_v45 = vsel %vm3729_vm5, %v841_v41, %v842_v43  ;;  %v844_v39 = vrot.slane %v842_v43, 4  ;;  %v860_v47 = vrot.slane %v820_v44, 5  ;;  %v858_v53 = vsel %vm3729_vm5, %v856_v18, %v857_v40  ;;  %877 = vst [vmem:[#allocation2 + $0xf8] sm:$0xf] %v855_v52  ;;  %v3017_v61 = vld [vmem:[#allocation2 + $0xf0] ss:$36 sps:$4 sm:$0xff]  }
  0xe3   : > { %873 = vst [vmem:[#allocation2 + $0x68] sm:$0xf] %v843_v45  ;;  %v847_v55 = vrot.slane %v845_v42, 4  ;;  %v848_v58 = vrot.slane %v816_v49, 5  ;;  %878 = vst [vmem:[#allocation2 + $0x11c] sm:$0xf] %v858_v53 }
  0xe4   : > { %v846_v48 = vsel %vm3729_vm5, %v844_v39, %v845_v42  ;;  %v861_v59 = vsel %vm3729_vm5, %v859_v46, %v860_v47  ;;  %v3015_v60 = vld [vmem:[#allocation2 + $0xf4] ss:$36 sps:$4 sm:$0xff]   ;;  %v3781_v19 = vld [vmem:[#allocation8] ss:$0 sm:$0xff] }
  0xe5   : > { %874 = vst [vmem:[#allocation2 + $0x8c] sm:$0xf] %v846_v48  ;;  %879 = vst [vmem:[#allocation2 + $0x140] sm:$0xf] %v861_v59  ;;  %v849_v63 = vsel %vm3729_vm5, %v847_v55, %v848_v58  ;;  %v850_v0 = vrot.slane %v848_v58, 4  ;;  %v922_v50 = vld [vmem:[#allocation2 + $0x130] sm:$0xff]  ;;  %1996 = vmatprep.mubr.bf16.mxu1 %v3015_v60 }
  0xe6   : > { %875 = vst [vmem:[#allocation2 + $0xb0] sm:$0xf] %v849_v63  ;;  %v2453_v57 = vcombine.high %v922_v50, %v922_v50  ;;  %v923_v56 = vld [vmem:[#allocation2 + $0x138] sm:$0xff]  ;;  %v2452_v2 = vcombine.low %v922_v50, %v922_v50  ;;  %1997 = vmatmul.mubr.bf16.gmra.mrb[32].mxu1 %v3017_v61 }
  0xe7   : > { %v852_v3 = vsel %vm3729_vm5, %v850_v0, %v851_v35  ;;  %v2455_v4 = vcombine.high %v923_v56, %v923_v56  ;;  %v2454_v7 = vcombine.low %v923_v56, %v923_v56  ;;  %v3025_v8 = vld [vmem:[#allocation2 + $0x20] ss:$36 sps:$4 sm:$0xff]  }
  0xe8   : > { %876 = vst [vmem:[#allocation2 + $0xd4] sm:$0xf] %v852_v3  ;;  %1932 = vmatprep.mubr.bf16.mxu0 %v2453_v57 }
  0xe9   : > { %2004 = vmatprep.mubr.bf16.mxu1 %v2455_v4  ;;  %1933 = vmatmul.mubr.bf16.gmra.mrb[36].mxu0 %v2452_v2 }
  0xea   : > { %2775 = vmatprep.mubr.msk.bf16.mxu0 %vm3210_vm6, %v3209_v1  ;;  %v3026_v54 = vld [vmem:[#allocation2 + $0xf8] ss:$36 sps:$4 sm:$0xff]  }
  0xec   : > { %v3027_v5 = vld [vmem:[#allocation2 + $0x68] ss:$36 sps:$4 sm:$0xff]   ;;  %v3028_v9 = vld [vmem:[#allocation2 + $0x140] ss:$0 sps:$4 sm:$0xff]  }
  0xee   : > { %2005 = vmatmul.mubr.bf16.gmra.mrb[36].mxu1 %v2454_v7 }
  0xef   : > { %2787 = vmatprep.mubr.msk.bf16.mxu1 %vm3210_vm6, %v3209_v1  ;;  %v3029_v10 = vld [vmem:[#allocation2 + $0xb0] ss:$36 sps:$4 sm:$0xff]  }
  0xf1   : > { %2776 = vmatmul.mubr.bf16.vlgmr.msra.gmra.mrb[40].mxu0 %v3025_v8 }
  0xf2   : > { %2779 = vmatprep.mubr.msk.bf16.mxu0 %vm3210_vm6, %v3209_v1 }
  0xf6   : > { %2788 = vmatmul.mubr.bf16.vlgmr.msra.gmra.mrb[40].mxu1 %v3026_v54 }
  0xf7   : > { %2791 = vmatprep.mubr.msk.bf16.mxu1 %vm3210_vm6, %v3209_v1 }
  0xf9   : > { %2780 = vmatmul.mubr.bf16.gmra.mrb[44].mxu0 %v3027_v5 }
  0xfa   : > { %2783 = vmatprep.mubr.msk.bf16.mxu0 %vm3210_vm6, %v3209_v1 }
  0xfe   : > { %2792 = vmatmul.mubr.bf16.gmra.mrb[44].mxu1 %v3028_v9 }
 0x101   : > { %2784 = vmatmul.mubr.bf16.gmra.mrb[48].mxu0 %v3029_v10 }
 0x161   : > { %v2578_v11 = vpop.f32.mrb[0].mxu0 }
 0x162   : > { %v2579_v12 = vpop.f32.mrb[1].mxu0  ;;  %v2624_v6 = vpop.f32.mrb[0].mxu1 }
 0x163   : > { %v2580_v13 = vadd.f32 %v2579_v12, %v2578_v11  ;;  %v2581_v15 = vpop.f32.mrb[2].mxu0  ;;  %v2625_v21 = vpop.f32.mrb[1].mxu1 }
 0x164   : > { %v2582_v17 = vpop.f32.mrb[3].mxu0  ;;  %v2626_v1 = vadd.f32 %v2625_v21, %v2624_v6  ;;  %v2627_v25 = vpop.f32.mrb[2].mxu1 }
 0x165   : > { %v2583_v62 = vadd.f32 %v2582_v17, %v2581_v15  ;;  %v1759_v20 = vadd.f32 %v2580_v13, %v3781_v19  ;;  %v2628_v26 = vpop.f32.mrb[3].mxu1 }
 0x166   : > { %v2629_v31 = vadd.f32 %v2628_v26, %v2627_v25 }
 0x167   : > { %v1762_v24 = vadd.f32 %v2583_v62, %v3781_v19  ;;  %v3785_v30 = vadd.f32 %v2626_v1, %v1759_v20 }
 0x169   : > { %v2584_v22 = vpop.f32.mrb[4].mxu0  ;;  %v1834_v34 = vadd.f32 %v2629_v31, %v1762_v24 }
 0x16a   : > { %v2585_v16 = vpop.f32.mrb[5].mxu0  ;;  %v2630_v36 = vpop.f32.mrb[4].mxu1 }
 0x16b   : > { %v2586_v27 = vadd.f32 %v2585_v16, %v2584_v22  ;;  %v2587_v28 = vpop.f32.mrb[6].mxu0  ;;  %v2631_v37 = vpop.f32.mrb[5].mxu1 }
 0x16c   : > { %v2588_v32 = vpop.f32.mrb[7].mxu0  ;;  %v2632_v40 = vadd.f32 %v2631_v37, %v2630_v36  ;;  %v2633_v29 = vpop.f32.mrb[6].mxu1 }
 0x16d   : > { %v2589_v33 = vadd.f32 %v2588_v32, %v2587_v28  ;;  %v1767_v35 = vadd.f32 %v2586_v27, %v3781_v19  ;;  %v2634_v41 = vpop.f32.mrb[7].mxu1 }
 0x16e   : > { %v2635_v18 = vadd.f32 %v2634_v41, %v2633_v29 }
 0x16f   : > { %v1770_v38 = vadd.f32 %v2589_v33, %v3781_v19  ;;  %v3789_v23 = vadd.f32 %v2632_v40, %v1767_v35 }
 0x171   : > { %v2590_v43 = vpop.f32.mrb[8].mxu0  ;;  %v3791_v39 = vadd.f32 %v2635_v18, %v1770_v38 }
 0x172   : > { %v2591_v42 = vpop.f32.mrb[9].mxu0  ;;  %v2636_v52 = vpop.f32.mrb[8].mxu1 }
 0x173   : > { %v2592_v44 = vadd.f32 %v2591_v42, %v2590_v43  ;;  %v2593_v45 = vpop.f32.mrb[10].mxu0  ;;  %v2637_v53 = vpop.f32.mrb[9].mxu1 }
 0x174   : > { %v2594_v46 = vpop.f32.mrb[11].mxu0  ;;  %v2638_v58 = vadd.f32 %v2637_v53, %v2636_v52  ;;  %v2639_v48 = vpop.f32.mrb[10].mxu1 }
 0x175   : > { %v2595_v47 = vadd.f32 %v2594_v46, %v2593_v45  ;;  %v1775_v49 = vadd.f32 %v2592_v44, %v3781_v19  ;;  %v2640_v59 = vpop.f32.mrb[11].mxu1 }
 0x176   : > { %v2641_v61 = vadd.f32 %v2640_v59, %v2639_v48 }
 0x177   : > { %v1778_v55 = vadd.f32 %v2595_v47, %v3781_v19  ;;  %v3795_v60 = vadd.f32 %v2638_v58, %v1775_v49 }
 0x179   : > { %v2596_v63 = vpop.f32.mrb[12].mxu0  ;;  %v3797_v0 = vadd.f32 %v2641_v61, %v1778_v55 }
 0x17a   : > { %v2597_v50 = vpop.f32.mrb[13].mxu0 }
 0x17b   : > { %v2598_v57 = vadd.f32 %v2597_v50, %v2596_v63  ;;  %v2599_v56 = vpop.f32.mrb[14].mxu0  ;;  %v2642_v7 = vpop.f32.mrb[12].mxu1 }
 0x17c   : > { %v2600_v2 = vpop.f32.mrb[15].mxu0  ;;  %v2643_v8 = vpop.f32.mrb[13].mxu1 }
 0x17d   : > { %v2601_v3 = vadd.f32 %v2600_v2, %v2599_v56  ;;  %v1783_v4 = vadd.f32 %v2598_v57, %v3781_v19  ;;  %v2644_v5 = vadd.f32 %v2643_v8, %v2642_v7  ;;  %v2645_v9 = vpop.f32.mrb[14].mxu1 }
 0x17e   : > { %v2646_v11 = vpop.f32.mrb[15].mxu1 }
 0x17f   : > { %v1786_v54 = vadd.f32 %v2601_v3, %v3781_v19  ;;  %v3801_v13 = vadd.f32 %v2644_v5, %v1783_v4  ;;  %v2647_v15 = vadd.f32 %v2646_v11, %v2645_v9 }
 0x181   : > { %v2602_v10 = vpop.f32.mrb[16].mxu0  ;;  %v3803_v6 = vadd.f32 %v2647_v15, %v1786_v54 }
 0x182   : > { %v2603_v12 = vpop.f32.mrb[17].mxu0 }
 0x183   : > { %v2604_v17 = vadd.f32 %v2603_v12, %v2602_v10  ;;  %v2605_v62 = vpop.f32.mrb[18].mxu0  ;;  %v2648_v22 = vpop.f32.mrb[16].mxu1 }
 0x184   : > { %v2606_v20 = vpop.f32.mrb[19].mxu0  ;;  %v2649_v24 = vpop.f32.mrb[17].mxu1 }
 0x185   : > { %v1791_v21 = vadd.f32 %v2604_v17, %v3781_v19  ;;  %v2650_v1 = vadd.f32 %v2649_v24, %v2648_v22  ;;  %v2651_v25 = vpop.f32.mrb[18].mxu1 }
 0x186   : > { %v2652_v16 = vpop.f32.mrb[19].mxu1 }
 0x187   : > { %v3806_v26 = vadd.f32 %v2650_v1, %v1791_v21 }
 0x18b   : > { %v2670_v27 = vpop.f32.mrb[20].mxu0 }
 0x18c   : > { %v2671_v28 = vpop.f32.mrb[21].mxu0 }
 0x18d   : > { %v2672_v31 = vadd.f32 %v2671_v28, %v2670_v27  ;;  %v2673_v32 = vpop.f32.mrb[22].mxu0 }
 0x18e   : > { %v2674_v33 = vpop.f32.mrb[23].mxu0 }
 0x18f   : > { %v1903_v35 = vadd.f32 %v2672_v31, %v3785_v30  ;;  %v2675_v36 = vadd.f32 %v2674_v33, %v2673_v32 }
 0x191   : > { %v1906_v37 = vadd.f32 %v2675_v36, %v1834_v34 }
 0x195   : > { %v2716_v38 = vpop.f32.mrb[20].mxu1 }
 0x196   : > { %v2717_v40 = vpop.f32.mrb[21].mxu1 }
 0x197   : > { %v2718_v29 = vadd.f32 %v2717_v40, %v2716_v38  ;;  %v2719_v19 = vpop.f32.mrb[22].mxu1 }
 0x198   : > { %v2720_v41 = vpop.f32.mrb[23].mxu1  ;;  %v2676_v43 = vpop.f32.mrb[24].mxu0 }
 0x199   : > { %v2721_v18 = vadd.f32 %v2720_v41, %v2719_v19  ;;  %v2677_v42 = vpop.f32.mrb[25].mxu0  ;;  %v1975_v44 = vadd.f32 %v2718_v29, %v1903_v35 }
 0x19a   : > { %v2678_v45 = vadd.f32 %v2677_v42, %v2676_v43  ;;  %v2679_v46 = vpop.f32.mrb[26].mxu0 }
 0x19b   : > { %v2680_v47 = vpop.f32.mrb[27].mxu0  ;;  %v1978_v49 = vadd.f32 %v2721_v18, %v1906_v37 }
 0x19c   : > { %v1911_v52 = vadd.f32 %v2678_v45, %v3789_v23  ;;  %v2681_v53 = vadd.f32 %v2680_v47, %v2679_v46 }
 0x19e   : > { %v1914_v30 = vadd.f32 %v2681_v53, %v3791_v39 }
 0x1a0   : > { %v2722_v55 = vpop.f32.mrb[24].mxu1 }
 0x1a1   : > { %v2723_v34 = vpop.f32.mrb[25].mxu1 }
 0x1a2   : > { %v2724_v58 = vadd.f32 %v2723_v34, %v2722_v55  ;;  %v2725_v48 = vpop.f32.mrb[26].mxu1 }
 0x1a3   : > { %v2726_v59 = vpop.f32.mrb[27].mxu1 }
 0x1a4   : > { %v2727_v61 = vadd.f32 %v2726_v59, %v2725_v48  ;;  %v3811_v50 = vadd.f32 %v2724_v58, %v1911_v52 }
 0x1a5   : > { %v2682_v63 = vpop.f32.mrb[28].mxu0 }
 0x1a6   : > { %v2683_v57 = vpop.f32.mrb[29].mxu0  ;;  %v3813_v3 = vadd.f32 %v2727_v61, %v1914_v30 }
 0x1a7   : > { %v2684_v56 = vadd.f32 %v2683_v57, %v2682_v63  ;;  %v2685_v2 = vpop.f32.mrb[30].mxu0 }
 0x1a8   : > { %v2686_v4 = vpop.f32.mrb[31].mxu0 }
 0x1a9   : > { %v1919_v23 = vadd.f32 %v2684_v56, %v3795_v60  ;;  %v2687_v7 = vadd.f32 %v2686_v4, %v2685_v2 }
 0x1ab   : > { %v1922_v39 = vadd.f32 %v2687_v7, %v3797_v0 }
 0x1ac   : > { %v2728_v8 = vpop.f32.mrb[28].mxu1 }
 0x1ad   : > { %v2729_v54 = vpop.f32.mrb[29].mxu1 }
 0x1ae   : > { %v2730_v5 = vadd.f32 %v2729_v54, %v2728_v8  ;;  %v2731_v9 = vpop.f32.mrb[30].mxu1 }
 0x1af   : > { %v2732_v10 = vpop.f32.mrb[31].mxu1 }
 0x1b0   : > { %v2733_v11 = vadd.f32 %v2732_v10, %v2731_v9  ;;  %v3817_v15 = vadd.f32 %v2730_v5, %v1919_v23 }
 0x1b1   : > { %v2688_v12 = vpop.f32.mrb[32].mxu0 }
 0x1b2   : > { %v2689_v17 = vpop.f32.mrb[33].mxu0  ;;  %v3819_v21 = vadd.f32 %v2733_v11, %v1922_v39 }
 0x1b3   : > { %v2690_v62 = vadd.f32 %v2689_v17, %v2688_v12  ;;  %v2691_v20 = vpop.f32.mrb[34].mxu0 }
 0x1b4   : > { %v2692_v22 = vpop.f32.mrb[35].mxu0 }
 0x1b5   : > { %v1927_v60 = vadd.f32 %v2690_v62, %v3801_v13  ;;  %v2693_v24 = vadd.f32 %v2692_v22, %v2691_v20 }
 0x1b7   : > { %v1930_v0 = vadd.f32 %v2693_v24, %v3803_v6 }
 0x1b9   : > { %v2734_v1 = vpop.f32.mrb[32].mxu1 }
 0x1ba   : > { %v2735_v25 = vpop.f32.mrb[33].mxu1 }
 0x1bb   : > { %v2736_v16 = vadd.f32 %v2735_v25, %v2734_v1  ;;  %v2737_v27 = vpop.f32.mrb[34].mxu1 }
 0x1bc   : > { %v2694_v28 = vpop.f32.mrb[36].mxu0  ;;  %v2738_v31 = vpop.f32.mrb[35].mxu1 }
 0x1bd   : > { %v2695_v32 = vpop.f32.mrb[37].mxu0  ;;  %v2739_v33 = vadd.f32 %v2738_v31, %v2737_v27  ;;  %v1999_v37 = vadd.f32 %v2736_v16, %v1927_v60 }
 0x1be   : > { %v2696_v35 = vadd.f32 %v2695_v32, %v2694_v28  ;;  %v2697_v36 = vpop.f32.mrb[38].mxu0 }
 0x1bf   : > { %v2698_v38 = vpop.f32.mrb[39].mxu0  ;;  %v2002_v29 = vadd.f32 %v2739_v33, %v1930_v0 }
 0x1c0   : > { %v1935_v40 = vadd.f32 %v2696_v35, %v3806_v26 }
 0x1c1   : > { %v2740_v13 = vpop.f32.mrb[36].mxu1 }
 0x1c2   : > { %v2741_v19 = vpop.f32.mrb[37].mxu1 }
 0x1c3   : > { %v2742_v41 = vadd.f32 %v2741_v19, %v2740_v13  ;;  %v2743_v6 = vpop.f32.mrb[38].mxu1 }
 0x1c4   : > { %v2046_v43 = vpop.f32.mrb[40].mxu0  ;;  %v2744_v18 = vpop.f32.mrb[39].mxu1 }
 0x1c5   : > { %v2047_v42 = vadd.f32 %v2046_v43, %v1975_v44  ;;  %v2777_v45 = vpop.f32.mrb[41].mxu0  ;;  %v2007_v47 = vadd.f32 %v2742_v41, %v1935_v40 }
 0x1c6   : > { %v2049_v46 = vpop.f32.mrb[42].mxu0 }
 0x1c7   : > { %v2050_v52 = vadd.f32 %v2049_v46, %v1978_v49  ;;  %v2778_v53 = vpop.f32.mrb[43].mxu0  ;;  %v2084_v30 = vmax.f32 %v2047_v42, 0.0 }
 0x1c9   : > { %v2085_v55 = vmax.f32 %v2050_v52, 0.0  ;;  %v2070_v34 = vpop.f32.mrb[40].mxu1 }
 0x1ca   : > { %v2071_v58 = vadd.f32 %v2070_v34, %v1999_v37  ;;  %v2789_v48 = vpop.f32.mrb[41].mxu1 }
 0x1cb   : > { %v2093_v26 = vpack.c.bf16 %v2085_v55, %v2084_v30  ;;  %v2553_v59 = vpack.c.bf16 %v2085_v55, %v2085_v55  ;;  %v2073_v61 = vpop.f32.mrb[42].mxu1 }
 0x1cc   : > { %v2054_v63 = vpop.f32.mrb[44].mxu0  ;;  %v2090_v57 = vmax.f32 %v2071_v58, 0.0  ;;  %v2074_v2 = vadd.f32 %v2073_v61, %v2002_v29  ;;  %v2790_v4 = vpop.f32.mrb[43].mxu1 }
 0x1cd   : > { %2098 = vst [vmem:[%s3825_s22] sm:$0xf] %v2093_v26  ;;  %v2106_v44 = vshrl.u32 %v2553_v59, 16  ;;  %v2109_v56 = vshll.u32 %v2553_v59, 16  ;;  %v2781_v49 = vpop.f32.mrb[45].mxu0  ;;  %v2055_v23 = vadd.f32 %v2054_v63, %v3811_v50 }
 0x1ce   : > { %v2057_v7 = vpop.f32.mrb[46].mxu0  ;;  %v2091_v54 = vmax.f32 %v2074_v2, 0.0  ;;  %v3829_v9 = vpack.c.bf16 %v2090_v57, %v2090_v57 }
 0x1cf   : > { %v2108_v39 = vrot.slane %v2106_v44, 4  ;;  %v2111_v8 = vrot.slane %v2109_v56, 5  ;;  %v2782_v5 = vpop.f32.mrb[47].mxu0  ;;  %v2086_v10 = vmax.f32 %v2055_v23, 0.0  ;;  %v2058_v11 = vadd.f32 %v2057_v7, %v3813_v3 }
 0x1d0   : > { %v2559_v17 = vpack.c.bf16 %v2091_v54, %v2091_v54  ;;  %v2543_v0 = vrot.slane %v3829_v9, 11  ;;  %v2186_v51 = vshrl.u32 %v3829_v9, 16  ;;  %v2189_v26 = vshll.u32 %v3829_v9, 16 }
 0x1d1   : > { %v2112_v12 = vor.u32 %v2111_v8, %v2108_v39  ;;  %v2554_v62 = vpack.c.bf16 %v2086_v10, %v2086_v10  ;;  %v2078_v20 = vpop.f32.mrb[44].mxu1  ;;  %v2087_v22 = vmax.f32 %v2058_v11, 0.0 }
 0x1d2   : > { %v2079_v50 = vadd.f32 %v2078_v20, %v2007_v47  ;;  %v2793_v24 = vpop.f32.mrb[45].mxu1  ;;  %v2204_v1 = vrot.slane %v2559_v17, 7  ;;  %v2216_v42 = vshrl.u32 %v2559_v17, 16  ;;  %v2188_v7 = vrot.slane %v2186_v51, 6 }
 0x1d3   : > { %v2115_v25 = vshll.u32 %v2554_v62, 16  ;;  %v2081_v27 = vpop.f32.mrb[46].mxu1  ;;  %v2555_v28 = vpack.c.bf16 %v2087_v22, %v2087_v22  ;;  %v2113_v35 = vrot.slane %v2112_v12, 4  ;;  %v2533_v38 = vrot.slane %v2554_v62, 9 }
 0x1d4   : > { %v2062_v16 = vpop.f32.mrb[48].mxu0  ;;  %v2092_v3 = vmax.f32 %v2079_v50, 0.0  ;;  %v2794_v33 = vpop.f32.mrb[47].mxu1  ;;  %v2205_v36 = vsel %vm3832_vm9, %v2543_v0, %v2204_v1  ;;  %v2546_v59 = vrot.slane %v2216_v42, 11  ;;  %v2191_v54 = vrot.slane %v2189_v26, 7 }
 0x1d5   : > { %v2063_v31 = vadd.f32 %v2062_v16, %v3817_v15  ;;  %v2785_v32 = vpop.f32.mrb[49].mxu0  ;;  %v2117_v37 = vrot.slane %v2115_v25, 5  ;;  %2544 = vst [vmem:[%s3825_s22 + $0x18] sm:$0xf] %v2205_v36  ;;  %v2126_v13 = vrot.slane %v2555_v28, 5  ;;  %v2138_v19 = vshrl.u32 %v2555_v28, 16 }
 0x1d6   : > { %v2065_v40 = vpop.f32.mrb[50].mxu0  ;;  %v2560_v29 = vpack.c.bf16 %v2092_v3, %v2092_v3  ;;  %v2141_v41 = vshll.u32 %v2555_v28, 16  ;;  %v2192_v17 = vor.u32 %v2191_v54, %v2188_v7 }
 0x1d7   : > { %v2786_v6 = vpop.f32.mrb[51].mxu0  ;;  %v2118_v15 = vsel %vm3452_vm2, %v2113_v35, %v2117_v37  ;;  %v2088_v43 = vmax.f32 %v2063_v31, 0.0  ;;  %v2066_v18 = vadd.f32 %v2065_v40, %v3819_v21  ;;  %v2127_v46 = vsel %vm3729_vm5, %v2533_v38, %v2126_v13 }
 0x1d8   : > { %2531 = vst [vmem:[%s3825_s22 + $0x4] sm:$0xf] %v2118_v15  ;;  %v2221_v45 = vshrl.u32 %v2560_v29, 16  ;;  %v2140_v47 = vrot.slane %v2138_v19, 5  ;;  %2534 = vst [vmem:[%s3825_s22 + $0x8] sm:$0xf] %v2127_v46 }
 0x1d9   : > { %v2143_v52 = vrot.slane %v2141_v41, 6  ;;  %v2556_v53 = vpack.c.bf16 %v2088_v43, %v2088_v43  ;;  %v2089_v30 = vmax.f32 %v2066_v18, 0.0  ;;  %v2224_v34 = vshll.u32 %v2560_v29, 16 }
 0x1da   : > { %v2223_v55 = vrot.slane %v2221_v45, 7  ;;  %vm2173_vm2 = vsmask.f32 1280 }
 0x1db   : > { %v2144_v14 = vor.u32 %v2143_v52, %v2140_v47  ;;  %v2147_v58 = vshrl.u32 %v2556_v53, 16  ;;  %v2150_v48 = vshll.u32 %v2556_v53, 16  ;;  %v2557_v63 = vpack.c.bf16 %v2089_v30, %v2089_v30  ;;  %vm2175_vm5 = vmor %vm2173_vm2, %vm2174_vm4 }
 0x1dc   : > { %v2226_v61 = vor.u32 %v2224_v34, %v2223_v55  ;;  %v2538_v56 = vrot.slane %v2556_v53, 10 }
 0x1dd   : > { %v2149_v57 = vrot.slane %v2147_v58, 5  ;;  %v2152_v44 = vrot.slane %v2150_v48, 6  ;;  %v2165_v4 = vrot.slane %v2557_v63, 6  ;;  %v2177_v49 = vshrl.u32 %v2557_v63, 16 }
 0x1de   : > { %v2227_v2 = vsel %vm3851_vm0, %v2546_v59, %v2226_v61  ;;  %v2180_v23 = vshll.u32 %v2557_v63, 16  ;;  %v2145_v39 = vrot.slane %v2144_v14, 4 }
 0x1df   : > { %2547 = vst [vmem:[%s3825_s22 + $0x1c] sm:$0xf] %v2227_v2  ;;  %v2153_v8 = vor.u32 %v2152_v44, %v2149_v57  ;;  %v2166_v5 = vsel %vm2162_vm1, %v2538_v56, %v2165_v4  ;;  %v2179_v9 = vrot.slane %v2177_v49, 6 }
 0x1e0   : > { %v2182_v10 = vrot.slane %v2180_v23, 7  ;;  %2539 = vst [vmem:[%s3825_s22 + $0x10] sm:$0xf] %v2166_v5 }
 0x1e1   : > { %v2154_v11 = vsel %vm2136_vm3, %v2145_v39, %v2153_v8 }
 0x1e2   : > { %2536 = vst [vmem:[%s3825_s22 + $0xc] sm:$0xf] %v2154_v11  ;;  %v2183_v12 = vor.u32 %v2182_v10, %v2179_v9 }
 0x1e4   : > { %v2184_v62 = vrot.slane %v2183_v12, 4 }
 0x1e6   : > { %v2193_v20 = vsel %vm2175_vm5, %v2184_v62, %v2192_v17 }
 0x1e7   : > { %2541 = vst [vmem:[%s3825_s22 + $0x14] sm:$0xf] %v2193_v20 }
 0x1e8   : > { %3129 = shalt.err (!%p3126_p2)
}
 0x1e9   : > { %s3130_s28 = scalar_lea.hbm %s3871_s26, 512  ;;  %s3134_s8 = scalar_lea.hbm %s3924_s3, 1024 }
 0x1ea   : > { %p3131_p0 = scmp.ne.s32.totalorder %s3871_s26, %s3130_s28  ;;  %p3135_p6 = scmp.lt.u32.totalorder %s3871_s26, %s3924_s3 }
 0x1eb   : > { %p3136_p7 = scmp.lt.u32.totalorder %s3134_s8, %s3130_s28  ;;  %p3138_p8 = scmp.lt.u32.totalorder %s3130_s28, %s3871_s26 }
 0x1ec   : > { %p3132_p4 = pnand %p3131_p0, %p3947_p12 }
 0x1ed   : > { %p3137_p11 = por %p3136_p7, %p3135_p6 }
 0x1ee   : > { %p3133_p13 = pneg %p3132_p4 }
 0x1ef   : > { %p3139_p1 = por %p3138_p8, %p3137_p11 }
 0x1f1   : > { %p3140_p10 = pnand %p3139_p1, %p3133_p13 }
 0x1f3   : > { %3143 = shalt.err (!%p3140_p10)
}
 0x1f4   : > { %s3212_s22 = smov 64   ;;  %s3213_s11 = smov 4  }
 0x1f5   : > { %2824 = dma.vmem_to_hbm [thread:$0]  (%p3947_p12), %s3865_s24, 512, %s3871_s26, %s2232_s10, %s3212_s22, %s3212_s22, %s3213_s11  }
 0x1f6 PF: > { %s2261_s18 = sand.u32 1, %s3182_s12   ;;  %p3948_p3 = scmp.ne.s32.totalorder %s3932_s23, 0 }
 0x1f7   : > { %p3949_p5 = scmp.ge.s32.totalorder %s3202_s17, 2  ;;  %s2262_s5 = scalar_lea.sflag [#allocation5], %s2261_s18 }
 0x1f9   : > { %p2838_p9 = pnand %p3949_p5, %p3948_p3 }
 0x1fb   : > { %3177 = dma.done.wait (!%p2838_p9), %s2262_s5, 512  }
 0x1fc   : > { %3179 = vsyncadd (!%p2838_p9), %s2262_s5, 4294966784  ;;  %s20_s17 = sadd.s32 1, %s3202_s17   ;;  %s3950_s12 = smov %s3186_s13 }
 0x1fd   : > { %p17_p2 = scmp.ge.s32.totalorder %s20_s17, 4   ;;  %s3951_s13 = smov %s3190_s14 }
 0x1fe   : > { %s3952_s14 = smov %s3383_s6  ;;  %s3953_s15 = smov %s3198_s16 }
 0x1ff   : > { %s3954_s16 = smov %s3956_s25  ;;  %19 = sbr.rel (!%p17_p2) target bundleno = 7 (0x7), region = 97 }
 0x206   :  { %2267 = vsyncpa [#allocation4], 1 }
 0x207   :  { %2269 = vsyncpa [#allocation4 + $0x1], 1 }
 0x208   :  { %2270 = vsyncpa [#allocation7], 1 }
 0x209   :  { %2271 = vsyncpa [#allocation5], 1 }
 0x20a   :  { %2273 = vsyncpa [#allocation5 + $0x1], 1 }

</bundles_post_ra>
